<compile_context>
chip_gen: v7x
topology: tpu7x:2x2x1
jax: 0.10.0
libtpu: 0.0.40
codegen_flags: <defaults>
</compile_context>

<pallas_src>
import random

import jax
import jax.numpy as jnp
from jax import lax
from jax.experimental import pallas as pl
from jax.experimental.pallas import tpu as pltpu


_VMEM = pl.BlockSpec(memory_space=pltpu.MemorySpace.VMEM)
_SMEM = pl.BlockSpec(memory_space=pltpu.MemorySpace.SMEM)

PAD_IDX = 1        # stand-in for label_field.vocab.stoi[pad_token]
NEG_BIG = -1e30    # padded vocab columns: never win the argmax, stay finite


# ----------------------------------------------------------------------------
# Kernel 1: fused bidirectional encoder + bridge linears + attention enc-proj
# ----------------------------------------------------------------------------

def _encoder_kernel(emb_ref,
                    wihf_ref, whhf_ref, bf_ref,
                    wihb_ref, whhb_ref, bb_ref,
                    whf_ref, whb_ref, bh_ref,
                    wcf_ref, wcb_ref, bc_ref,
                    waenc_ref, ba_ref,
                    enc_ref, encp_ref, hid_ref, cell_ref,
                    gxf_ref, gxb_ref):
    S, B, H = emb_ref.shape

    # ---- hoisted input projections (one big matmul per direction, bf16 scratch) ----
    emb2d = emb_ref[...].reshape(S * B, H).astype(jnp.bfloat16)
    gxf_ref[...] = (jnp.dot(emb2d, wihf_ref[...],
                            preferred_element_type=jnp.float32)
                    + bf_ref[...]).reshape(S, B, 4 * H).astype(jnp.bfloat16)
    gxb_ref[...] = (jnp.dot(emb2d, wihb_ref[...],
                            preferred_element_type=jnp.float32)
                    + bb_ref[...]).reshape(S, B, 4 * H).astype(jnp.bfloat16)

    whh_f = whhf_ref[...]          # bf16 (H, 4H)
    whh_b = whhb_ref[...]          # bf16 (H, 4H)

    def gates_to_hc(gates, c):
        # gate order (i, f, o | g): one sigmoid over a contiguous 3H slab
        s = jax.nn.sigmoid(gates[:, :3 * H])
        i, f, o = s[:, :H], s[:, H:2 * H], s[:, 2 * H:3 * H]
        g = jnp.tanh(gates[:, 3 * H:])
        c_new = f * c + i * g
        return o * jnp.tanh(c_new), c_new

    def step(t, carry):
        hf, cf, hb, cb = carry
        gf = gxf_ref[t].astype(jnp.float32) + jnp.dot(
            hf.astype(jnp.bfloat16), whh_f, preferred_element_type=jnp.float32)
        gb = gxb_ref[S - 1 - t].astype(jnp.float32) + jnp.dot(
            hb.astype(jnp.bfloat16), whh_b, preferred_element_type=jnp.float32)
        hf_n, cf_n = gates_to_hc(gf, cf)
        hb_n, cb_n = gates_to_hc(gb, cb)
        # write directly in the decoder layout (S, B, 2H): no JAX-side concat/transpose
        enc_ref[t, :, :H] = hf_n
        enc_ref[S - 1 - t, :, H:] = hb_n
        return (hf_n, cf_n, hb_n, cb_n)

    z = jnp.zeros((B, H), jnp.float32)
    hf, cf, hb, cb = lax.fori_loop(0, S, step, (z, z, z, z), unroll=True)

    # ---- bridge linears (split weights: no lane-dim concat) ----
    hid_ref[...] = (jnp.dot(hf.astype(jnp.bfloat16), whf_ref[...],
                            preferred_element_type=jnp.float32)
                    + jnp.dot(hb.astype(jnp.bfloat16), whb_ref[...],
                              preferred_element_type=jnp.float32)
                    + bh_ref[...])
    cell_ref[...] = (jnp.dot(cf.astype(jnp.bfloat16), wcf_ref[...],
                             preferred_element_type=jnp.float32)
                     + jnp.dot(cb.astype(jnp.bfloat16), wcb_ref[...],
                               preferred_element_type=jnp.float32)
                     + bc_ref[...])

    # ---- encoder-side attention projection, hoisted out of the decode loop ----
    enc = enc_ref[...]                                           # (S, B, 2H)
    encp_ref[...] = (jnp.dot(enc.reshape(S * B, 2 * H).astype(jnp.bfloat16),
                             waenc_ref[...], preferred_element_type=jnp.float32)
                     + ba_ref[...]).reshape(S, B, H)


# ----------------------------------------------------------------------------
# Kernel 2: fused decoder loop (attention -> context -> LSTM cell -> projection)
# ----------------------------------------------------------------------------

def _decoder_kernel(tf_ref,                       # SMEM (T,) int32 teacher-forcing flags
                    hid_ref, cell_ref, temb_ref, enc_ref, encp_ref, mask_ref,
                    emb_tab_ref,
                    wah_ref, v_ref, bv_ref,
                    win_ref, bl_ref,
                    wout_ref, bout_ref,
                    logits_ref,
                    xin_ref):
    T, B, H = temb_ref.shape
    S = enc_ref.shape[0]
    Op = wout_ref.shape[1]                        # padded vocab (lane-dense, >=128)

    # ---- hoisted, once-per-sequence work ----
    enc = enc_ref[...]                            # (S, B, 2H) f32
    encp = encp_ref[...]                          # (S, B, H)  f32
    mask = mask_ref[...] > 0.5                    # (S, B) bool (PAD or batch-pad)
    wa_h = wah_ref[...]                           # (H, H)   bf16
    v_bc = jnp.broadcast_to(v_ref[...], (1, B, H))
    bv = bv_ref[...]                              # (1, 1) f32
    w_in = win_ref[...]                           # (4H, 4H) bf16
    wout = wout_ref[...]                          # (H, Op)  bf16
    emb_tab = emb_tab_ref[...]                    # (Op, H)  f32 (greedy path only)
    bl_b = jnp.broadcast_to(bl_ref[...], (B, 4 * H))
    bout_b = jnp.broadcast_to(bout_ref[...], (B, Op))
    lane_iota = lax.broadcasted_iota(jnp.int32, (B, Op), 1)

    logits_ref[0] = jnp.zeros((B, Op), jnp.float32)   # outputs[0] stays zero, as in torch

    def gates_to_hc(gates, c):
        s = jax.nn.sigmoid(gates[:, :3 * H])
        i, f, o = s[:, :H], s[:, H:2 * H], s[:, 2 * H:3 * H]
        g = jnp.tanh(gates[:, 3 * H:])
        c_new = f * c + i * g
        return o * jnp.tanh(c_new), c_new

    def step(t, carry):
        h, c, x_emb = carry

        # ---- attention (softmax over the batch axis: faithful to the torch reference) ----
        hq = jnp.dot(h.astype(jnp.bfloat16), wa_h,
                     preferred_element_type=jnp.float32)          # (B, H)
        score_h = jnp.tanh(encp + hq[None, :, :])                 # (S, B, H)
        sc = jnp.sum(score_h * v_bc, axis=2) + bv                 # (S, B)
        sc = jnp.where(mask, -jnp.inf, sc)
        attn = jax.nn.softmax(sc, axis=1)                         # torch softmax(dim=0) == batch
        context = jnp.sum(attn[:, :, None] * enc, axis=0)         # (B, 2H)

        # ---- fused LSTM-cell input matmul: [context | embedded | h] @ W_in (K = 4H) ----
        xin_ref[:, :2 * H] = context
        xin_ref[:, 2 * H:3 * H] = x_emb
        xin_ref[:, 3 * H:] = h
        gates = jnp.dot(xin_ref[...].astype(jnp.bfloat16), w_in,
                        preferred_element_type=jnp.float32) + bl_b
        h_new, c_new = gates_to_hc(gates, c)

        # ---- output projection (lane-dense: vocab padded to Op >= 128) ----
        logits = (jnp.dot(h_new.astype(jnp.bfloat16), wout,
                          preferred_element_type=jnp.float32) + bout_b)   # (B, Op)
        logits_ref[t] = logits

        # ---- next input embedding: teacher forcing vs greedy (argmax), greedy only when needed ----
        temb_t = temb_ref[t]

        def greedy():
            maxv = jnp.max(logits, axis=1, keepdims=True)
            first = jnp.min(jnp.where(logits == maxv, lane_iota, Op),
                            axis=1, keepdims=True)
            onehot = (lane_iota == first).astype(jnp.float32)
            return jnp.dot(onehot, emb_tab, preferred_element_type=jnp.float32)

        x_next = lax.cond(tf_ref[t] > 0, lambda: temb_t, greedy)
        return (h_new, c_new, x_next)

    lax.fori_loop(1, T, step, (hid_ref[...], cell_ref[...], temb_ref[0]),
                  unroll=True)


# ----------------------------------------------------------------------------
# pallas_call wrappers (shapes are tiny; whole arrays live in VMEM)
# ----------------------------------------------------------------------------

def encoder_forward(emb, kp):
    S, B, H = emb.shape
    return pl.pallas_call(
        _encoder_kernel,
        out_shape=(jax.ShapeDtypeStruct((S, B, 2 * H), jnp.float32),   # enc (decoder layout)
                   jax.ShapeDtypeStruct((S, B, H), jnp.float32),       # enc @ Wa_enc + ba
                   jax.ShapeDtypeStruct((B, H), jnp.float32),          # bridged hidden
                   jax.ShapeDtypeStruct((B, H), jnp.float32)),         # bridged cell
        in_specs=[_VMEM] * 15,
        out_specs=(_VMEM, _VMEM, _VMEM, _VMEM),
        scratch_shapes=[pltpu.VMEM((S, B, 4 * H), jnp.bfloat16),
                        pltpu.VMEM((S, B, 4 * H), jnp.bfloat16)],
        compiler_params=pltpu.CompilerParams(vmem_limit_bytes=32 * 1024 * 1024),
    )(emb,
      kp["enc_wih_f"], kp["enc_whh_f"], kp["enc_b_f"],
      kp["enc_wih_b"], kp["enc_whh_b"], kp["enc_b_b"],
      kp["bridge_wh_f"], kp["bridge_wh_b"], kp["bridge_bh"],
      kp["bridge_wc_f"], kp["bridge_wc_b"], kp["bridge_bc"],
      kp["attn_wa_enc"], kp["attn_ba"])


def decoder_forward(tf_flags, hidden, cell, teacher_embs, enc, enc_proj, mask, kp):
    T, B, H = teacher_embs.shape
    Op = kp["dec_wout_pad"].shape[1]
    return pl.pallas_call(
        _decoder_kernel,
        out_shape=jax.ShapeDtypeStruct((T, B, Op), jnp.float32),
        in_specs=[_SMEM] + [_VMEM] * 14,
        out_specs=_VMEM,
        scratch_shapes=[pltpu.VMEM((B, 4 * H), jnp.float32)],   # staged [ctx|emb|h] slab
        compiler_params=pltpu.CompilerParams(vmem_limit_bytes=32 * 1024 * 1024),
    )(tf_flags, hidden, cell, teacher_embs, enc, enc_proj, mask,
      kp["dec_emb_pad"],
      kp["attn_wa_h"], kp["attn_v"], kp["attn_bv"],
      kp["dec_w_in"], kp["dec_b"],
      kp["dec_wout_pad"], kp["dec_bout_pad"])


# ----------------------------------------------------------------------------
# Parameter init (deterministic, PyTorch-like ranges).
# Weights that torch stores concatenated are stored pre-split / pre-fused /
# gate-reordered (pure relabelling of i.i.d. random inits; the forward math is
# an identical LSTM).
# ----------------------------------------------------------------------------

def init_params(key, input_size, output_size, H):
    ks = iter(jax.random.split(key, 32))

    def unif(shape, fan):
        s = 1.0 / jnp.sqrt(float(fan))
        return jax.random.uniform(next(ks), shape, jnp.float32, -s, s)

    def lstm_bias(shape):
        s = 1.0 / jnp.sqrt(float(H))
        return (jax.random.uniform(next(ks), shape, jnp.float32, -s, s)
                + jax.random.uniform(next(ks), shape, jnp.float32, -s, s))

    p = {}
    p["enc_emb"] = jax.random.normal(next(ks), (input_size, H), jnp.float32)
    p["enc_wih_f"] = unif((H, 4 * H), H)
    p["enc_whh_f"] = unif((H, 4 * H), H)
    p["enc_b_f"] = lstm_bias((1, 4 * H))
    p["enc_wih_b"] = unif((H, 4 * H), H)
    p["enc_whh_b"] = unif((H, 4 * H), H)
    p["enc_b_b"] = lstm_bias((1, 4 * H))
    p["bridge_wh_f"] = unif((H, H), 2 * H)
    p["bridge_wh_b"] = unif((H, H), 2 * H)
    p["bridge_bh"] = unif((1, H), 2 * H)
    p["bridge_wc_f"] = unif((H, H), 2 * H)
    p["bridge_wc_b"] = unif((H, H), 2 * H)
    p["bridge_bc"] = unif((1, H), 2 * H)
    p["dec_emb"] = jax.random.normal(next(ks), (output_size, H), jnp.float32)
    p["attn_wa_h"] = unif((H, H), 3 * H)
    p["attn_wa_enc"] = unif((2 * H, H), 3 * H)
    p["attn_ba"] = unif((1, H), 3 * H)
    p["attn_v"] = unif((1, 1, H), H)
    p["attn_bv"] = unif((1, 1), H)
    p["dec_w_in"] = unif((4 * H, 4 * H), H)     # fused [W_ctx; W_emb; W_hh]
    p["dec_b"] = lstm_bias((1, 4 * H))
    p["dec_wout"] = unif((H, output_size), H)
    p["dec_bout"] = unif((1, output_size), H)
    return p


def prepare_params(p, H, output_size):
    """One-time prep: bf16 MXU weight copies + lane-dense vocab padding."""
    O = output_size
    Op = max(128, ((O + 127) // 128) * 128)
    bf = lambda x: x.astype(jnp.bfloat16)
    kp = {
        "enc_emb": p["enc_emb"], "dec_emb": p["dec_emb"],
        "enc_wih_f": bf(p["enc_wih_f"]), "enc_whh_f": bf(p["enc_whh_f"]), "enc_b_f": p["enc_b_f"],
        "enc_wih_b": bf(p["enc_wih_b"]), "enc_whh_b": bf(p["enc_whh_b"]), "enc_b_b": p["enc_b_b"],
        "bridge_wh_f": bf(p["bridge_wh_f"]), "bridge_wh_b": bf(p["bridge_wh_b"]), "bridge_bh": p["bridge_bh"],
        "bridge_wc_f": bf(p["bridge_wc_f"]), "bridge_wc_b": bf(p["bridge_wc_b"]), "bridge_bc": p["bridge_bc"],
        "attn_wa_h": bf(p["attn_wa_h"]), "attn_wa_enc": bf(p["attn_wa_enc"]), "attn_ba": p["attn_ba"],
        "attn_v": p["attn_v"], "attn_bv": p["attn_bv"],
        "dec_w_in": bf(p["dec_w_in"]), "dec_b": p["dec_b"],
        "dec_wout_pad": bf(jnp.pad(p["dec_wout"], ((0, 0), (0, Op - O)))),
        "dec_bout_pad": jnp.concatenate(
            [p["dec_bout"], jnp.full((1, Op - O), NEG_BIG, jnp.float32)], axis=1),
        "dec_emb_pad": jnp.pad(p["dec_emb"], ((0, Op - O), (0, 0))),
    }
    return kp


# ----------------------------------------------------------------------------
# Seq2Seq forward (mirrors Seq2SeqLSTM.forward)
# ----------------------------------------------------------------------------

def seq2seq_forward(kp, X, y, teacher_forcing, output_size, H):
    S, B = X.shape
    T = y.shape[0]
    Bp = max(8, ((B + 7) // 8) * 8)                       # sublane-dense batch

    # ---- encoder (single fused kernel: both directions + bridge + enc-proj) ----
    emb = kp["enc_emb"][X]                                # (S, B, H)  embedding gather (glue)
    emb = jnp.pad(emb, ((0, 0), (0, Bp - B), (0, 0)))
    enc, enc_proj, hidden, cell = encoder_forward(emb, kp)

    # pad mask in (S, B) layout; padded batch columns are force-masked to -inf so the
    # batch-axis softmax is bit-identical on real rows.
    mask = jnp.concatenate(
        [X == PAD_IDX, jnp.ones((S, Bp - B), dtype=bool)], axis=1).astype(jnp.float32)

    # ---- host-side teacher-forcing decisions (as in the torch loop) ----
    flags = [1] * T
    for t in range(1, T):
        flags[t] = 1 if random.random() < teacher_forcing else 0
    tf_flags = jnp.asarray(flags, dtype=jnp.int32)

    # ---- decoder (single fused kernel over all T-1 steps) ----
    temb = kp["dec_emb"][y]                               # (T, B, H)  gather glue
    temb = jnp.pad(temb, ((0, 0), (0, Bp - B), (0, 0)))
    logits = decoder_forward(tf_flags, hidden, cell, temb, enc, enc_proj, mask, kp)
    return logits[:, :B, :output_size]                    # strip batch + vocab padding


# ----------------------------------------------------------------------------
# main
# ----------------------------------------------------------------------------

if __name__ == "__main__":
    random.seed(0)

    INPUT_SIZE = 20     # source vocab
    OUTPUT_SIZE = 16    # target vocab
    HIDDEN = 32
    B = 2
    S_IN = 10
    T_OUT = 7
    TEACHER_FORCING = 1.0
    # TODO(synk): nn.Dropout is modelled as identity (p=0.0 / eval mode).

    key = jax.random.PRNGKey(0)
    kinit, kx, ky = jax.random.split(key, 3)

    params = init_params(kinit, INPUT_SIZE, OUTPUT_SIZE, HIDDEN)
    kparams = prepare_params(params, HIDDEN, OUTPUT_SIZE)

    # tokens drawn from [2, vocab) so the pad mask is all-False (no -inf rows)
    X = jax.random.randint(kx, (S_IN, B), 2, INPUT_SIZE, dtype=jnp.int32)
    y = jax.random.randint(ky, (T_OUT, B), 2, OUTPUT_SIZE, dtype=jnp.int32)

    outputs = seq2seq_forward(kparams, X, y, TEACHER_FORCING, OUTPUT_SIZE, HIDDEN)
    outputs = jax.block_until_ready(outputs)

    assert outputs.shape == (T_OUT, B, OUTPUT_SIZE)
    assert outputs.dtype == jnp.float32
    assert bool(jnp.all(jnp.isfinite(outputs)))
    assert bool(jnp.all(outputs[0] == 0.0))   # outputs[0] never written, as in torch

    print("KERNEL_OK")
</pallas_src>

<mosaic_0001>
module attributes {stable_mosaic.version = 11 : i64} {
  func.func @_encoder_kernel(%arg0: memref<10x8x32xf32, #tpu.memory_space<vmem>>, %arg1: memref<32x128xbf16, #tpu.memory_space<vmem>>, %arg2: memref<32x128xbf16, #tpu.memory_space<vmem>>, %arg3: memref<1x128xf32, #tpu.memory_space<vmem>>, %arg4: memref<32x128xbf16, #tpu.memory_space<vmem>>, %arg5: memref<32x128xbf16, #tpu.memory_space<vmem>>, %arg6: memref<1x128xf32, #tpu.memory_space<vmem>>, %arg7: memref<32x32xbf16, #tpu.memory_space<vmem>>, %arg8: memref<32x32xbf16, #tpu.memory_space<vmem>>, %arg9: memref<1x32xf32, #tpu.memory_space<vmem>>, %arg10: memref<32x32xbf16, #tpu.memory_space<vmem>>, %arg11: memref<32x32xbf16, #tpu.memory_space<vmem>>, %arg12: memref<1x32xf32, #tpu.memory_space<vmem>>, %arg13: memref<64x32xbf16, #tpu.memory_space<vmem>>, %arg14: memref<1x32xf32, #tpu.memory_space<vmem>>, %arg15: memref<10x8x64xf32, #tpu.memory_space<vmem>>, %arg16: memref<10x8x32xf32, #tpu.memory_space<vmem>>, %arg17: memref<8x32xf32, #tpu.memory_space<vmem>>, %arg18: memref<8x32xf32, #tpu.memory_space<vmem>>, %arg19: memref<10x8x128xbf16, #tpu.memory_space<vmem>>, %arg20: memref<10x8x128xbf16, #tpu.memory_space<vmem>>) attributes {dimension_semantics = [], scalar_prefetch = 0 : i64, scratch_operands = 2 : i64, tpu.core_type = #tpu.core_type<tc>} {
    %c0 = arith.constant 0 : index
    %c0_0 = arith.constant 0 : index
    %c0_1 = arith.constant 0 : index
    %0 = vector.load %arg0[%c0, %c0_0, %c0_1] : memref<10x8x32xf32, #tpu.memory_space<vmem>>, vector<10x8x32xf32>
    %1 = vector.shape_cast %0 : vector<10x8x32xf32> to vector<80x32xf32>
    %2 = arith.truncf %1 : vector<80x32xf32> to vector<80x32xbf16>
    %c0_2 = arith.constant 0 : index
    %c0_3 = arith.constant 0 : index
    %3 = vector.load %arg1[%c0_2, %c0_3] : memref<32x128xbf16, #tpu.memory_space<vmem>>, vector<32x128xbf16>
    %cst = arith.constant dense<0.000000e+00> : vector<80x128xf32>
    %4 = tpu.matmul %2, %3, %cst {dimension_numbers = #tpu.dot_dimension_numbers<[1], [0], [0], [1], [0, 0, 1, 1], [], []>} : vector<80x32xbf16>, vector<32x128xbf16>, vector<80x128xf32> -> vector<80x128xf32>
    %c0_4 = arith.constant 0 : index
    %c0_5 = arith.constant 0 : index
    %5 = vector.load %arg3[%c0_4, %c0_5] : memref<1x128xf32, #tpu.memory_space<vmem>>, vector<1x128xf32>
    %6 = vector.broadcast %5 : vector<1x128xf32> to vector<80x128xf32>
    %7 = arith.addf %4, %6 : vector<80x128xf32>
    %8 = vector.shape_cast %7 : vector<80x128xf32> to vector<10x8x128xf32>
    %9 = arith.truncf %8 : vector<10x8x128xf32> to vector<10x8x128xbf16>
    %c0_6 = arith.constant 0 : index
    %c0_7 = arith.constant 0 : index
    %c0_8 = arith.constant 0 : index
    %10 = vector.load %arg19[%c0_6, %c0_7, %c0_8] : memref<10x8x128xbf16, #tpu.memory_space<vmem>>, vector<10x8x128xbf16>
    tpu.vector_store %arg19[%c0_6, %c0_7, %c0_8], %9 {strides = array<i32>} : memref<10x8x128xbf16, #tpu.memory_space<vmem>>, vector<10x8x128xbf16>,
    %c0_9 = arith.constant 0 : index
    %c0_10 = arith.constant 0 : index
    %11 = vector.load %arg4[%c0_9, %c0_10] : memref<32x128xbf16, #tpu.memory_space<vmem>>, vector<32x128xbf16>
    %cst_11 = arith.constant dense<0.000000e+00> : vector<80x128xf32>
    %12 = tpu.matmul %2, %11, %cst_11 {dimension_numbers = #tpu.dot_dimension_numbers<[1], [0], [0], [1], [0, 0, 1, 1], [], []>} : vector<80x32xbf16>, vector<32x128xbf16>, vector<80x128xf32> -> vector<80x128xf32>
    %c0_12 = arith.constant 0 : index
    %c0_13 = arith.constant 0 : index
    %13 = vector.load %arg6[%c0_12, %c0_13] : memref<1x128xf32, #tpu.memory_space<vmem>>, vector<1x128xf32>
    %14 = vector.broadcast %13 : vector<1x128xf32> to vector<80x128xf32>
    %15 = arith.addf %12, %14 : vector<80x128xf32>
    %16 = vector.shape_cast %15 : vector<80x128xf32> to vector<10x8x128xf32>
    %17 = arith.truncf %16 : vector<10x8x128xf32> to vector<10x8x128xbf16>
    %c0_14 = arith.constant 0 : index
    %c0_15 = arith.constant 0 : index
    %c0_16 = arith.constant 0 : index
    %18 = vector.load %arg20[%c0_14, %c0_15, %c0_16] : memref<10x8x128xbf16, #tpu.memory_space<vmem>>, vector<10x8x128xbf16>
    tpu.vector_store %arg20[%c0_14, %c0_15, %c0_16], %17 {strides = array<i32>} : memref<10x8x128xbf16, #tpu.memory_space<vmem>>, vector<10x8x128xbf16>,
    %c0_17 = arith.constant 0 : index
    %c0_18 = arith.constant 0 : index
    %19 = vector.load %arg2[%c0_17, %c0_18] : memref<32x128xbf16, #tpu.memory_space<vmem>>, vector<32x128xbf16>
    %c0_19 = arith.constant 0 : index
    %c0_20 = arith.constant 0 : index
    %20 = vector.load %arg5[%c0_19, %c0_20] : memref<32x128xbf16, #tpu.memory_space<vmem>>, vector<32x128xbf16>
    %cst_21 = arith.constant 0.000000e+00 : f32
    %21 = vector.broadcast %cst_21 : f32 to vector<8x32xf32>
    %c0_i32 = arith.constant 0 : i32
    %22 = arith.index_cast %c0_i32 : i32 to index
    %c0_22 = arith.constant 0 : index
    %c0_23 = arith.constant 0 : index
    %23 = vector.load %arg19[%22, %c0_22, %c0_23] : memref<10x8x128xbf16, #tpu.memory_space<vmem>>, vector<1x8x128xbf16>
    %24 = vector.shape_cast %23 : vector<1x8x128xbf16> to vector<8x128xbf16>
    %25 = arith.extf %24 : vector<8x128xbf16> to vector<8x128xf32>
    %26 = arith.truncf %21 : vector<8x32xf32> to vector<8x32xbf16>
    %cst_24 = arith.constant dense<0.000000e+00> : vector<8x128xf32>
    %27 = tpu.matmul %26, %19, %cst_24 {dimension_numbers = #tpu.dot_dimension_numbers<[1], [0], [0], [1], [0, 0, 1, 1], [], []>} : vector<8x32xbf16>, vector<32x128xbf16>, vector<8x128xf32> -> vector<8x128xf32>
    %28 = arith.addf %25, %27 : vector<8x128xf32>
    %c9_i32 = arith.constant 9 : i32
    %29 = arith.subi %c9_i32, %c0_i32 : i32
    %30 = arith.index_cast %29 : i32 to index
    %c0_25 = arith.constant 0 : index
    %c0_26 = arith.constant 0 : index
    %31 = vector.load %arg20[%30, %c0_25, %c0_26] : memref<10x8x128xbf16, #tpu.memory_space<vmem>>, vector<1x8x128xbf16>
    %32 = vector.shape_cast %31 : vector<1x8x128xbf16> to vector<8x128xbf16>
    %33 = arith.extf %32 : vector<8x128xbf16> to vector<8x128xf32>
    %34 = arith.truncf %21 : vector<8x32xf32> to vector<8x32xbf16>
    %cst_27 = arith.constant dense<0.000000e+00> : vector<8x128xf32>
    %35 = tpu.matmul %34, %20, %cst_27 {dimension_numbers = #tpu.dot_dimension_numbers<[1], [0], [0], [1], [0, 0, 1, 1], [], []>} : vector<8x32xbf16>, vector<32x128xbf16>, vector<8x128xf32> -> vector<8x128xf32>
    %36 = arith.addf %33, %35 : vector<8x128xf32>
    %37 = vector.extract_strided_slice %28 {offsets = [0, 0], sizes = [8, 96], strides = [1, 1]} : vector<8x128xf32> to vector<8x96xf32>
    %38 = arith.negf %37 : vector<8x96xf32>
    %39 = math.exp %38 : vector<8x96xf32>
    %cst_28 = arith.constant 1.000000e+00 : f32
    %40 = vector.broadcast %cst_28 : f32 to vector<8x96xf32>
    %41 = arith.addf %40, %39 : vector<8x96xf32>
    %42 = arith.divf %40, %41 : vector<8x96xf32>
    %43 = vector.extract_strided_slice %42 {offsets = [0, 0], sizes = [8, 32], strides = [1, 1]} : vector<8x96xf32> to vector<8x32xf32>
    %44 = vector.extract_strided_slice %42 {offsets = [0, 32], sizes = [8, 32], strides = [1, 1]} : vector<8x96xf32> to vector<8x32xf32>
    %45 = vector.extract_strided_slice %42 {offsets = [0, 64], sizes = [8, 32], strides = [1, 1]} : vector<8x96xf32> to vector<8x32xf32>
    %46 = vector.extract_strided_slice %28 {offsets = [0, 96], sizes = [8, 32], strides = [1, 1]} : vector<8x128xf32> to vector<8x32xf32>
    %47 = math.tanh %46 : vector<8x32xf32>
    %48 = arith.mulf %44, %21 : vector<8x32xf32>
    %49 = arith.mulf %43, %47 : vector<8x32xf32>
    %50 = arith.addf %48, %49 : vector<8x32xf32>
    %51 = math.tanh %50 : vector<8x32xf32>
    %52 = arith.mulf %45, %51 : vector<8x32xf32>
    %53 = vector.extract_strided_slice %36 {offsets = [0, 0], sizes = [8, 96], strides = [1, 1]} : vector<8x128xf32> to vector<8x96xf32>
    %54 = arith.negf %53 : vector<8x96xf32>
    %55 = math.exp %54 : vector<8x96xf32>
    %cst_29 = arith.constant 1.000000e+00 : f32
    %56 = vector.broadcast %cst_29 : f32 to vector<8x96xf32>
    %57 = arith.addf %56, %55 : vector<8x96xf32>
    %58 = arith.divf %56, %57 : vector<8x96xf32>
    %59 = vector.extract_strided_slice %58 {offsets = [0, 0], sizes = [8, 32], strides = [1, 1]} : vector<8x96xf32> to vector<8x32xf32>
    %60 = vector.extract_strided_slice %58 {offsets = [0, 32], sizes = [8, 32], strides = [1, 1]} : vector<8x96xf32> to vector<8x32xf32>
    %61 = vector.extract_strided_slice %58 {offsets = [0, 64], sizes = [8, 32], strides = [1, 1]} : vector<8x96xf32> to vector<8x32xf32>
    %62 = vector.extract_strided_slice %36 {offsets = [0, 96], sizes = [8, 32], strides = [1, 1]} : vector<8x128xf32> to vector<8x32xf32>
    %63 = math.tanh %62 : vector<8x32xf32>
    %64 = arith.mulf %60, %21 : vector<8x32xf32>
    %65 = arith.mulf %59, %63 : vector<8x32xf32>
    %66 = arith.addf %64, %65 : vector<8x32xf32>
    %67 = math.tanh %66 : vector<8x32xf32>
    %68 = arith.mulf %61, %67 : vector<8x32xf32>
    %69 = arith.index_cast %c0_i32 : i32 to index
    %c0_30 = arith.constant 0 : index
    %c0_31 = arith.constant 0 : index
    %70 = vector.load %arg15[%69, %c0_30, %c0_31] : memref<10x8x64xf32, #tpu.memory_space<vmem>>, vector<1x8x32xf32>
    %71 = vector.shape_cast %70 : vector<1x8x32xf32> to vector<8x32xf32>
    %72 = vector.shape_cast %52 : vector<8x32xf32> to vector<1x8x32xf32>
    tpu.vector_store %arg15[%69, %c0_30, %c0_31], %72 {strides = array<i32>} : memref<10x8x64xf32, #tpu.memory_space<vmem>>, vector<1x8x32xf32>,
    %c9_i32_32 = arith.constant 9 : i32
    %73 = arith.subi %c9_i32_32, %c0_i32 : i32
    %74 = arith.index_cast %73 : i32 to index
    %c0_33 = arith.constant 0 : index
    %c32 = arith.constant 32 : index
    %75 = vector.load %arg15[%74, %c0_33, %c32] : memref<10x8x64xf32, #tpu.memory_space<vmem>>, vector<1x8x32xf32>
    %76 = vector.shape_cast %75 : vector<1x8x32xf32> to vector<8x32xf32>
    %77 = vector.shape_cast %68 : vector<8x32xf32> to vector<1x8x32xf32>
    tpu.vector_store %arg15[%74, %c0_33, %c32], %77 {strides = array<i32>} : memref<10x8x64xf32, #tpu.memory_space<vmem>>, vector<1x8x32xf32>,
    %c1_i32 = arith.constant 1 : i32
    %78 = arith.index_cast %c1_i32 : i32 to index
    %c0_34 = arith.constant 0 : index
    %c0_35 = arith.constant 0 : index
    %79 = vector.load %arg19[%78, %c0_34, %c0_35] : memref<10x8x128xbf16, #tpu.memory_space<vmem>>, vector<1x8x128xbf16>
    %80 = vector.shape_cast %79 : vector<1x8x128xbf16> to vector<8x128xbf16>
    %81 = arith.extf %80 : vector<8x128xbf16> to vector<8x128xf32>
    %82 = arith.truncf %52 : vector<8x32xf32> to vector<8x32xbf16>
    %cst_36 = arith.constant dense<0.000000e+00> : vector<8x128xf32>
    %83 = tpu.matmul %82, %19, %cst_36 {dimension_numbers = #tpu.dot_dimension_numbers<[1], [0], [0], [1], [0, 0, 1, 1], [], []>} : vector<8x32xbf16>, vector<32x128xbf16>, vector<8x128xf32> -> vector<8x128xf32>
    %84 = arith.addf %81, %83 : vector<8x128xf32>
    %c9_i32_37 = arith.constant 9 : i32
    %85 = arith.subi %c9_i32_37, %c1_i32 : i32
    %86 = arith.index_cast %85 : i32 to index
    %c0_38 = arith.constant 0 : index
    %c0_39 = arith.constant 0 : index
    %87 = vector.load %arg20[%86, %c0_38, %c0_39] : memref<10x8x128xbf16, #tpu.memory_space<vmem>>, vector<1x8x128xbf16>
    %88 = vector.shape_cast %87 : vector<1x8x128xbf16> to vector<8x128xbf16>
    %89 = arith.extf %88 : vector<8x128xbf16> to vector<8x128xf32>
    %90 = arith.truncf %68 : vector<8x32xf32> to vector<8x32xbf16>
    %cst_40 = arith.constant dense<0.000000e+00> : vector<8x128xf32>
    %91 = tpu.matmul %90, %20, %cst_40 {dimension_numbers = #tpu.dot_dimension_numbers<[1], [0], [0], [1], [0, 0, 1, 1], [], []>} : vector<8x32xbf16>, vector<32x128xbf16>, vector<8x128xf32> -> vector<8x128xf32>
    %92 = arith.addf %89, %91 : vector<8x128xf32>
    %93 = vector.extract_strided_slice %84 {offsets = [0, 0], sizes = [8, 96], strides = [1, 1]} : vector<8x128xf32> to vector<8x96xf32>
    %94 = arith.negf %93 : vector<8x96xf32>
    %95 = math.exp %94 : vector<8x96xf32>
    %cst_41 = arith.constant 1.000000e+00 : f32
    %96 = vector.broadcast %cst_41 : f32 to vector<8x96xf32>
    %97 = arith.addf %96, %95 : vector<8x96xf32>
    %98 = arith.divf %96, %97 : vector<8x96xf32>
    %99 = vector.extract_strided_slice %98 {offsets = [0, 0], sizes = [8, 32], strides = [1, 1]} : vector<8x96xf32> to vector<8x32xf32>
    %100 = vector.extract_strided_slice %98 {offsets = [0, 32], sizes = [8, 32], strides = [1, 1]} : vector<8x96xf32> to vector<8x32xf32>
    %101 = vector.extract_strided_slice %98 {offsets = [0, 64], sizes = [8, 32], strides = [1, 1]} : vector<8x96xf32> to vector<8x32xf32>
    %102 = vector.extract_strided_slice %84 {offsets = [0, 96], sizes = [8, 32], strides = [1, 1]} : vector<8x128xf32> to vector<8x32xf32>
    %103 = math.tanh %102 : vector<8x32xf32>
    %104 = arith.mulf %100, %50 : vector<8x32xf32>
    %105 = arith.mulf %99, %103 : vector<8x32xf32>
    %106 = arith.addf %104, %105 : vector<8x32xf32>
    %107 = math.tanh %106 : vector<8x32xf32>
    %108 = arith.mulf %101, %107 : vector<8x32xf32>
    %109 = vector.extract_strided_slice %92 {offsets = [0, 0], sizes = [8, 96], strides = [1, 1]} : vector<8x128xf32> to vector<8x96xf32>
    %110 = arith.negf %109 : vector<8x96xf32>
    %111 = math.exp %110 : vector<8x96xf32>
    %cst_42 = arith.constant 1.000000e+00 : f32
    %112 = vector.broadcast %cst_42 : f32 to vector<8x96xf32>
    %113 = arith.addf %112, %111 : vector<8x96xf32>
    %114 = arith.divf %112, %113 : vector<8x96xf32>
    %115 = vector.extract_strided_slice %114 {offsets = [0, 0], sizes = [8, 32], strides = [1, 1]} : vector<8x96xf32> to vector<8x32xf32>
    %116 = vector.extract_strided_slice %114 {offsets = [0, 32], sizes = [8, 32], strides = [1, 1]} : vector<8x96xf32> to vector<8x32xf32>
    %117 = vector.extract_strided_slice %114 {offsets = [0, 64], sizes = [8, 32], strides = [1, 1]} : vector<8x96xf32> to vector<8x32xf32>
    %118 = vector.extract_strided_slice %92 {offsets = [0, 96], sizes = [8, 32], strides = [1, 1]} : vector<8x128xf32> to vector<8x32xf32>
    %119 = math.tanh %118 : vector<8x32xf32>
    %120 = arith.mulf %116, %66 : vector<8x32xf32>
    %121 = arith.mulf %115, %119 : vector<8x32xf32>
    %122 = arith.addf %120, %121 : vector<8x32xf32>
    %123 = math.tanh %122 : vector<8x32xf32>
    %124 = arith.mulf %117, %123 : vector<8x32xf32>
    %125 = arith.index_cast %c1_i32 : i32 to index
    %c0_43 = arith.constant 0 : index
    %c0_44 = arith.constant 0 : index
    %126 = vector.load %arg15[%125, %c0_43, %c0_44] : memref<10x8x64xf32, #tpu.memory_space<vmem>>, vector<1x8x32xf32>
    %127 = vector.shape_cast %126 : vector<1x8x32xf32> to vector<8x32xf32>
    %128 = vector.shape_cast %108 : vector<8x32xf32> to vector<1x8x32xf32>
    tpu.vector_store %arg15[%125, %c0_43, %c0_44], %128 {strides = array<i32>} : memref<10x8x64xf32, #tpu.memory_space<vmem>>, vector<1x8x32xf32>,
    %c9_i32_45 = arith.constant 9 : i32
    %129 = arith.subi %c9_i32_45, %c1_i32 : i32
    %130 = arith.index_cast %129 : i32 to index
    %c0_46 = arith.constant 0 : index
    %c32_47 = arith.constant 32 : index
    %131 = vector.load %arg15[%130, %c0_46, %c32_47] : memref<10x8x64xf32, #tpu.memory_space<vmem>>, vector<1x8x32xf32>
    %132 = vector.shape_cast %131 : vector<1x8x32xf32> to vector<8x32xf32>
    %133 = vector.shape_cast %124 : vector<8x32xf32> to vector<1x8x32xf32>
    tpu.vector_store %arg15[%130, %c0_46, %c32_47], %133 {strides = array<i32>} : memref<10x8x64xf32, #tpu.memory_space<vmem>>, vector<1x8x32xf32>,
    %c2_i32 = arith.constant 2 : i32
    %134 = arith.index_cast %c2_i32 : i32 to index
    %c0_48 = arith.constant 0 : index
    %c0_49 = arith.constant 0 : index
    %135 = vector.load %arg19[%134, %c0_48, %c0_49] : memref<10x8x128xbf16, #tpu.memory_space<vmem>>, vector<1x8x128xbf16>
    %136 = vector.shape_cast %135 : vector<1x8x128xbf16> to vector<8x128xbf16>
    %137 = arith.extf %136 : vector<8x128xbf16> to vector<8x128xf32>
    %138 = arith.truncf %108 : vector<8x32xf32> to vector<8x32xbf16>
    %cst_50 = arith.constant dense<0.000000e+00> : vector<8x128xf32>
    %139 = tpu.matmul %138, %19, %cst_50 {dimension_numbers = #tpu.dot_dimension_numbers<[1], [0], [0], [1], [0, 0, 1, 1], [], []>} : vector<8x32xbf16>, vector<32x128xbf16>, vector<8x128xf32> -> vector<8x128xf32>
    %140 = arith.addf %137, %139 : vector<8x128xf32>
    %c9_i32_51 = arith.constant 9 : i32
    %141 = arith.subi %c9_i32_51, %c2_i32 : i32
    %142 = arith.index_cast %141 : i32 to index
    %c0_52 = arith.constant 0 : index
    %c0_53 = arith.constant 0 : index
    %143 = vector.load %arg20[%142, %c0_52, %c0_53] : memref<10x8x128xbf16, #tpu.memory_space<vmem>>, vector<1x8x128xbf16>
    %144 = vector.shape_cast %143 : vector<1x8x128xbf16> to vector<8x128xbf16>
    %145 = arith.extf %144 : vector<8x128xbf16> to vector<8x128xf32>
    %146 = arith.truncf %124 : vector<8x32xf32> to vector<8x32xbf16>
    %cst_54 = arith.constant dense<0.000000e+00> : vector<8x128xf32>
    %147 = tpu.matmul %146, %20, %cst_54 {dimension_numbers = #tpu.dot_dimension_numbers<[1], [0], [0], [1], [0, 0, 1, 1], [], []>} : vector<8x32xbf16>, vector<32x128xbf16>, vector<8x128xf32> -> vector<8x128xf32>
    %148 = arith.addf %145, %147 : vector<8x128xf32>
    %149 = vector.extract_strided_slice %140 {offsets = [0, 0], sizes = [8, 96], strides = [1, 1]} : vector<8x128xf32> to vector<8x96xf32>
    %150 = arith.negf %149 : vector<8x96xf32>
    %151 = math.exp %150 : vector<8x96xf32>
    %cst_55 = arith.constant 1.000000e+00 : f32
    %152 = vector.broadcast %cst_55 : f32 to vector<8x96xf32>
    %153 = arith.addf %152, %151 : vector<8x96xf32>
    %154 = arith.divf %152, %153 : vector<8x96xf32>
    %155 = vector.extract_strided_slice %154 {offsets = [0, 0], sizes = [8, 32], strides = [1, 1]} : vector<8x96xf32> to vector<8x32xf32>
    %156 = vector.extract_strided_slice %154 {offsets = [0, 32], sizes = [8, 32], strides = [1, 1]} : vector<8x96xf32> to vector<8x32xf32>
    %157 = vector.extract_strided_slice %154 {offsets = [0, 64], sizes = [8, 32], strides = [1, 1]} : vector<8x96xf32> to vector<8x32xf32>
    %158 = vector.extract_strided_slice %140 {offsets = [0, 96], sizes = [8, 32], strides = [1, 1]} : vector<8x128xf32> to vector<8x32xf32>
    %159 = math.tanh %158 : vector<8x32xf32>
    %160 = arith.mulf %156, %106 : vector<8x32xf32>
    %161 = arith.mulf %155, %159 : vector<8x32xf32>
    %162 = arith.addf %160, %161 : vector<8x32xf32>
    %163 = math.tanh %162 : vector<8x32xf32>
    %164 = arith.mulf %157, %163 : vector<8x32xf32>
    %165 = vector.extract_strided_slice %148 {offsets = [0, 0], sizes = [8, 96], strides = [1, 1]} : vector<8x128xf32> to vector<8x96xf32>
    %166 = arith.negf %165 : vector<8x96xf32>
    %167 = math.exp %166 : vector<8x96xf32>
    %cst_56 = arith.constant 1.000000e+00 : f32
    %168 = vector.broadcast %cst_56 : f32 to vector<8x96xf32>
    %169 = arith.addf %168, %167 : vector<8x96xf32>
    %170 = arith.divf %168, %169 : vector<8x96xf32>
    %171 = vector.extract_strided_slice %170 {offsets = [0, 0], sizes = [8, 32], strides = [1, 1]} : vector<8x96xf32> to vector<8x32xf32>
    %172 = vector.extract_strided_slice %170 {offsets = [0, 32], sizes = [8, 32], strides = [1, 1]} : vector<8x96xf32> to vector<8x32xf32>
    %173 = vector.extract_strided_slice %170 {offsets = [0, 64], sizes = [8, 32], strides = [1, 1]} : vector<8x96xf32> to vector<8x32xf32>
    %174 = vector.extract_strided_slice %148 {offsets = [0, 96], sizes = [8, 32], strides = [1, 1]} : vector<8x128xf32> to vector<8x32xf32>
    %175 = math.tanh %174 : vector<8x32xf32>
    %176 = arith.mulf %172, %122 : vector<8x32xf32>
    %177 = arith.mulf %171, %175 : vector<8x32xf32>
    %178 = arith.addf %176, %177 : vector<8x32xf32>
    %179 = math.tanh %178 : vector<8x32xf32>
    %180 = arith.mulf %173, %179 : vector<8x32xf32>
    %181 = arith.index_cast %c2_i32 : i32 to index
    %c0_57 = arith.constant 0 : index
    %c0_58 = arith.constant 0 : index
    %182 = vector.load %arg15[%181, %c0_57, %c0_58] : memref<10x8x64xf32, #tpu.memory_space<vmem>>, vector<1x8x32xf32>
    %183 = vector.shape_cast %182 : vector<1x8x32xf32> to vector<8x32xf32>
    %184 = vector.shape_cast %164 : vector<8x32xf32> to vector<1x8x32xf32>
    tpu.vector_store %arg15[%181, %c0_57, %c0_58], %184 {strides = array<i32>} : memref<10x8x64xf32, #tpu.memory_space<vmem>>, vector<1x8x32xf32>,
    %c9_i32_59 = arith.constant 9 : i32
    %185 = arith.subi %c9_i32_59, %c2_i32 : i32
    %186 = arith.index_cast %185 : i32 to index
    %c0_60 = arith.constant 0 : index
    %c32_61 = arith.constant 32 : index
    %187 = vector.load %arg15[%186, %c0_60, %c32_61] : memref<10x8x64xf32, #tpu.memory_space<vmem>>, vector<1x8x32xf32>
    %188 = vector.shape_cast %187 : vector<1x8x32xf32> to vector<8x32xf32>
    %189 = vector.shape_cast %180 : vector<8x32xf32> to vector<1x8x32xf32>
    tpu.vector_store %arg15[%186, %c0_60, %c32_61], %189 {strides = array<i32>} : memref<10x8x64xf32, #tpu.memory_space<vmem>>, vector<1x8x32xf32>,
    %c3_i32 = arith.constant 3 : i32
    %190 = arith.index_cast %c3_i32 : i32 to index
    %c0_62 = arith.constant 0 : index
    %c0_63 = arith.constant 0 : index
    %191 = vector.load %arg19[%190, %c0_62, %c0_63] : memref<10x8x128xbf16, #tpu.memory_space<vmem>>, vector<1x8x128xbf16>
    %192 = vector.shape_cast %191 : vector<1x8x128xbf16> to vector<8x128xbf16>
    %193 = arith.extf %192 : vector<8x128xbf16> to vector<8x128xf32>
    %194 = arith.truncf %164 : vector<8x32xf32> to vector<8x32xbf16>
    %cst_64 = arith.constant dense<0.000000e+00> : vector<8x128xf32>
    %195 = tpu.matmul %194, %19, %cst_64 {dimension_numbers = #tpu.dot_dimension_numbers<[1], [0], [0], [1], [0, 0, 1, 1], [], []>} : vector<8x32xbf16>, vector<32x128xbf16>, vector<8x128xf32> -> vector<8x128xf32>
    %196 = arith.addf %193, %195 : vector<8x128xf32>
    %c9_i32_65 = arith.constant 9 : i32
    %197 = arith.subi %c9_i32_65, %c3_i32 : i32
    %198 = arith.index_cast %197 : i32 to index
    %c0_66 = arith.constant 0 : index
    %c0_67 = arith.constant 0 : index
    %199 = vector.load %arg20[%198, %c0_66, %c0_67] : memref<10x8x128xbf16, #tpu.memory_space<vmem>>, vector<1x8x128xbf16>
    %200 = vector.shape_cast %199 : vector<1x8x128xbf16> to vector<8x128xbf16>
    %201 = arith.extf %200 : vector<8x128xbf16> to vector<8x128xf32>
    %202 = arith.truncf %180 : vector<8x32xf32> to vector<8x32xbf16>
    %cst_68 = arith.constant dense<0.000000e+00> : vector<8x128xf32>
    %203 = tpu.matmul %202, %20, %cst_68 {dimension_numbers = #tpu.dot_dimension_numbers<[1], [0], [0], [1], [0, 0, 1, 1], [], []>} : vector<8x32xbf16>, vector<32x128xbf16>, vector<8x128xf32> -> vector<8x128xf32>
    %204 = arith.addf %201, %203 : vector<8x128xf32>
    %205 = vector.extract_strided_slice %196 {offsets = [0, 0], sizes = [8, 96], strides = [1, 1]} : vector<8x128xf32> to vector<8x96xf32>
    %206 = arith.negf %205 : vector<8x96xf32>
    %207 = math.exp %206 : vector<8x96xf32>
    %cst_69 = arith.constant 1.000000e+00 : f32
    %208 = vector.broadcast %cst_69 : f32 to vector<8x96xf32>
    %209 = arith.addf %208, %207 : vector<8x96xf32>
    %210 = arith.divf %208, %209 : vector<8x96xf32>
    %211 = vector.extract_strided_slice %210 {offsets = [0, 0], sizes = [8, 32], strides = [1, 1]} : vector<8x96xf32> to vector<8x32xf32>
    %212 = vector.extract_strided_slice %210 {offsets = [0, 32], sizes = [8, 32], strides = [1, 1]} : vector<8x96xf32> to vector<8x32xf32>
    %213 = vector.extract_strided_slice %210 {offsets = [0, 64], sizes = [8, 32], strides = [1, 1]} : vector<8x96xf32> to vector<8x32xf32>
    %214 = vector.extract_strided_slice %196 {offsets = [0, 96], sizes = [8, 32], strides = [1, 1]} : vector<8x128xf32> to vector<8x32xf32>
    %215 = math.tanh %214 : vector<8x32xf32>
    %216 = arith.mulf %212, %162 : vector<8x32xf32>
    %217 = arith.mulf %211, %215 : vector<8x32xf32>
    %218 = arith.addf %216, %217 : vector<8x32xf32>
    %219 = math.tanh %218 : vector<8x32xf32>
    %220 = arith.mulf %213, %219 : vector<8x32xf32>
    %221 = vector.extract_strided_slice %204 {offsets = [0, 0], sizes = [8, 96], strides = [1, 1]} : vector<8x128xf32> to vector<8x96xf32>
    %222 = arith.negf %221 : vector<8x96xf32>
    %223 = math.exp %222 : vector<8x96xf32>
    %cst_70 = arith.constant 1.000000e+00 : f32
    %224 = vector.broadcast %cst_70 : f32 to vector<8x96xf32>
    %225 = arith.addf %224, %223 : vector<8x96xf32>
    %226 = arith.divf %224, %225 : vector<8x96xf32>
    %227 = vector.extract_strided_slice %226 {offsets = [0, 0], sizes = [8, 32], strides = [1, 1]} : vector<8x96xf32> to vector<8x32xf32>
    %228 = vector.extract_strided_slice %226 {offsets = [0, 32], sizes = [8, 32], strides = [1, 1]} : vector<8x96xf32> to vector<8x32xf32>
    %229 = vector.extract_strided_slice %226 {offsets = [0, 64], sizes = [8, 32], strides = [1, 1]} : vector<8x96xf32> to vector<8x32xf32>
    %230 = vector.extract_strided_slice %204 {offsets = [0, 96], sizes = [8, 32], strides = [1, 1]} : vector<8x128xf32> to vector<8x32xf32>
    %231 = math.tanh %230 : vector<8x32xf32>
    %232 = arith.mulf %228, %178 : vector<8x32xf32>
    %233 = arith.mulf %227, %231 : vector<8x32xf32>
    %234 = arith.addf %232, %233 : vector<8x32xf32>
    %235 = math.tanh %234 : vector<8x32xf32>
    %236 = arith.mulf %229, %235 : vector<8x32xf32>
    %237 = arith.index_cast %c3_i32 : i32 to index
    %c0_71 = arith.constant 0 : index
    %c0_72 = arith.constant 0 : index
    %238 = vector.load %arg15[%237, %c0_71, %c0_72] : memref<10x8x64xf32, #tpu.memory_space<vmem>>, vector<1x8x32xf32>
    %239 = vector.shape_cast %238 : vector<1x8x32xf32> to vector<8x32xf32>
    %240 = vector.shape_cast %220 : vector<8x32xf32> to vector<1x8x32xf32>
    tpu.vector_store %arg15[%237, %c0_71, %c0_72], %240 {strides = array<i32>} : memref<10x8x64xf32, #tpu.memory_space<vmem>>, vector<1x8x32xf32>,
    %c9_i32_73 = arith.constant 9 : i32
    %241 = arith.subi %c9_i32_73, %c3_i32 : i32
    %242 = arith.index_cast %241 : i32 to index
    %c0_74 = arith.constant 0 : index
    %c32_75 = arith.constant 32 : index
    %243 = vector.load %arg15[%242, %c0_74, %c32_75] : memref<10x8x64xf32, #tpu.memory_space<vmem>>, vector<1x8x32xf32>
    %244 = vector.shape_cast %243 : vector<1x8x32xf32> to vector<8x32xf32>
    %245 = vector.shape_cast %236 : vector<8x32xf32> to vector<1x8x32xf32>
    tpu.vector_store %arg15[%242, %c0_74, %c32_75], %245 {strides = array<i32>} : memref<10x8x64xf32, #tpu.memory_space<vmem>>, vector<1x8x32xf32>,
    %c4_i32 = arith.constant 4 : i32
    %246 = arith.index_cast %c4_i32 : i32 to index
    %c0_76 = arith.constant 0 : index
    %c0_77 = arith.constant 0 : index
    %247 = vector.load %arg19[%246, %c0_76, %c0_77] : memref<10x8x128xbf16, #tpu.memory_space<vmem>>, vector<1x8x128xbf16>
    %248 = vector.shape_cast %247 : vector<1x8x128xbf16> to vector<8x128xbf16>
    %249 = arith.extf %248 : vector<8x128xbf16> to vector<8x128xf32>
    %250 = arith.truncf %220 : vector<8x32xf32> to vector<8x32xbf16>
    %cst_78 = arith.constant dense<0.000000e+00> : vector<8x128xf32>
    %251 = tpu.matmul %250, %19, %cst_78 {dimension_numbers = #tpu.dot_dimension_numbers<[1], [0], [0], [1], [0, 0, 1, 1], [], []>} : vector<8x32xbf16>, vector<32x128xbf16>, vector<8x128xf32> -> vector<8x128xf32>
    %252 = arith.addf %249, %251 : vector<8x128xf32>
    %c9_i32_79 = arith.constant 9 : i32
    %253 = arith.subi %c9_i32_79, %c4_i32 : i32
    %254 = arith.index_cast %253 : i32 to index
    %c0_80 = arith.constant 0 : index
    %c0_81 = arith.constant 0 : index
    %255 = vector.load %arg20[%254, %c0_80, %c0_81] : memref<10x8x128xbf16, #tpu.memory_space<vmem>>, vector<1x8x128xbf16>
    %256 = vector.shape_cast %255 : vector<1x8x128xbf16> to vector<8x128xbf16>
    %257 = arith.extf %256 : vector<8x128xbf16> to vector<8x128xf32>
    %258 = arith.truncf %236 : vector<8x32xf32> to vector<8x32xbf16>
    %cst_82 = arith.constant dense<0.000000e+00> : vector<8x128xf32>
    %259 = tpu.matmul %258, %20, %cst_82 {dimension_numbers = #tpu.dot_dimension_numbers<[1], [0], [0], [1], [0, 0, 1, 1], [], []>} : vector<8x32xbf16>, vector<32x128xbf16>, vector<8x128xf32> -> vector<8x128xf32>
    %260 = arith.addf %257, %259 : vector<8x128xf32>
    %261 = vector.extract_strided_slice %252 {offsets = [0, 0], sizes = [8, 96], strides = [1, 1]} : vector<8x128xf32> to vector<8x96xf32>
    %262 = arith.negf %261 : vector<8x96xf32>
    %263 = math.exp %262 : vector<8x96xf32>
    %cst_83 = arith.constant 1.000000e+00 : f32
    %264 = vector.broadcast %cst_83 : f32 to vector<8x96xf32>
    %265 = arith.addf %264, %263 : vector<8x96xf32>
    %266 = arith.divf %264, %265 : vector<8x96xf32>
    %267 = vector.extract_strided_slice %266 {offsets = [0, 0], sizes = [8, 32], strides = [1, 1]} : vector<8x96xf32> to vector<8x32xf32>
    %268 = vector.extract_strided_slice %266 {offsets = [0, 32], sizes = [8, 32], strides = [1, 1]} : vector<8x96xf32> to vector<8x32xf32>
    %269 = vector.extract_strided_slice %266 {offsets = [0, 64], sizes = [8, 32], strides = [1, 1]} : vector<8x96xf32> to vector<8x32xf32>
    %270 = vector.extract_strided_slice %252 {offsets = [0, 96], sizes = [8, 32], strides = [1, 1]} : vector<8x128xf32> to vector<8x32xf32>
    %271 = math.tanh %270 : vector<8x32xf32>
    %272 = arith.mulf %268, %218 : vector<8x32xf32>
    %273 = arith.mulf %267, %271 : vector<8x32xf32>
    %274 = arith.addf %272, %273 : vector<8x32xf32>
    %275 = math.tanh %274 : vector<8x32xf32>
    %276 = arith.mulf %269, %275 : vector<8x32xf32>
    %277 = vector.extract_strided_slice %260 {offsets = [0, 0], sizes = [8, 96], strides = [1, 1]} : vector<8x128xf32> to vector<8x96xf32>
    %278 = arith.negf %277 : vector<8x96xf32>
    %279 = math.exp %278 : vector<8x96xf32>
    %cst_84 = arith.constant 1.000000e+00 : f32
    %280 = vector.broadcast %cst_84 : f32 to vector<8x96xf32>
    %281 = arith.addf %280, %279 : vector<8x96xf32>
    %282 = arith.divf %280, %281 : vector<8x96xf32>
    %283 = vector.extract_strided_slice %282 {offsets = [0, 0], sizes = [8, 32], strides = [1, 1]} : vector<8x96xf32> to vector<8x32xf32>
    %284 = vector.extract_strided_slice %282 {offsets = [0, 32], sizes = [8, 32], strides = [1, 1]} : vector<8x96xf32> to vector<8x32xf32>
    %285 = vector.extract_strided_slice %282 {offsets = [0, 64], sizes = [8, 32], strides = [1, 1]} : vector<8x96xf32> to vector<8x32xf32>
    %286 = vector.extract_strided_slice %260 {offsets = [0, 96], sizes = [8, 32], strides = [1, 1]} : vector<8x128xf32> to vector<8x32xf32>
    %287 = math.tanh %286 : vector<8x32xf32>
    %288 = arith.mulf %284, %234 : vector<8x32xf32>
    %289 = arith.mulf %283, %287 : vector<8x32xf32>
    %290 = arith.addf %288, %289 : vector<8x32xf32>
    %291 = math.tanh %290 : vector<8x32xf32>
    %292 = arith.mulf %285, %291 : vector<8x32xf32>
    %293 = arith.index_cast %c4_i32 : i32 to index
    %c0_85 = arith.constant 0 : index
    %c0_86 = arith.constant 0 : index
    %294 = vector.load %arg15[%293, %c0_85, %c0_86] : memref<10x8x64xf32, #tpu.memory_space<vmem>>, vector<1x8x32xf32>
    %295 = vector.shape_cast %294 : vector<1x8x32xf32> to vector<8x32xf32>
    %296 = vector.shape_cast %276 : vector<8x32xf32> to vector<1x8x32xf32>
    tpu.vector_store %arg15[%293, %c0_85, %c0_86], %296 {strides = array<i32>} : memref<10x8x64xf32, #tpu.memory_space<vmem>>, vector<1x8x32xf32>,
    %c9_i32_87 = arith.constant 9 : i32
    %297 = arith.subi %c9_i32_87, %c4_i32 : i32
    %298 = arith.index_cast %297 : i32 to index
    %c0_88 = arith.constant 0 : index
    %c32_89 = arith.constant 32 : index
    %299 = vector.load %arg15[%298, %c0_88, %c32_89] : memref<10x8x64xf32, #tpu.memory_space<vmem>>, vector<1x8x32xf32>
    %300 = vector.shape_cast %299 : vector<1x8x32xf32> to vector<8x32xf32>
    %301 = vector.shape_cast %292 : vector<8x32xf32> to vector<1x8x32xf32>
    tpu.vector_store %arg15[%298, %c0_88, %c32_89], %301 {strides = array<i32>} : memref<10x8x64xf32, #tpu.memory_space<vmem>>, vector<1x8x32xf32>,
    %c5_i32 = arith.constant 5 : i32
    %302 = arith.index_cast %c5_i32 : i32 to index
    %c0_90 = arith.constant 0 : index
    %c0_91 = arith.constant 0 : index
    %303 = vector.load %arg19[%302, %c0_90, %c0_91] : memref<10x8x128xbf16, #tpu.memory_space<vmem>>, vector<1x8x128xbf16>
    %304 = vector.shape_cast %303 : vector<1x8x128xbf16> to vector<8x128xbf16>
    %305 = arith.extf %304 : vector<8x128xbf16> to vector<8x128xf32>
    %306 = arith.truncf %276 : vector<8x32xf32> to vector<8x32xbf16>
    %cst_92 = arith.constant dense<0.000000e+00> : vector<8x128xf32>
    %307 = tpu.matmul %306, %19, %cst_92 {dimension_numbers = #tpu.dot_dimension_numbers<[1], [0], [0], [1], [0, 0, 1, 1], [], []>} : vector<8x32xbf16>, vector<32x128xbf16>, vector<8x128xf32> -> vector<8x128xf32>
    %308 = arith.addf %305, %307 : vector<8x128xf32>
    %c9_i32_93 = arith.constant 9 : i32
    %309 = arith.subi %c9_i32_93, %c5_i32 : i32
    %310 = arith.index_cast %309 : i32 to index
    %c0_94 = arith.constant 0 : index
    %c0_95 = arith.constant 0 : index
    %311 = vector.load %arg20[%310, %c0_94, %c0_95] : memref<10x8x128xbf16, #tpu.memory_space<vmem>>, vector<1x8x128xbf16>
    %312 = vector.shape_cast %311 : vector<1x8x128xbf16> to vector<8x128xbf16>
    %313 = arith.extf %312 : vector<8x128xbf16> to vector<8x128xf32>
    %314 = arith.truncf %292 : vector<8x32xf32> to vector<8x32xbf16>
    %cst_96 = arith.constant dense<0.000000e+00> : vector<8x128xf32>
    %315 = tpu.matmul %314, %20, %cst_96 {dimension_numbers = #tpu.dot_dimension_numbers<[1], [0], [0], [1], [0, 0, 1, 1], [], []>} : vector<8x32xbf16>, vector<32x128xbf16>, vector<8x128xf32> -> vector<8x128xf32>
    %316 = arith.addf %313, %315 : vector<8x128xf32>
    %317 = vector.extract_strided_slice %308 {offsets = [0, 0], sizes = [8, 96], strides = [1, 1]} : vector<8x128xf32> to vector<8x96xf32>
    %318 = arith.negf %317 : vector<8x96xf32>
    %319 = math.exp %318 : vector<8x96xf32>
    %cst_97 = arith.constant 1.000000e+00 : f32
    %320 = vector.broadcast %cst_97 : f32 to vector<8x96xf32>
    %321 = arith.addf %320, %319 : vector<8x96xf32>
    %322 = arith.divf %320, %321 : vector<8x96xf32>
    %323 = vector.extract_strided_slice %322 {offsets = [0, 0], sizes = [8, 32], strides = [1, 1]} : vector<8x96xf32> to vector<8x32xf32>
    %324 = vector.extract_strided_slice %322 {offsets = [0, 32], sizes = [8, 32], strides = [1, 1]} : vector<8x96xf32> to vector<8x32xf32>
    %325 = vector.extract_strided_slice %322 {offsets = [0, 64], sizes = [8, 32], strides = [1, 1]} : vector<8x96xf32> to vector<8x32xf32>
    %326 = vector.extract_strided_slice %308 {offsets = [0, 96], sizes = [8, 32], strides = [1, 1]} : vector<8x128xf32> to vector<8x32xf32>
    %327 = math.tanh %326 : vector<8x32xf32>
    %328 = arith.mulf %324, %274 : vector<8x32xf32>
    %329 = arith.mulf %323, %327 : vector<8x32xf32>
    %330 = arith.addf %328, %329 : vector<8x32xf32>
    %331 = math.tanh %330 : vector<8x32xf32>
    %332 = arith.mulf %325, %331 : vector<8x32xf32>
    %333 = vector.extract_strided_slice %316 {offsets = [0, 0], sizes = [8, 96], strides = [1, 1]} : vector<8x128xf32> to vector<8x96xf32>
    %334 = arith.negf %333 : vector<8x96xf32>
    %335 = math.exp %334 : vector<8x96xf32>
    %cst_98 = arith.constant 1.000000e+00 : f32
    %336 = vector.broadcast %cst_98 : f32 to vector<8x96xf32>
    %337 = arith.addf %336, %335 : vector<8x96xf32>
    %338 = arith.divf %336, %337 : vector<8x96xf32>
    %339 = vector.extract_strided_slice %338 {offsets = [0, 0], sizes = [8, 32], strides = [1, 1]} : vector<8x96xf32> to vector<8x32xf32>
    %340 = vector.extract_strided_slice %338 {offsets = [0, 32], sizes = [8, 32], strides = [1, 1]} : vector<8x96xf32> to vector<8x32xf32>
    %341 = vector.extract_strided_slice %338 {offsets = [0, 64], sizes = [8, 32], strides = [1, 1]} : vector<8x96xf32> to vector<8x32xf32>
    %342 = vector.extract_strided_slice %316 {offsets = [0, 96], sizes = [8, 32], strides = [1, 1]} : vector<8x128xf32> to vector<8x32xf32>
    %343 = math.tanh %342 : vector<8x32xf32>
    %344 = arith.mulf %340, %290 : vector<8x32xf32>
    %345 = arith.mulf %339, %343 : vector<8x32xf32>
    %346 = arith.addf %344, %345 : vector<8x32xf32>
    %347 = math.tanh %346 : vector<8x32xf32>
    %348 = arith.mulf %341, %347 : vector<8x32xf32>
    %349 = arith.index_cast %c5_i32 : i32 to index
    %c0_99 = arith.constant 0 : index
    %c0_100 = arith.constant 0 : index
    %350 = vector.load %arg15[%349, %c0_99, %c0_100] : memref<10x8x64xf32, #tpu.memory_space<vmem>>, vector<1x8x32xf32>
    %351 = vector.shape_cast %350 : vector<1x8x32xf32> to vector<8x32xf32>
    %352 = vector.shape_cast %332 : vector<8x32xf32> to vector<1x8x32xf32>
    tpu.vector_store %arg15[%349, %c0_99, %c0_100], %352 {strides = array<i32>} : memref<10x8x64xf32, #tpu.memory_space<vmem>>, vector<1x8x32xf32>,
    %c9_i32_101 = arith.constant 9 : i32
    %353 = arith.subi %c9_i32_101, %c5_i32 : i32
    %354 = arith.index_cast %353 : i32 to index
    %c0_102 = arith.constant 0 : index
    %c32_103 = arith.constant 32 : index
    %355 = vector.load %arg15[%354, %c0_102, %c32_103] : memref<10x8x64xf32, #tpu.memory_space<vmem>>, vector<1x8x32xf32>
    %356 = vector.shape_cast %355 : vector<1x8x32xf32> to vector<8x32xf32>
    %357 = vector.shape_cast %348 : vector<8x32xf32> to vector<1x8x32xf32>
    tpu.vector_store %arg15[%354, %c0_102, %c32_103], %357 {strides = array<i32>} : memref<10x8x64xf32, #tpu.memory_space<vmem>>, vector<1x8x32xf32>,
    %c6_i32 = arith.constant 6 : i32
    %358 = arith.index_cast %c6_i32 : i32 to index
    %c0_104 = arith.constant 0 : index
    %c0_105 = arith.constant 0 : index
    %359 = vector.load %arg19[%358, %c0_104, %c0_105] : memref<10x8x128xbf16, #tpu.memory_space<vmem>>, vector<1x8x128xbf16>
    %360 = vector.shape_cast %359 : vector<1x8x128xbf16> to vector<8x128xbf16>
    %361 = arith.extf %360 : vector<8x128xbf16> to vector<8x128xf32>
    %362 = arith.truncf %332 : vector<8x32xf32> to vector<8x32xbf16>
    %cst_106 = arith.constant dense<0.000000e+00> : vector<8x128xf32>
    %363 = tpu.matmul %362, %19, %cst_106 {dimension_numbers = #tpu.dot_dimension_numbers<[1], [0], [0], [1], [0, 0, 1, 1], [], []>} : vector<8x32xbf16>, vector<32x128xbf16>, vector<8x128xf32> -> vector<8x128xf32>
    %364 = arith.addf %361, %363 : vector<8x128xf32>
    %c9_i32_107 = arith.constant 9 : i32
    %365 = arith.subi %c9_i32_107, %c6_i32 : i32
    %366 = arith.index_cast %365 : i32 to index
    %c0_108 = arith.constant 0 : index
    %c0_109 = arith.constant 0 : index
    %367 = vector.load %arg20[%366, %c0_108, %c0_109] : memref<10x8x128xbf16, #tpu.memory_space<vmem>>, vector<1x8x128xbf16>
    %368 = vector.shape_cast %367 : vector<1x8x128xbf16> to vector<8x128xbf16>
    %369 = arith.extf %368 : vector<8x128xbf16> to vector<8x128xf32>
    %370 = arith.truncf %348 : vector<8x32xf32> to vector<8x32xbf16>
    %cst_110 = arith.constant dense<0.000000e+00> : vector<8x128xf32>
    %371 = tpu.matmul %370, %20, %cst_110 {dimension_numbers = #tpu.dot_dimension_numbers<[1], [0], [0], [1], [0, 0, 1, 1], [], []>} : vector<8x32xbf16>, vector<32x128xbf16>, vector<8x128xf32> -> vector<8x128xf32>
    %372 = arith.addf %369, %371 : vector<8x128xf32>
    %373 = vector.extract_strided_slice %364 {offsets = [0, 0], sizes = [8, 96], strides = [1, 1]} : vector<8x128xf32> to vector<8x96xf32>
    %374 = arith.negf %373 : vector<8x96xf32>
    %375 = math.exp %374 : vector<8x96xf32>
    %cst_111 = arith.constant 1.000000e+00 : f32
    %376 = vector.broadcast %cst_111 : f32 to vector<8x96xf32>
    %377 = arith.addf %376, %375 : vector<8x96xf32>
    %378 = arith.divf %376, %377 : vector<8x96xf32>
    %379 = vector.extract_strided_slice %378 {offsets = [0, 0], sizes = [8, 32], strides = [1, 1]} : vector<8x96xf32> to vector<8x32xf32>
    %380 = vector.extract_strided_slice %378 {offsets = [0, 32], sizes = [8, 32], strides = [1, 1]} : vector<8x96xf32> to vector<8x32xf32>
    %381 = vector.extract_strided_slice %378 {offsets = [0, 64], sizes = [8, 32], strides = [1, 1]} : vector<8x96xf32> to vector<8x32xf32>
    %382 = vector.extract_strided_slice %364 {offsets = [0, 96], sizes = [8, 32], strides = [1, 1]} : vector<8x128xf32> to vector<8x32xf32>
    %383 = math.tanh %382 : vector<8x32xf32>
    %384 = arith.mulf %380, %330 : vector<8x32xf32>
    %385 = arith.mulf %379, %383 : vector<8x32xf32>
    %386 = arith.addf %384, %385 : vector<8x32xf32>
    %387 = math.tanh %386 : vector<8x32xf32>
    %388 = arith.mulf %381, %387 : vector<8x32xf32>
    %389 = vector.extract_strided_slice %372 {offsets = [0, 0], sizes = [8, 96], strides = [1, 1]} : vector<8x128xf32> to vector<8x96xf32>
    %390 = arith.negf %389 : vector<8x96xf32>
    %391 = math.exp %390 : vector<8x96xf32>
    %cst_112 = arith.constant 1.000000e+00 : f32
    %392 = vector.broadcast %cst_112 : f32 to vector<8x96xf32>
    %393 = arith.addf %392, %391 : vector<8x96xf32>
    %394 = arith.divf %392, %393 : vector<8x96xf32>
    %395 = vector.extract_strided_slice %394 {offsets = [0, 0], sizes = [8, 32], strides = [1, 1]} : vector<8x96xf32> to vector<8x32xf32>
    %396 = vector.extract_strided_slice %394 {offsets = [0, 32], sizes = [8, 32], strides = [1, 1]} : vector<8x96xf32> to vector<8x32xf32>
    %397 = vector.extract_strided_slice %394 {offsets = [0, 64], sizes = [8, 32], strides = [1, 1]} : vector<8x96xf32> to vector<8x32xf32>
    %398 = vector.extract_strided_slice %372 {offsets = [0, 96], sizes = [8, 32], strides = [1, 1]} : vector<8x128xf32> to vector<8x32xf32>
    %399 = math.tanh %398 : vector<8x32xf32>
    %400 = arith.mulf %396, %346 : vector<8x32xf32>
    %401 = arith.mulf %395, %399 : vector<8x32xf32>
    %402 = arith.addf %400, %401 : vector<8x32xf32>
    %403 = math.tanh %402 : vector<8x32xf32>
    %404 = arith.mulf %397, %403 : vector<8x32xf32>
    %405 = arith.index_cast %c6_i32 : i32 to index
    %c0_113 = arith.constant 0 : index
    %c0_114 = arith.constant 0 : index
    %406 = vector.load %arg15[%405, %c0_113, %c0_114] : memref<10x8x64xf32, #tpu.memory_space<vmem>>, vector<1x8x32xf32>
    %407 = vector.shape_cast %406 : vector<1x8x32xf32> to vector<8x32xf32>
    %408 = vector.shape_cast %388 : vector<8x32xf32> to vector<1x8x32xf32>
    tpu.vector_store %arg15[%405, %c0_113, %c0_114], %408 {strides = array<i32>} : memref<10x8x64xf32, #tpu.memory_space<vmem>>, vector<1x8x32xf32>,
    %c9_i32_115 = arith.constant 9 : i32
    %409 = arith.subi %c9_i32_115, %c6_i32 : i32
    %410 = arith.index_cast %409 : i32 to index
    %c0_116 = arith.constant 0 : index
    %c32_117 = arith.constant 32 : index
    %411 = vector.load %arg15[%410, %c0_116, %c32_117] : memref<10x8x64xf32, #tpu.memory_space<vmem>>, vector<1x8x32xf32>
    %412 = vector.shape_cast %411 : vector<1x8x32xf32> to vector<8x32xf32>
    %413 = vector.shape_cast %404 : vector<8x32xf32> to vector<1x8x32xf32>
    tpu.vector_store %arg15[%410, %c0_116, %c32_117], %413 {strides = array<i32>} : memref<10x8x64xf32, #tpu.memory_space<vmem>>, vector<1x8x32xf32>,
    %c7_i32 = arith.constant 7 : i32
    %414 = arith.index_cast %c7_i32 : i32 to index
    %c0_118 = arith.constant 0 : index
    %c0_119 = arith.constant 0 : index
    %415 = vector.load %arg19[%414, %c0_118, %c0_119] : memref<10x8x128xbf16, #tpu.memory_space<vmem>>, vector<1x8x128xbf16>
    %416 = vector.shape_cast %415 : vector<1x8x128xbf16> to vector<8x128xbf16>
    %417 = arith.extf %416 : vector<8x128xbf16> to vector<8x128xf32>
    %418 = arith.truncf %388 : vector<8x32xf32> to vector<8x32xbf16>
    %cst_120 = arith.constant dense<0.000000e+00> : vector<8x128xf32>
    %419 = tpu.matmul %418, %19, %cst_120 {dimension_numbers = #tpu.dot_dimension_numbers<[1], [0], [0], [1], [0, 0, 1, 1], [], []>} : vector<8x32xbf16>, vector<32x128xbf16>, vector<8x128xf32> -> vector<8x128xf32>
    %420 = arith.addf %417, %419 : vector<8x128xf32>
    %c9_i32_121 = arith.constant 9 : i32
    %421 = arith.subi %c9_i32_121, %c7_i32 : i32
    %422 = arith.index_cast %421 : i32 to index
    %c0_122 = arith.constant 0 : index
    %c0_123 = arith.constant 0 : index
    %423 = vector.load %arg20[%422, %c0_122, %c0_123] : memref<10x8x128xbf16, #tpu.memory_space<vmem>>, vector<1x8x128xbf16>
    %424 = vector.shape_cast %423 : vector<1x8x128xbf16> to vector<8x128xbf16>
    %425 = arith.extf %424 : vector<8x128xbf16> to vector<8x128xf32>
    %426 = arith.truncf %404 : vector<8x32xf32> to vector<8x32xbf16>
    %cst_124 = arith.constant dense<0.000000e+00> : vector<8x128xf32>
    %427 = tpu.matmul %426, %20, %cst_124 {dimension_numbers = #tpu.dot_dimension_numbers<[1], [0], [0], [1], [0, 0, 1, 1], [], []>} : vector<8x32xbf16>, vector<32x128xbf16>, vector<8x128xf32> -> vector<8x128xf32>
    %428 = arith.addf %425, %427 : vector<8x128xf32>
    %429 = vector.extract_strided_slice %420 {offsets = [0, 0], sizes = [8, 96], strides = [1, 1]} : vector<8x128xf32> to vector<8x96xf32>
    %430 = arith.negf %429 : vector<8x96xf32>
    %431 = math.exp %430 : vector<8x96xf32>
    %cst_125 = arith.constant 1.000000e+00 : f32
    %432 = vector.broadcast %cst_125 : f32 to vector<8x96xf32>
    %433 = arith.addf %432, %431 : vector<8x96xf32>
    %434 = arith.divf %432, %433 : vector<8x96xf32>
    %435 = vector.extract_strided_slice %434 {offsets = [0, 0], sizes = [8, 32], strides = [1, 1]} : vector<8x96xf32> to vector<8x32xf32>
    %436 = vector.extract_strided_slice %434 {offsets = [0, 32], sizes = [8, 32], strides = [1, 1]} : vector<8x96xf32> to vector<8x32xf32>
    %437 = vector.extract_strided_slice %434 {offsets = [0, 64], sizes = [8, 32], strides = [1, 1]} : vector<8x96xf32> to vector<8x32xf32>
    %438 = vector.extract_strided_slice %420 {offsets = [0, 96], sizes = [8, 32], strides = [1, 1]} : vector<8x128xf32> to vector<8x32xf32>
    %439 = math.tanh %438 : vector<8x32xf32>
    %440 = arith.mulf %436, %386 : vector<8x32xf32>
    %441 = arith.mulf %435, %439 : vector<8x32xf32>
    %442 = arith.addf %440, %441 : vector<8x32xf32>
    %443 = math.tanh %442 : vector<8x32xf32>
    %444 = arith.mulf %437, %443 : vector<8x32xf32>
    %445 = vector.extract_strided_slice %428 {offsets = [0, 0], sizes = [8, 96], strides = [1, 1]} : vector<8x128xf32> to vector<8x96xf32>
    %446 = arith.negf %445 : vector<8x96xf32>
    %447 = math.exp %446 : vector<8x96xf32>
    %cst_126 = arith.constant 1.000000e+00 : f32
    %448 = vector.broadcast %cst_126 : f32 to vector<8x96xf32>
    %449 = arith.addf %448, %447 : vector<8x96xf32>
    %450 = arith.divf %448, %449 : vector<8x96xf32>
    %451 = vector.extract_strided_slice %450 {offsets = [0, 0], sizes = [8, 32], strides = [1, 1]} : vector<8x96xf32> to vector<8x32xf32>
    %452 = vector.extract_strided_slice %450 {offsets = [0, 32], sizes = [8, 32], strides = [1, 1]} : vector<8x96xf32> to vector<8x32xf32>
    %453 = vector.extract_strided_slice %450 {offsets = [0, 64], sizes = [8, 32], strides = [1, 1]} : vector<8x96xf32> to vector<8x32xf32>
    %454 = vector.extract_strided_slice %428 {offsets = [0, 96], sizes = [8, 32], strides = [1, 1]} : vector<8x128xf32> to vector<8x32xf32>
    %455 = math.tanh %454 : vector<8x32xf32>
    %456 = arith.mulf %452, %402 : vector<8x32xf32>
    %457 = arith.mulf %451, %455 : vector<8x32xf32>
    %458 = arith.addf %456, %457 : vector<8x32xf32>
    %459 = math.tanh %458 : vector<8x32xf32>
    %460 = arith.mulf %453, %459 : vector<8x32xf32>
    %461 = arith.index_cast %c7_i32 : i32 to index
    %c0_127 = arith.constant 0 : index
    %c0_128 = arith.constant 0 : index
    %462 = vector.load %arg15[%461, %c0_127, %c0_128] : memref<10x8x64xf32, #tpu.memory_space<vmem>>, vector<1x8x32xf32>
    %463 = vector.shape_cast %462 : vector<1x8x32xf32> to vector<8x32xf32>
    %464 = vector.shape_cast %444 : vector<8x32xf32> to vector<1x8x32xf32>
    tpu.vector_store %arg15[%461, %c0_127, %c0_128], %464 {strides = array<i32>} : memref<10x8x64xf32, #tpu.memory_space<vmem>>, vector<1x8x32xf32>,
    %c9_i32_129 = arith.constant 9 : i32
    %465 = arith.subi %c9_i32_129, %c7_i32 : i32
    %466 = arith.index_cast %465 : i32 to index
    %c0_130 = arith.constant 0 : index
    %c32_131 = arith.constant 32 : index
    %467 = vector.load %arg15[%466, %c0_130, %c32_131] : memref<10x8x64xf32, #tpu.memory_space<vmem>>, vector<1x8x32xf32>
    %468 = vector.shape_cast %467 : vector<1x8x32xf32> to vector<8x32xf32>
    %469 = vector.shape_cast %460 : vector<8x32xf32> to vector<1x8x32xf32>
    tpu.vector_store %arg15[%466, %c0_130, %c32_131], %469 {strides = array<i32>} : memref<10x8x64xf32, #tpu.memory_space<vmem>>, vector<1x8x32xf32>,
    %c8_i32 = arith.constant 8 : i32
    %470 = arith.index_cast %c8_i32 : i32 to index
    %c0_132 = arith.constant 0 : index
    %c0_133 = arith.constant 0 : index
    %471 = vector.load %arg19[%470, %c0_132, %c0_133] : memref<10x8x128xbf16, #tpu.memory_space<vmem>>, vector<1x8x128xbf16>
    %472 = vector.shape_cast %471 : vector<1x8x128xbf16> to vector<8x128xbf16>
    %473 = arith.extf %472 : vector<8x128xbf16> to vector<8x128xf32>
    %474 = arith.truncf %444 : vector<8x32xf32> to vector<8x32xbf16>
    %cst_134 = arith.constant dense<0.000000e+00> : vector<8x128xf32>
    %475 = tpu.matmul %474, %19, %cst_134 {dimension_numbers = #tpu.dot_dimension_numbers<[1], [0], [0], [1], [0, 0, 1, 1], [], []>} : vector<8x32xbf16>, vector<32x128xbf16>, vector<8x128xf32> -> vector<8x128xf32>
    %476 = arith.addf %473, %475 : vector<8x128xf32>
    %c9_i32_135 = arith.constant 9 : i32
    %477 = arith.subi %c9_i32_135, %c8_i32 : i32
    %478 = arith.index_cast %477 : i32 to index
    %c0_136 = arith.constant 0 : index
    %c0_137 = arith.constant 0 : index
    %479 = vector.load %arg20[%478, %c0_136, %c0_137] : memref<10x8x128xbf16, #tpu.memory_space<vmem>>, vector<1x8x128xbf16>
    %480 = vector.shape_cast %479 : vector<1x8x128xbf16> to vector<8x128xbf16>
    %481 = arith.extf %480 : vector<8x128xbf16> to vector<8x128xf32>
    %482 = arith.truncf %460 : vector<8x32xf32> to vector<8x32xbf16>
    %cst_138 = arith.constant dense<0.000000e+00> : vector<8x128xf32>
    %483 = tpu.matmul %482, %20, %cst_138 {dimension_numbers = #tpu.dot_dimension_numbers<[1], [0], [0], [1], [0, 0, 1, 1], [], []>} : vector<8x32xbf16>, vector<32x128xbf16>, vector<8x128xf32> -> vector<8x128xf32>
    %484 = arith.addf %481, %483 : vector<8x128xf32>
    %485 = vector.extract_strided_slice %476 {offsets = [0, 0], sizes = [8, 96], strides = [1, 1]} : vector<8x128xf32> to vector<8x96xf32>
    %486 = arith.negf %485 : vector<8x96xf32>
    %487 = math.exp %486 : vector<8x96xf32>
    %cst_139 = arith.constant 1.000000e+00 : f32
    %488 = vector.broadcast %cst_139 : f32 to vector<8x96xf32>
    %489 = arith.addf %488, %487 : vector<8x96xf32>
    %490 = arith.divf %488, %489 : vector<8x96xf32>
    %491 = vector.extract_strided_slice %490 {offsets = [0, 0], sizes = [8, 32], strides = [1, 1]} : vector<8x96xf32> to vector<8x32xf32>
    %492 = vector.extract_strided_slice %490 {offsets = [0, 32], sizes = [8, 32], strides = [1, 1]} : vector<8x96xf32> to vector<8x32xf32>
    %493 = vector.extract_strided_slice %490 {offsets = [0, 64], sizes = [8, 32], strides = [1, 1]} : vector<8x96xf32> to vector<8x32xf32>
    %494 = vector.extract_strided_slice %476 {offsets = [0, 96], sizes = [8, 32], strides = [1, 1]} : vector<8x128xf32> to vector<8x32xf32>
    %495 = math.tanh %494 : vector<8x32xf32>
    %496 = arith.mulf %492, %442 : vector<8x32xf32>
    %497 = arith.mulf %491, %495 : vector<8x32xf32>
    %498 = arith.addf %496, %497 : vector<8x32xf32>
    %499 = math.tanh %498 : vector<8x32xf32>
    %500 = arith.mulf %493, %499 : vector<8x32xf32>
    %501 = vector.extract_strided_slice %484 {offsets = [0, 0], sizes = [8, 96], strides = [1, 1]} : vector<8x128xf32> to vector<8x96xf32>
    %502 = arith.negf %501 : vector<8x96xf32>
    %503 = math.exp %502 : vector<8x96xf32>
    %cst_140 = arith.constant 1.000000e+00 : f32
    %504 = vector.broadcast %cst_140 : f32 to vector<8x96xf32>
    %505 = arith.addf %504, %503 : vector<8x96xf32>
    %506 = arith.divf %504, %505 : vector<8x96xf32>
    %507 = vector.extract_strided_slice %506 {offsets = [0, 0], sizes = [8, 32], strides = [1, 1]} : vector<8x96xf32> to vector<8x32xf32>
    %508 = vector.extract_strided_slice %506 {offsets = [0, 32], sizes = [8, 32], strides = [1, 1]} : vector<8x96xf32> to vector<8x32xf32>
    %509 = vector.extract_strided_slice %506 {offsets = [0, 64], sizes = [8, 32], strides = [1, 1]} : vector<8x96xf32> to vector<8x32xf32>
    %510 = vector.extract_strided_slice %484 {offsets = [0, 96], sizes = [8, 32], strides = [1, 1]} : vector<8x128xf32> to vector<8x32xf32>
    %511 = math.tanh %510 : vector<8x32xf32>
    %512 = arith.mulf %508, %458 : vector<8x32xf32>
    %513 = arith.mulf %507, %511 : vector<8x32xf32>
    %514 = arith.addf %512, %513 : vector<8x32xf32>
    %515 = math.tanh %514 : vector<8x32xf32>
    %516 = arith.mulf %509, %515 : vector<8x32xf32>
    %517 = arith.index_cast %c8_i32 : i32 to index
    %c0_141 = arith.constant 0 : index
    %c0_142 = arith.constant 0 : index
    %518 = vector.load %arg15[%517, %c0_141, %c0_142] : memref<10x8x64xf32, #tpu.memory_space<vmem>>, vector<1x8x32xf32>
    %519 = vector.shape_cast %518 : vector<1x8x32xf32> to vector<8x32xf32>
    %520 = vector.shape_cast %500 : vector<8x32xf32> to vector<1x8x32xf32>
    tpu.vector_store %arg15[%517, %c0_141, %c0_142], %520 {strides = array<i32>} : memref<10x8x64xf32, #tpu.memory_space<vmem>>, vector<1x8x32xf32>,
    %c9_i32_143 = arith.constant 9 : i32
    %521 = arith.subi %c9_i32_143, %c8_i32 : i32
    %522 = arith.index_cast %521 : i32 to index
    %c0_144 = arith.constant 0 : index
    %c32_145 = arith.constant 32 : index
    %523 = vector.load %arg15[%522, %c0_144, %c32_145] : memref<10x8x64xf32, #tpu.memory_space<vmem>>, vector<1x8x32xf32>
    %524 = vector.shape_cast %523 : vector<1x8x32xf32> to vector<8x32xf32>
    %525 = vector.shape_cast %516 : vector<8x32xf32> to vector<1x8x32xf32>
    tpu.vector_store %arg15[%522, %c0_144, %c32_145], %525 {strides = array<i32>} : memref<10x8x64xf32, #tpu.memory_space<vmem>>, vector<1x8x32xf32>,
    %c9_i32_146 = arith.constant 9 : i32
    %526 = arith.index_cast %c9_i32_146 : i32 to index
    %c0_147 = arith.constant 0 : index
    %c0_148 = arith.constant 0 : index
    %527 = vector.load %arg19[%526, %c0_147, %c0_148] : memref<10x8x128xbf16, #tpu.memory_space<vmem>>, vector<1x8x128xbf16>
    %528 = vector.shape_cast %527 : vector<1x8x128xbf16> to vector<8x128xbf16>
    %529 = arith.extf %528 : vector<8x128xbf16> to vector<8x128xf32>
    %530 = arith.truncf %500 : vector<8x32xf32> to vector<8x32xbf16>
    %cst_149 = arith.constant dense<0.000000e+00> : vector<8x128xf32>
    %531 = tpu.matmul %530, %19, %cst_149 {dimension_numbers = #tpu.dot_dimension_numbers<[1], [0], [0], [1], [0, 0, 1, 1], [], []>} : vector<8x32xbf16>, vector<32x128xbf16>, vector<8x128xf32> -> vector<8x128xf32>
    %532 = arith.addf %529, %531 : vector<8x128xf32>
    %c9_i32_150 = arith.constant 9 : i32
    %533 = arith.subi %c9_i32_150, %c9_i32_146 : i32
    %534 = arith.index_cast %533 : i32 to index
    %c0_151 = arith.constant 0 : index
    %c0_152 = arith.constant 0 : index
    %535 = vector.load %arg20[%534, %c0_151, %c0_152] : memref<10x8x128xbf16, #tpu.memory_space<vmem>>, vector<1x8x128xbf16>
    %536 = vector.shape_cast %535 : vector<1x8x128xbf16> to vector<8x128xbf16>
    %537 = arith.extf %536 : vector<8x128xbf16> to vector<8x128xf32>
    %538 = arith.truncf %516 : vector<8x32xf32> to vector<8x32xbf16>
    %cst_153 = arith.constant dense<0.000000e+00> : vector<8x128xf32>
    %539 = tpu.matmul %538, %20, %cst_153 {dimension_numbers = #tpu.dot_dimension_numbers<[1], [0], [0], [1], [0, 0, 1, 1], [], []>} : vector<8x32xbf16>, vector<32x128xbf16>, vector<8x128xf32> -> vector<8x128xf32>
    %540 = arith.addf %537, %539 : vector<8x128xf32>
    %541 = vector.extract_strided_slice %532 {offsets = [0, 0], sizes = [8, 96], strides = [1, 1]} : vector<8x128xf32> to vector<8x96xf32>
    %542 = arith.negf %541 : vector<8x96xf32>
    %543 = math.exp %542 : vector<8x96xf32>
    %cst_154 = arith.constant 1.000000e+00 : f32
    %544 = vector.broadcast %cst_154 : f32 to vector<8x96xf32>
    %545 = arith.addf %544, %543 : vector<8x96xf32>
    %546 = arith.divf %544, %545 : vector<8x96xf32>
    %547 = vector.extract_strided_slice %546 {offsets = [0, 0], sizes = [8, 32], strides = [1, 1]} : vector<8x96xf32> to vector<8x32xf32>
    %548 = vector.extract_strided_slice %546 {offsets = [0, 32], sizes = [8, 32], strides = [1, 1]} : vector<8x96xf32> to vector<8x32xf32>
    %549 = vector.extract_strided_slice %546 {offsets = [0, 64], sizes = [8, 32], strides = [1, 1]} : vector<8x96xf32> to vector<8x32xf32>
    %550 = vector.extract_strided_slice %532 {offsets = [0, 96], sizes = [8, 32], strides = [1, 1]} : vector<8x128xf32> to vector<8x32xf32>
    %551 = math.tanh %550 : vector<8x32xf32>
    %552 = arith.mulf %548, %498 : vector<8x32xf32>
    %553 = arith.mulf %547, %551 : vector<8x32xf32>
    %554 = arith.addf %552, %553 : vector<8x32xf32>
    %555 = math.tanh %554 : vector<8x32xf32>
    %556 = arith.mulf %549, %555 : vector<8x32xf32>
    %557 = vector.extract_strided_slice %540 {offsets = [0, 0], sizes = [8, 96], strides = [1, 1]} : vector<8x128xf32> to vector<8x96xf32>
    %558 = arith.negf %557 : vector<8x96xf32>
    %559 = math.exp %558 : vector<8x96xf32>
    %cst_155 = arith.constant 1.000000e+00 : f32
    %560 = vector.broadcast %cst_155 : f32 to vector<8x96xf32>
    %561 = arith.addf %560, %559 : vector<8x96xf32>
    %562 = arith.divf %560, %561 : vector<8x96xf32>
    %563 = vector.extract_strided_slice %562 {offsets = [0, 0], sizes = [8, 32], strides = [1, 1]} : vector<8x96xf32> to vector<8x32xf32>
    %564 = vector.extract_strided_slice %562 {offsets = [0, 32], sizes = [8, 32], strides = [1, 1]} : vector<8x96xf32> to vector<8x32xf32>
    %565 = vector.extract_strided_slice %562 {offsets = [0, 64], sizes = [8, 32], strides = [1, 1]} : vector<8x96xf32> to vector<8x32xf32>
    %566 = vector.extract_strided_slice %540 {offsets = [0, 96], sizes = [8, 32], strides = [1, 1]} : vector<8x128xf32> to vector<8x32xf32>
    %567 = math.tanh %566 : vector<8x32xf32>
    %568 = arith.mulf %564, %514 : vector<8x32xf32>
    %569 = arith.mulf %563, %567 : vector<8x32xf32>
    %570 = arith.addf %568, %569 : vector<8x32xf32>
    %571 = math.tanh %570 : vector<8x32xf32>
    %572 = arith.mulf %565, %571 : vector<8x32xf32>
    %573 = arith.index_cast %c9_i32_146 : i32 to index
    %c0_156 = arith.constant 0 : index
    %c0_157 = arith.constant 0 : index
    %574 = vector.load %arg15[%573, %c0_156, %c0_157] : memref<10x8x64xf32, #tpu.memory_space<vmem>>, vector<1x8x32xf32>
    %575 = vector.shape_cast %574 : vector<1x8x32xf32> to vector<8x32xf32>
    %576 = vector.shape_cast %556 : vector<8x32xf32> to vector<1x8x32xf32>
    tpu.vector_store %arg15[%573, %c0_156, %c0_157], %576 {strides = array<i32>} : memref<10x8x64xf32, #tpu.memory_space<vmem>>, vector<1x8x32xf32>,
    %c9_i32_158 = arith.constant 9 : i32
    %577 = arith.subi %c9_i32_158, %c9_i32_146 : i32
    %578 = arith.index_cast %577 : i32 to index
    %c0_159 = arith.constant 0 : index
    %c32_160 = arith.constant 32 : index
    %579 = vector.load %arg15[%578, %c0_159, %c32_160] : memref<10x8x64xf32, #tpu.memory_space<vmem>>, vector<1x8x32xf32>
    %580 = vector.shape_cast %579 : vector<1x8x32xf32> to vector<8x32xf32>
    %581 = vector.shape_cast %572 : vector<8x32xf32> to vector<1x8x32xf32>
    tpu.vector_store %arg15[%578, %c0_159, %c32_160], %581 {strides = array<i32>} : memref<10x8x64xf32, #tpu.memory_space<vmem>>, vector<1x8x32xf32>,
    %c10_i32 = arith.constant 10 : i32
    %582 = arith.truncf %556 : vector<8x32xf32> to vector<8x32xbf16>
    %c0_161 = arith.constant 0 : index
    %c0_162 = arith.constant 0 : index
    %583 = vector.load %arg7[%c0_161, %c0_162] : memref<32x32xbf16, #tpu.memory_space<vmem>>, vector<32x32xbf16>
    %cst_163 = arith.constant dense<0.000000e+00> : vector<8x32xf32>
    %584 = tpu.matmul %582, %583, %cst_163 {dimension_numbers = #tpu.dot_dimension_numbers<[1], [0], [0], [1], [0, 0, 1, 1], [], []>} : vector<8x32xbf16>, vector<32x32xbf16>, vector<8x32xf32> -> vector<8x32xf32>
    %585 = arith.truncf %572 : vector<8x32xf32> to vector<8x32xbf16>
    %c0_164 = arith.constant 0 : index
    %c0_165 = arith.constant 0 : index
    %586 = vector.load %arg8[%c0_164, %c0_165] : memref<32x32xbf16, #tpu.memory_space<vmem>>, vector<32x32xbf16>
    %cst_166 = arith.constant dense<0.000000e+00> : vector<8x32xf32>
    %587 = tpu.matmul %585, %586, %cst_166 {dimension_numbers = #tpu.dot_dimension_numbers<[1], [0], [0], [1], [0, 0, 1, 1], [], []>} : vector<8x32xbf16>, vector<32x32xbf16>, vector<8x32xf32> -> vector<8x32xf32>
    %588 = arith.addf %584, %587 : vector<8x32xf32>
    %c0_167 = arith.constant 0 : index
    %c0_168 = arith.constant 0 : index
    %589 = vector.load %arg9[%c0_167, %c0_168] : memref<1x32xf32, #tpu.memory_space<vmem>>, vector<1x32xf32>
    %590 = vector.broadcast %589 : vector<1x32xf32> to vector<8x32xf32>
    %591 = arith.addf %588, %590 : vector<8x32xf32>
    %c0_169 = arith.constant 0 : index
    %c0_170 = arith.constant 0 : index
    %592 = vector.load %arg17[%c0_169, %c0_170] : memref<8x32xf32, #tpu.memory_space<vmem>>, vector<8x32xf32>
    tpu.vector_store %arg17[%c0_169, %c0_170], %591 {strides = array<i32>} : memref<8x32xf32, #tpu.memory_space<vmem>>, vector<8x32xf32>,
    %593 = arith.truncf %554 : vector<8x32xf32> to vector<8x32xbf16>
    %c0_171 = arith.constant 0 : index
    %c0_172 = arith.constant 0 : index
    %594 = vector.load %arg10[%c0_171, %c0_172] : memref<32x32xbf16, #tpu.memory_space<vmem>>, vector<32x32xbf16>
    %cst_173 = arith.constant dense<0.000000e+00> : vector<8x32xf32>
    %595 = tpu.matmul %593, %594, %cst_173 {dimension_numbers = #tpu.dot_dimension_numbers<[1], [0], [0], [1], [0, 0, 1, 1], [], []>} : vector<8x32xbf16>, vector<32x32xbf16>, vector<8x32xf32> -> vector<8x32xf32>
    %596 = arith.truncf %570 : vector<8x32xf32> to vector<8x32xbf16>
    %c0_174 = arith.constant 0 : index
    %c0_175 = arith.constant 0 : index
    %597 = vector.load %arg11[%c0_174, %c0_175] : memref<32x32xbf16, #tpu.memory_space<vmem>>, vector<32x32xbf16>
    %cst_176 = arith.constant dense<0.000000e+00> : vector<8x32xf32>
    %598 = tpu.matmul %596, %597, %cst_176 {dimension_numbers = #tpu.dot_dimension_numbers<[1], [0], [0], [1], [0, 0, 1, 1], [], []>} : vector<8x32xbf16>, vector<32x32xbf16>, vector<8x32xf32> -> vector<8x32xf32>
    %599 = arith.addf %595, %598 : vector<8x32xf32>
    %c0_177 = arith.constant 0 : index
    %c0_178 = arith.constant 0 : index
    %600 = vector.load %arg12[%c0_177, %c0_178] : memref<1x32xf32, #tpu.memory_space<vmem>>, vector<1x32xf32>
    %601 = vector.broadcast %600 : vector<1x32xf32> to vector<8x32xf32>
    %602 = arith.addf %599, %601 : vector<8x32xf32>
    %c0_179 = arith.constant 0 : index
    %c0_180 = arith.constant 0 : index
    %603 = vector.load %arg18[%c0_179, %c0_180] : memref<8x32xf32, #tpu.memory_space<vmem>>, vector<8x32xf32>
    tpu.vector_store %arg18[%c0_179, %c0_180], %602 {strides = array<i32>} : memref<8x32xf32, #tpu.memory_space<vmem>>, vector<8x32xf32>,
    %c0_181 = arith.constant 0 : index
    %c0_182 = arith.constant 0 : index
    %c0_183 = arith.constant 0 : index
    %604 = vector.load %arg15[%c0_181, %c0_182, %c0_183] : memref<10x8x64xf32, #tpu.memory_space<vmem>>, vector<10x8x64xf32>
    %605 = vector.shape_cast %604 : vector<10x8x64xf32> to vector<80x64xf32>
    %606 = arith.truncf %605 : vector<80x64xf32> to vector<80x64xbf16>
    %c0_184 = arith.constant 0 : index
    %c0_185 = arith.constant 0 : index
    %607 = vector.load %arg13[%c0_184, %c0_185] : memref<64x32xbf16, #tpu.memory_space<vmem>>, vector<64x32xbf16>
    %cst_186 = arith.constant dense<0.000000e+00> : vector<80x32xf32>
    %608 = tpu.matmul %606, %607, %cst_186 {dimension_numbers = #tpu.dot_dimension_numbers<[1], [0], [0], [1], [0, 0, 1, 1], [], []>} : vector<80x64xbf16>, vector<64x32xbf16>, vector<80x32xf32> -> vector<80x32xf32>
    %c0_187 = arith.constant 0 : index
    %c0_188 = arith.constant 0 : index
    %609 = vector.load %arg14[%c0_187, %c0_188] : memref<1x32xf32, #tpu.memory_space<vmem>>, vector<1x32xf32>
    %610 = vector.broadcast %609 : vector<1x32xf32> to vector<80x32xf32>
    %611 = arith.addf %608, %610 : vector<80x32xf32>
    %612 = vector.shape_cast %611 : vector<80x32xf32> to vector<10x8x32xf32>
    %c0_189 = arith.constant 0 : index
    %c0_190 = arith.constant 0 : index
    %c0_191 = arith.constant 0 : index
    %613 = vector.load %arg16[%c0_189, %c0_190, %c0_191] : memref<10x8x32xf32, #tpu.memory_space<vmem>>, vector<10x8x32xf32>
    tpu.vector_store %arg16[%c0_189, %c0_190, %c0_191], %612 {strides = array<i32>} : memref<10x8x32xf32, #tpu.memory_space<vmem>>, vector<10x8x32xf32>,
    return
  }
}

</mosaic_0001>

<bundles_post_ra>
// kernel: tpu_custom_call.1
= control target key start
LH: loop header
LB: loop body
LE: loop exit
PB: predicated region body
PF: predicated region fallthrough
CT: control target
= control target key end

     0   :  { %s4338_s0 = inlined_call_operand.hbm [shape: f32[10,8,32], index: 0, kind: input, shape index: {}]   ;;  %s4339_s1 = inlined_call_operand.vmem [shape: bf16[32,128], index: 1, kind: input, shape index: {}]   ;;  %s4340_s2 = inlined_call_operand.vmem [shape: bf16[32,128], index: 2, kind: input, shape index: {}]   ;;  %s4341_s3 = inlined_call_operand.vmem [shape: f32[1,128], index: 3, kind: input, shape index: {}]   ;;  %s4342_s4 = inlined_call_operand.vmem [shape: bf16[32,128], index: 4, kind: input, shape index: {}]   ;;  %s4343_s5 = inlined_call_operand.hbm [shape: bf16[32,128], index: 5, kind: input, shape index: {}]   ;;  %s4344_s6 = inlined_call_operand.vmem [shape: f32[1,128], index: 6, kind: input, shape index: {}]   ;;  %s4345_s7 = inlined_call_operand.hbm [shape: bf16[32,32], index: 7, kind: input, shape index: {}]   ;;  %s4346_s8 = inlined_call_operand.hbm [shape: bf16[32,32], index: 8, kind: input, shape index: {}]   ;;  %s4347_s9 = inlined_call_operand.hbm [shape: f32[1,32], index: 9, kind: input, shape index: {}]   ;;  %s4348_s10 = inlined_call_operand.vmem [shape: bf16[32,32], index: 10, kind: input, shape index: {}]   ;;  %s4349_s11 = inlined_call_operand.hbm [shape: bf16[32,32], index: 11, kind: input, shape index: {}]   ;;  %s4350_s12 = inlined_call_operand.vmem [shape: f32[1,32], index: 12, kind: input, shape index: {}]   ;;  %s4351_s13 = inlined_call_operand.vmem [shape: bf16[64,32], index: 13, kind: input, shape index: {}]   ;;  %s4352_s14 = inlined_call_operand.vmem [shape: f32[1,32], index: 14, kind: input, shape index: {}]   ;;  %s4353_s15 = inlined_call_operand.hbm [shape: f32[10,8,64], index: 15, kind: output, shape index: {0}]   ;;  %s4354_s16 = inlined_call_operand.hbm [shape: f32[10,8,32], index: 16, kind: output, shape index: {1}]   ;;  %s4355_s17 = inlined_call_operand.hbm [shape: f32[8,32], index: 17, kind: output, shape index: {2}]   ;;  %s4356_s18 = inlined_call_operand.hbm [shape: f32[8,32], index: 18, kind: output, shape index: {3}]  }
   0x1   :  { %4363 = sst [smem:[#allocation28_spill]] %s4338_s0 }
   0x2   :  { %4364 = sst [smem:[#allocation29_spill]] %s4339_s1 }
   0x3   :  { %4365 = sst [smem:[#allocation30_spill]] %s4340_s2 }
   0x4   :  { %4366 = sst [smem:[#allocation31_spill]] %s4355_s17 }
   0x5   :  { %24 = vsyncpa [#allocation5], 0 }
   0x6   :  { %25 = vsyncpa [#allocation8], 0 }
   0x7   :  { %26 = vsyncpa [#allocation11], 0 }
   0x8   :  { %27 = vsyncpa [#allocation14], 0 }
   0x9   :  { %28 = vsyncpa [#allocation6], 0 }
   0xa   :  { %29 = vsyncpa [#allocation17], 0 }
   0xb   :  { %30 = vsyncpa [#allocation20], 0  ;;  %s3460_s27 = smov [#allocation7]   ;;  %s3226_s0 = scalar_lea.hbm %s4343_s5, 256 }
   0xc   :  { %s56_s28 = sshll.u32 %s3460_s27, 4  ;;  %p3227_p0 = scmp.ne.s32.totalorder %s4343_s5, %s3226_s0  ;;  %s57_s28 = int_to_ptr.vmem [resolvable:$true] %s56_s28 }
   0xd   :  { %p3230_p1 = scmp.lt.u32.totalorder %s3226_s0, %s4343_s5 }
   0xf   :  { %p3232_p2 = pnand %p3230_p1, %p3227_p0 }
  0x11   :  { %3235 = shalt.err (!%p3232_p2)
}
  0x12   :  { %s3236_s22 = scalar_lea.vmem %s57_s28, 256  ;;  %p3241_p4 = scmp.lt.s32.totalorder %s57_s28, %s57_s28 }
  0x13   :  { %p3237_p3 = scmp.ne.s32.totalorder %s57_s28, %s3236_s22  ;;  %p3242_p5 = scmp.lt.s32.totalorder %s3236_s22, %s3236_s22 }
  0x15   :  { %p3243_p6 = por %p3242_p5, %p3241_p4 }
  0x17   :  { %p3244_p7 = pnand %p3243_p6, %p3237_p3 }
  0x19   :  { %3247 = shalt.err (!%p3244_p7)
}
  0x1a   :  { %s4361_s2 = smov 64   ;;  %s3462_s23 = smov 4  }
  0x1b   :  { %62 = dma.hbm_to_vmem [thread:$0]  %s4343_s5, 256, %s57_s28, [#allocation8], %s4361_s2, %s4361_s2, %s3462_s23  }
  0x1c   :  { %s3463_s26 = smov [#allocation10]   ;;  %s3464_s29 = smov [#allocation4]  }
  0x1d   :  { %s82_s27 = sshll.u32 %s3463_s26, 4  ;;  %s36_s30 = sshll.u32 %s3464_s29, 4  ;;  %s83_s27 = int_to_ptr.vmem [resolvable:$true] %s82_s27  ;;  %s37_s30 = int_to_ptr.vmem [resolvable:$true] %s36_s30 }
  0x1e   :  { %s3248_s1 = scalar_lea.hbm %s4346_s8, 256 }
  0x1f   :  { %p3249_p8 = scmp.ne.s32.totalorder %s4346_s8, %s3248_s1  ;;  %p3252_p9 = scmp.lt.u32.totalorder %s3248_s1, %s4346_s8 }
  0x21   :  { %p3254_p10 = pnand %p3252_p9, %p3249_p8 }
  0x23   :  { %3257 = shalt.err (!%p3254_p10)
}
  0x24   :  { %s3258_s5 = scalar_lea.vmem %s83_s27, 256  ;;  %p3263_p12 = scmp.lt.s32.totalorder %s83_s27, %s83_s27 }
  0x25   :  { %p3259_p11 = scmp.ne.s32.totalorder %s83_s27, %s3258_s5  ;;  %p3264_p13 = scmp.lt.s32.totalorder %s3258_s5, %s3258_s5 }
  0x27   :  { %p3265_p0 = por %p3264_p13, %p3263_p12 }
  0x29   :  { %p3266_p1 = pnand %p3265_p0, %p3259_p11 }
  0x2b   :  { %3269 = shalt.err (!%p3266_p1)
}
  0x2c   :  { %88 = dma.hbm_to_vmem [thread:$0]  %s4346_s8, 256, %s83_s27, [#allocation11], %s4361_s2, %s4361_s2, %s3462_s23  }
  0x2d   :  { %s4367_s26 = sld [smem:[#allocation28_spill]] }
  0x33   :  { %s3270_s29 = scalar_lea.hbm %s4367_s26, 1280 }
  0x34   :  { %p3271_p2 = scmp.ne.s32.totalorder %s4367_s26, %s3270_s29  ;;  %p3274_p3 = scmp.lt.u32.totalorder %s3270_s29, %s4367_s26 }
  0x36   :  { %p3276_p4 = pnand %p3274_p3, %p3271_p2 }
  0x38   :  { %3279 = shalt.err (!%p3276_p4)
}
  0x39   :  { %s3280_s21 = scalar_lea.vmem %s37_s30, 1280  ;;  %p3285_p6 = scmp.lt.s32.totalorder %s37_s30, %s37_s30 }
  0x3a   :  { %p3281_p5 = scmp.ne.s32.totalorder %s37_s30, %s3280_s21  ;;  %p3286_p7 = scmp.lt.s32.totalorder %s3280_s21, %s3280_s21 }
  0x3c   :  { %p3287_p8 = por %p3286_p7, %p3285_p6 }
  0x3e   :  { %p3288_p9 = pnand %p3287_p8, %p3281_p5 }
  0x40   :  { %3291 = shalt.err (!%p3288_p9)
}
  0x41   :  { %s3465_s8 = smov 128   ;;  %s3466_s27 = smov 8  }
  0x42   :  { %42 = dma.hbm_to_vmem [thread:$0]  %s4367_s26, 1280, %s37_s30, [#allocation5], %s3465_s8, %s3465_s8, %s3466_s27  }
  0x43   :  { %s3467_s28 = smov [#allocation9]   ;;  %s3468_s25 = smov [#allocation12]  }
  0x44   :  { %s70_s24 = sshll.u32 %s3467_s28, 4  ;;  %s95_s17 = sshll.u32 %s3468_s25, 4  ;;  %s71_s24 = int_to_ptr.vmem [resolvable:$true] %s70_s24  ;;  %s96_s17 = int_to_ptr.vmem [resolvable:$true] %s95_s17 }
  0x45   :  { %s3292_s19 = scalar_lea.hbm %s4345_s7, 256 }
  0x46   :  { %p3293_p10 = scmp.ne.s32.totalorder %s4345_s7, %s3292_s19  ;;  %p3296_p11 = scmp.lt.u32.totalorder %s3292_s19, %s4345_s7 }
  0x48   :  { %p3298_p12 = pnand %p3296_p11, %p3293_p10 }
  0x4a   :  { %3301 = shalt.err (!%p3298_p12)
}
  0x4b   :  { %s3302_s30 = scalar_lea.vmem %s71_s24, 256  ;;  %p3307_p0 = scmp.lt.s32.totalorder %s71_s24, %s71_s24 }
  0x4c   :  { %p3303_p13 = scmp.ne.s32.totalorder %s71_s24, %s3302_s30  ;;  %p3308_p1 = scmp.lt.s32.totalorder %s3302_s30, %s3302_s30 }
  0x4e   :  { %p3309_p2 = por %p3308_p1, %p3307_p0 }
  0x50   :  { %p3310_p3 = pnand %p3309_p2, %p3303_p13 }
  0x52   :  { %3313 = shalt.err (!%p3310_p3)
}
  0x53   :  { %s4368_s26 = smov 64   ;;  %s3314_s25 = scalar_lea.hbm %s4347_s9, 16 }
  0x54   :  { %76 = dma.hbm_to_vmem [thread:$0]  %s4345_s7, 256, %s71_s24, [#allocation8], %s4368_s26, %s4368_s26, %s3462_s23  }
  0x55   :  { %p3315_p4 = scmp.ne.s32.totalorder %s4347_s9, %s3314_s25  ;;  %p3318_p5 = scmp.lt.u32.totalorder %s3314_s25, %s4347_s9 }
  0x57   :  { %p3320_p6 = pnand %p3318_p5, %p3315_p4 }
  0x59   :  { %3323 = shalt.err (!%p3320_p6)
}
  0x5a   :  { %s3324_s20 = scalar_lea.vmem %s96_s17, 16  ;;  %s3328_s21 = scalar_lea.vmem %s96_s17, 32 }
  0x5b   :  { %p3325_p7 = scmp.ne.s32.totalorder %s96_s17, %s3324_s20  ;;  %p3329_p8 = scmp.lt.s32.totalorder %s96_s17, %s96_s17 }
  0x5c   :  { %p3330_p9 = scmp.lt.s32.totalorder %s3328_s21, %s3324_s20 }
  0x5e   :  { %p3331_p10 = por %p3330_p9, %p3329_p8 }
  0x60   :  { %p3332_p11 = pnand %p3331_p10, %p3325_p7 }
  0x62   :  { %3335 = shalt.err (!%p3332_p11)
}
  0x63   :  { %98 = dma.hbm_to_vmem [thread:$0]  %s4347_s9, 16, %s96_s17, [#allocation11]  }
  0x64   :  { %s3469_s30 = smov [#allocation13]   ;;  %s3336_s2 = scalar_lea.hbm %s4349_s11, 256 }
  0x65   :  { %s106_s22 = sshll.u32 %s3469_s30, 4  ;;  %p3337_p12 = scmp.ne.s32.totalorder %s4349_s11, %s3336_s2  ;;  %s107_s22 = int_to_ptr.vmem [resolvable:$true] %s106_s22 }
  0x66   :  { %p3340_p13 = scmp.lt.u32.totalorder %s3336_s2, %s4349_s11 }
  0x68   :  { %p3342_p0 = pnand %p3340_p13, %p3337_p12 }
  0x6a   :  { %3345 = shalt.err (!%p3342_p0)
}
  0x6b   :  { %s3346_s1 = scalar_lea.vmem %s107_s22, 256  ;;  %p3351_p2 = scmp.lt.s32.totalorder %s107_s22, %s107_s22 }
  0x6c   :  { %p3347_p1 = scmp.ne.s32.totalorder %s107_s22, %s3346_s1  ;;  %p3352_p3 = scmp.lt.s32.totalorder %s3346_s1, %s3346_s1 }
  0x6e   :  { %p3353_p4 = por %p3352_p3, %p3351_p2 }
  0x70   :  { %p3354_p5 = pnand %p3353_p4, %p3347_p1 }
  0x72   :  { %3357 = shalt.err (!%p3354_p5)
}
  0x73   :  { %112 = dma.hbm_to_vmem [thread:$0]  %s4349_s11, 256, %s107_s22, [#allocation14], %s4368_s26, %s4368_s26, %s3462_s23  }
  0x74   :  { %3446 = dma.done.wait [#allocation5], 1280  }
  0x75   :  { %3447 = vsyncadd [#allocation5], 4294966016 }
  0x76   :  { %3448 = dma.done.wait [#allocation8], 512  }
  0x77   :  { %3449 = vsyncadd [#allocation8], 4294966784 }
  0x78   :  { %3450 = dma.done.wait [#allocation11], 272  }
  0x79   :  { %3451 = vsyncadd [#allocation11], 4294967024 }
  0x7a   :  { %3452 = dma.done.wait [#allocation14], 256  }
  0x7b   :  { %3453 = vsyncadd [#allocation14], 4294967040  ;;  %v3470_v0 = vmov 0.0   ;;  %vm3471_vm0 = vmmov 0   ;;  %s4369_s20 = sld [smem:[#allocation29_spill]]  ;;  %v142_v3 = vld [vmem:[#allocation4 + $0x20] sm:$0xff] }
  0x7c   :  { %3019 = vmatprep.subr.bf16.mxu1 %v3470_v0  ;;  %2763 = vmatprep.mubr.msk.bf16.mxu1 %vm3471_vm0, %v3470_v0  ;;  %v143_v4 = vld [vmem:[#allocation4 + $0x28] sm:$0xff]  ;;  %vm176_vm1 = vcmask 261120   ;;  %v3044_v6 = vld [vmem:[%s4342_s4] sm:$0xff]   ;;  %v138_v7 = vld [vmem:[#allocation4] sm:$0xff]  ;;  %s4370_s25 = sld [smem:[#allocation30_spill]]  ;;  %v3472_v22 = vmov 0  }
  0x7d   :  { %2751 = vmatprep.subr.bf16.mxu0 %v3470_v0  ;;  %2755 = vmatprep.mubr.msk.bf16.mxu0 %vm3471_vm0, %v3470_v0  ;;  %v150_v5 = vpack.c.bf16 %v143_v4, %v142_v3  ;;  %v139_v8 = vld [vmem:[#allocation4 + $0x8] sm:$0xff]  ;;  %v144_v10 = vld [vmem:[#allocation4 + $0x30] sm:$0xff]  ;;  %v145_v11 = vld [vmem:[#allocation4 + $0x38] sm:$0xff]  ;;  %vm581_vm2 = vcmask 523520   ;;  %vm2354_vm3 = vcmask 523264  }
  0x7e   :  { %v148_v9 = vpack.c.bf16 %v139_v8, %v138_v7  ;;  %v3045_v12 = vld [vmem:[%s4342_s4 + $0x8] sm:$0xff]   ;;  %v140_v13 = vld [vmem:[#allocation4 + $0x10] sm:$0xff]  ;;  %v151_v17 = vpack.c.bf16 %v145_v11, %v144_v10  ;;  %v146_v19 = vld [vmem:[#allocation4 + $0x40] sm:$0xff] }
  0x7f   :  { %v141_v15 = vld [vmem:[#allocation4 + $0x18] sm:$0xff]  ;;  %v147_v20 = vld [vmem:[#allocation4 + $0x48] sm:$0xff]  ;;  %v3718_v23 = vld [vmem:[#allocation7] sm:$0xff]  }
  0x80   :  { %v149_v18 = vpack.c.bf16 %v141_v15, %v140_v13  ;;  %v152_v21 = vpack.c.bf16 %v147_v20, %v146_v19  ;;  %v3726_v24 = vld [vmem:[#allocation7 + $0x8] sm:$0xff]   ;;  %v2516_v25 = vld [vmem:[%s4341_s3] ss:$0 sm:$0xff] }
  0x81   :  { %v3042_v1 = vld [vmem:[%s4369_s20] sm:$0xff]   ;;  %v3043_v2 = vld [vmem:[%s4369_s20 + $0x8] sm:$0xff]   ;;  %s3474_s20 = smov 96  }
  0x82   :  { %3021 = vmatpush3.bf16.msra.mxu1 %v3042_v1  ;;  %2752 = vmatpush3.bf16.msra.mxu0 %v3042_v1  ;;  %v3690_v14 = vld [vmem:[%s4370_s25] sm:$0xff]   ;;  %v3698_v16 = vld [vmem:[%s4370_s25 + $0x8] sm:$0xff]  }
  0x83   :  { %3020 = vmatprep.subr.bf16.mxu1 %v3470_v0  ;;  %2753 = vmatprep.subr.bf16.mxu0 %v3470_v0 }
  0x86   :  { %3022 = vmatpush3.bf16.msra.mxu1 %v3043_v2  ;;  %2754 = vmatpush3.bf16.msra.mxu0 %v3043_v2  ;;  %v2524_v2 = vld [vmem:[%s4344_s6] ss:$0 sm:$0xff]  ;;  %s3473_s6 = smov 32  }
  0x87   :  { %2775 = vmatprep.subr.bf16.mxu1 %v3470_v0  ;;  %2799 = vmatprep.subr.bf16.mxu0 %v3470_v0 }
  0x89   :  { %2764 = vmatmul.mubr.msk.bf16.vlgmr.msra.gmra.mrb[0].mxu1 %vm176_vm1, %v150_v5  ;;  %2756 = vmatmul.mubr.msk.bf16.vlgmr.msra.gmra.mrb[0].mxu0 %vm176_vm1, %v148_v9 }
  0x8a   :  { %2776 = vmatpush3.bf16.msra.mxu1 %v3044_v6  ;;  %2767 = vmatprep.mubr.msk.bf16.mxu1 %vm3471_vm0, %v3470_v0 }
  0x8b   :  { %2777 = vmatprep.subr.bf16.mxu1 %v3470_v0  ;;  %2759 = vmatprep.mubr.msk.bf16.mxu0 %vm3471_vm0, %v3470_v0 }
  0x8c   :  { %2800 = vmatpush3.bf16.msra.mxu0 %v3690_v14 }
  0x8d   :  { %2801 = vmatprep.subr.bf16.mxu0 %v3470_v0 }
  0x8e   :  { %2778 = vmatpush3.bf16.msra.mxu1 %v3045_v12 }
  0x8f   :  { %2807 = vmatprep.subr.bf16.mxu1 %v3470_v0 }
  0x90   :  { %2802 = vmatpush3.bf16.msra.mxu0 %v3698_v16 }
  0x91   :  { %2768 = vmatmul.mubr.msk.bf16.gmra.mrb[4].mxu1 %vm176_vm1, %v151_v17  ;;  %2760 = vmatmul.mubr.msk.bf16.gmra.mrb[4].mxu0 %vm176_vm1, %v149_v18 }
  0x92   :  { %2771 = vmatprep.mubr.msk.bf16.mxu1 %vm3471_vm0, %v3470_v0  ;;  %2803 = vmatprep.mubr.msk.bf16.mxu0 %vm3471_vm0, %v3470_v0 }
  0x93   :  { %2815 = vmatprep.subr.bf16.mxu0 %v3470_v0 }
  0x99   :  { %2772 = vmatmul.mubr.msk.bf16.gmra.mrb[8].mxu1 %vm176_vm1, %v152_v21  ;;  %2804 = vmatmul.mubr.bf16.vlgmr.msra.gmra.mrb[8].mxu0 %v3472_v22 }
  0x9a   :  { %2779 = vmatprep.mubr.msk.bf16.mxu1 %vm3471_vm0, %v3470_v0  ;;  %2816 = vmatpush3.bf16.msra.mxu0 %v3690_v14 }
  0x9b   :  { %2817 = vmatprep.subr.bf16.mxu0 %v3470_v0  ;;  %2819 = vmatprep.mubr.msk.bf16.mxu0 %vm3471_vm0, %v3470_v0 }
  0x9e   :  { %2818 = vmatpush3.bf16.msra.mxu0 %v3698_v16 }
  0x9f   :  { %2831 = vmatprep.subr.bf16.mxu0 %v3470_v0 }
  0xa1   :  { %2780 = vmatmul.mubr.msk.bf16.vlgmr.msra.gmra.mrb[12].mxu1 %vm176_vm1, %v148_v9 }
  0xa2   :  { %2783 = vmatprep.mubr.msk.bf16.mxu1 %vm3471_vm0, %v3470_v0  ;;  %2808 = vmatpush3.bf16.msra.mxu1 %v3718_v23 }
  0xa3   :  { %2809 = vmatprep.subr.bf16.mxu1 %v3470_v0 }
  0xa6   :  { %2810 = vmatpush3.bf16.msra.mxu1 %v3726_v24 }
  0xa7   :  { %2823 = vmatprep.subr.bf16.mxu1 %v3470_v0 }
  0xa9   :  { %2784 = vmatmul.mubr.msk.bf16.gmra.mrb[16].mxu1 %vm176_vm1, %v149_v18 }
  0xaa   :  { %2787 = vmatprep.mubr.msk.bf16.mxu1 %vm3471_vm0, %v3470_v0 }
  0xb1   :  { %2788 = vmatmul.mubr.msk.bf16.gmra.mrb[20].mxu1 %vm176_vm1, %v150_v5 }
  0xb2   :  { %2791 = vmatprep.mubr.msk.bf16.mxu1 %vm3471_vm0, %v3470_v0 }
  0xb9   :  { %2792 = vmatmul.mubr.msk.bf16.gmra.mrb[24].mxu1 %vm176_vm1, %v151_v17 }
  0xba   :  { %2795 = vmatprep.mubr.msk.bf16.mxu1 %vm3471_vm0, %v3470_v0 }
  0xc1   :  { %2796 = vmatmul.mubr.msk.bf16.gmra.mrb[28].mxu1 %vm176_vm1, %v152_v21 }
  0xc2   :  { %2811 = vmatprep.mubr.msk.bf16.mxu1 %vm3471_vm0, %v3470_v0 }
  0xc9   :  { %2812 = vmatmul.mubr.bf16.vlgmr.msra.gmra.mrb[32].mxu1 %v3472_v22 }
  0xca   :  { %2824 = vmatpush3.bf16.msra.mxu1 %v3718_v23  ;;  %2827 = vmatprep.mubr.msk.bf16.mxu1 %vm3471_vm0, %v3470_v0 }
  0xcb   :  { %2825 = vmatprep.subr.bf16.mxu1 %v3470_v0 }
  0xce   :  { %2826 = vmatpush3.bf16.msra.mxu1 %v3726_v24 }
  0xcf   :  { %2839 = vmatprep.subr.bf16.mxu1 %v3470_v0 }
 0x15c   :  { %v242_v26 = vpop.f32.mrb[0].mxu1  ;;  %v226_v27 = vpop.f32.mrb[0].mxu0 }
 0x15d   :  { %v2765_v28 = vpop.f32.mrb[1].mxu1  ;;  %v227_v29 = vadd.f32 %v2516_v25, %v226_v27  ;;  %v2757_v30 = vpop.f32.mrb[1].mxu0  ;;  %v243_v33 = vadd.f32 %v2516_v25, %v242_v26 }
 0x15e   :  { %v245_v31 = vpop.f32.mrb[2].mxu1  ;;  %v229_v32 = vpop.f32.mrb[2].mxu0 }
 0x15f   :  { %v246_v34 = vadd.f32 %v2516_v25, %v245_v31  ;;  %v2766_v35 = vpop.f32.mrb[3].mxu1  ;;  %v230_v36 = vadd.f32 %v2516_v25, %v229_v32  ;;  %v2758_v37 = vpop.f32.mrb[3].mxu0 }
 0x161   :  { %v2611_v38 = vpack.c.bf16 %v246_v34, %v243_v33  ;;  %v2601_v39 = vpack.c.bf16 %v230_v36, %v227_v29 }
 0x163   :  { %2649 = vst [vmem:[#allocation2 + $0x10] sm:$0xff] %v2611_v38   ;;  %2602 = vst [vmem:[#allocation2] sm:$0xff] %v2601_v39  }
 0x164   :  { %v250_v40 = vpop.f32.mrb[4].mxu1  ;;  %v234_v41 = vpop.f32.mrb[4].mxu0 }
 0x165   :  { %v2769_v42 = vpop.f32.mrb[5].mxu1  ;;  %v235_v43 = vadd.f32 %v2516_v25, %v234_v41  ;;  %v2761_v44 = vpop.f32.mrb[5].mxu0  ;;  %v251_v47 = vadd.f32 %v2516_v25, %v250_v40 }
 0x166   :  { %v253_v45 = vpop.f32.mrb[6].mxu1  ;;  %v237_v46 = vpop.f32.mrb[6].mxu0 }
 0x167   :  { %v254_v48 = vadd.f32 %v2516_v25, %v253_v45  ;;  %v2770_v49 = vpop.f32.mrb[7].mxu1  ;;  %v238_v50 = vadd.f32 %v2516_v25, %v237_v46  ;;  %v2762_v51 = vpop.f32.mrb[7].mxu0 }
 0x169   :  { %v2616_v52 = vpack.c.bf16 %v254_v48, %v251_v47  ;;  %v2606_v53 = vpack.c.bf16 %v238_v50, %v235_v43 }
 0x16a   :  { %v3755_v45 = vld [vmem:[#allocation2] sm:$0xff]  }
 0x16b   :  { %2650 = vst [vmem:[#allocation2 + $0x18] sm:$0xff] %v2616_v52   ;;  %2648 = vst [vmem:[#allocation2 + $0x8] sm:$0xff] %v2606_v53   ;;  %v410_v47 = vunpack.c.l.bf16 %v3755_v45 }
 0x16c   :  { %v258_v54 = vpop.f32.mrb[8].mxu1  ;;  %v460_v55 = vpop.f32.mrb[8].mxu0 }
 0x16d   :  { %v2773_v56 = vpop.f32.mrb[9].mxu1  ;;  %v2805_v57 = vpop.f32.mrb[9].mxu0  ;;  %v259_v60 = vadd.f32 %v2516_v25, %v258_v54  ;;  %v466_v51 = vadd.f32 %v460_v55, %v410_v47 }
 0x16e   :  { %v261_v58 = vpop.f32.mrb[10].mxu1  ;;  %v463_v59 = vpop.f32.mrb[10].mxu0 }
 0x16f   :  { %v262_v61 = vadd.f32 %v2516_v25, %v261_v58  ;;  %v2774_v62 = vpop.f32.mrb[11].mxu1  ;;  %v2806_v63 = vpop.f32.mrb[11].mxu0  ;;  %v2536_v56 = vmul.f32 -1.442695, %v466_v51 }
 0x171   :  { %v2621_v1 = vpack.c.bf16 %v262_v61, %v259_v60 }
 0x173   :  { %2651 = vst [vmem:[#allocation2 + $0x20] sm:$0xff] %v2621_v1  }
 0x174   :  { %v342_v3 = vpop.f32.mrb[12].mxu1 }
 0x175   :  { %v2781_v4 = vpop.f32.mrb[13].mxu1  ;;  %v343_v6 = vadd.f32 %v2524_v2, %v342_v3 }
 0x176   :  { %v345_v5 = vpop.f32.mrb[14].mxu1 }
 0x177   :  { %v346_v7 = vadd.f32 %v2524_v2, %v345_v5  ;;  %v2782_v8 = vpop.f32.mrb[15].mxu1 }
 0x179   :  { %v2626_v9 = vpack.c.bf16 %v346_v7, %v343_v6 }
 0x17b   :  { %2627 = vst [vmem:[#allocation3] sm:$0xff] %v2626_v9  }
 0x17c   :  { %v350_v10 = vpop.f32.mrb[16].mxu1 }
 0x17d   :  { %v2785_v11 = vpop.f32.mrb[17].mxu1  ;;  %v351_v13 = vadd.f32 %v2524_v2, %v350_v10 }
 0x17e   :  { %v353_v12 = vpop.f32.mrb[18].mxu1 }
 0x17f   :  { %v354_v15 = vadd.f32 %v2524_v2, %v353_v12  ;;  %v2786_v17 = vpop.f32.mrb[19].mxu1 }
 0x181   :  { %v2631_v18 = vpack.c.bf16 %v354_v15, %v351_v13 }
 0x183   :  { %2652 = vst [vmem:[#allocation3 + $0x8] sm:$0xff] %v2631_v18  }
 0x184   :  { %v358_v19 = vpop.f32.mrb[20].mxu1 }
 0x185   :  { %v2789_v20 = vpop.f32.mrb[21].mxu1  ;;  %v359_v22 = vadd.f32 %v2524_v2, %v358_v19 }
 0x186   :  { %v361_v21 = vpop.f32.mrb[22].mxu1 }
 0x187   :  { %v362_v25 = vadd.f32 %v2524_v2, %v361_v21  ;;  %v2790_v26 = vpop.f32.mrb[23].mxu1 }
 0x189   :  { %v2636_v27 = vpack.c.bf16 %v362_v25, %v359_v22 }
 0x18b   :  { %2653 = vst [vmem:[#allocation3 + $0x10] sm:$0xff] %v2636_v27  }
 0x18c   :  { %v366_v28 = vpop.f32.mrb[24].mxu1 }
 0x18d   :  { %v2793_v29 = vpop.f32.mrb[25].mxu1  ;;  %v367_v31 = vadd.f32 %v2524_v2, %v366_v28 }
 0x18e   :  { %v369_v30 = vpop.f32.mrb[26].mxu1  ;;  %v585_v29 = vunpack.c.h.bf16 %v3755_v45 }
 0x18f   :  { %v370_v32 = vadd.f32 %v2524_v2, %v369_v30  ;;  %v2794_v33 = vpop.f32.mrb[27].mxu1 }
 0x191   :  { %v2641_v34 = vpack.c.bf16 %v370_v32, %v367_v31 }
 0x193   :  { %2654 = vst [vmem:[#allocation3 + $0x18] sm:$0xff] %v2641_v34  }
 0x194   :  { %v374_v35 = vpop.f32.mrb[28].mxu1 }
 0x195   :  { %v2797_v36 = vpop.f32.mrb[29].mxu1  ;;  %v375_v38 = vadd.f32 %v2524_v2, %v374_v35 }
 0x196   :  { %v377_v37 = vpop.f32.mrb[30].mxu1 }
 0x197   :  { %v378_v39 = vadd.f32 %v2524_v2, %v377_v37  ;;  %v2798_v40 = vpop.f32.mrb[31].mxu1 }
 0x199   :  { %v2646_v41 = vpack.c.bf16 %v378_v39, %v375_v38 }
 0x19b   :  { %2655 = vst [vmem:[#allocation3 + $0x20] sm:$0xff] %v2646_v41  }
 0x19c   :  { %v516_v42 = vpop.f32.mrb[32].mxu1 }
 0x19d   :  { %v2813_v43 = vpop.f32.mrb[33].mxu1 }
 0x19e   :  { %v519_v44 = vpop.f32.mrb[34].mxu1 }
 0x19f   :  { %v2814_v46 = vpop.f32.mrb[35].mxu1 }
 0x1a2   :  { %v3758_v48 = vld [vmem:[#allocation3 + $0x20] sm:$0xff]  }
 0x1a3   :  { %v469_v49 = vunpack.c.h.bf16 %v3758_v48  ;;  %v636_v21 = vunpack.c.l.bf16 %v3758_v48 }
 0x1a5   :  { %v522_v50 = vadd.f32 %v516_v42, %v469_v49 }
 0x1a7   :  { %3062 = vtanh.f32 %v522_v50  ;;  %v2537_v54 = vmul.f32 -1.442695, %v522_v50 }
 0x1a8   :  { %3064 = vtanh.f32 %v466_v51 }
 0x1a9   :  { %3066 = vpow2.f32 %v2537_v54 }
 0x1aa   :  { %3068 = vpow2.f32 %v2536_v56 }
 0x1b1   :  { %v3063_v52 = vpop.eup %3062 }
 0x1b2   :  { %556 = vrot.lane.b32.xlu0 %v3063_v52, %s3473_s6  ;;  %v3065_v53 = vpop.eup %3064 }
 0x1b3   :  { %v3067_v57 = vpop.eup %3066 }
 0x1b4   :  { %v550_v58 = vadd.f32 1.0, %v3067_v57  ;;  %v3069_v59 = vpop.eup %3068 }
 0x1b5   :  { %v526_v60 = vadd.f32 1.0, %v3069_v59 }
 0x1b6   :  { %532 = vrot.lane.b32.xlu0 %v3065_v53, %s3473_s6  ;;  %3070 = vrcp.f32 %v550_v58 }
 0x1b7   :  { %3072 = vrcp.f32 %v526_v60 }
 0x1c0   :  { %v3071_v55 = vpop.eup %3070 }
 0x1c1   :  { %v3073_v63 = vpop.eup %3072  ;;  %v554_v3 = vmul.f32 0.0, %v3071_v55 }
 0x1c2   :  { %v530_v6 = vmul.f32 0.0, %v3073_v63 }
 0x224   :  { %v557_v61 = vpop.permute.xlu0 %556 }
 0x225   :  { %v559_v62 = vmul.f32 %v3071_v55, %v557_v61 }
 0x227   :  { %561 = vrot.lane.b32.xlu1 %v559_v62, %s3473_s6 }
 0x228   :  { %v533_v1 = vpop.permute.xlu0 %532 }
 0x229   :  { %v535_v2 = vmul.f32 %v3073_v63, %v533_v1 }
 0x22b   :  { %537 = vrot.lane.b32.xlu1 %v535_v2, %s3473_s6  ;;  %v3837_v2 = vld [vmem:[#allocation3 + $0x18] sm:$0xff]  }
 0x299   :  { %v562_v4 = vpop.permute.xlu1 %561 }
 0x29a   :  { %v3765_v5 = vadd.f32 %v562_v4, %v554_v3  ;;  %v798_v3 = vunpack.c.h.bf16 %v3837_v2 }
 0x29c   :  { %3074 = vtanh.f32 %v3765_v5 }
 0x29d   :  { %v538_v7 = vpop.permute.xlu1 %537 }
 0x29e   :  { %v3768_v8 = vadd.f32 %v538_v7, %v530_v6 }
 0x2a0   :  { %3076 = vtanh.f32 %v3768_v8 }
 0x2a6   :  { %v3075_v9 = vpop.eup %3074 }
 0x2a7   :  { %567 = vrot.lane.b32.xlu0 %v3075_v9, %s3473_s6 }
 0x2aa   :  { %v3077_v10 = vpop.eup %3076 }
 0x2ab   :  { %543 = vrot.lane.b32.xlu1 %v3077_v10, %s3473_s6 }
 0x319   :  { %v568_v11 = vpop.permute.xlu0 %567 }
 0x31a   :  { %v3773_v12 = vmul.f32 %v3071_v55, %v568_v11 }
 0x31c   :  { %v637_v13 = vpack.c.bf16 %v3773_v12, %v3773_v12 }
 0x31d   :  { %v544_v15 = vpop.permute.xlu1 %543 }
 0x31e   :  { %v3777_v17 = vmul.f32 %v3073_v63, %v544_v15  ;;  %639 = vrot.lane.b32.xlu0 %v637_v13, %s4368_s26 }
 0x320   :  { %v586_v18 = vpack.c.bf16 %v3777_v17, %v3777_v17 }
 0x322   :  { %588 = vrot.lane.b32.xlu1 %v586_v18, %s4368_s26 }
 0x390   :  { %v640_v19 = vpop.permute.xlu0 %639 }
 0x391   :  { %2828 = vmatmul.mubr.msk.bf16.vlgmr.msra.gmra.mrb[36].mxu1 %vm176_vm1, %v640_v19 }
 0x392   :  { %2840 = vmatpush3.bf16.msra.mxu1 %v3718_v23  ;;  %2843 = vmatprep.mubr.msk.bf16.mxu1 %vm3471_vm0, %v3470_v0 }
 0x393   :  { %2841 = vmatprep.subr.bf16.mxu1 %v3470_v0 }
 0x394   :  { %v589_v20 = vpop.permute.xlu1 %588 }
 0x395   :  { %2820 = vmatmul.mubr.msk.bf16.vlgmr.msra.gmra.mrb[12].mxu0 %vm176_vm1, %v589_v20 }
 0x396   :  { %2832 = vmatpush3.bf16.msra.mxu0 %v3690_v14  ;;  %2842 = vmatpush3.bf16.msra.mxu1 %v3726_v24 }
 0x397   :  { %2833 = vmatprep.subr.bf16.mxu0 %v3470_v0  ;;  %2835 = vmatprep.mubr.msk.bf16.mxu0 %vm3471_vm0, %v3470_v0 }
 0x398   :  { %2855 = vmatprep.subr.bf16.mxu1 %v3470_v0 }
 0x39a   :  { %2834 = vmatpush3.bf16.msra.mxu0 %v3698_v16 }
 0x39b   :  { %2847 = vmatprep.subr.bf16.mxu0 %v3470_v0 }
 0x464   :  { %v678_v22 = vpop.f32.mrb[36].mxu1 }
 0x465   :  { %v684_v25 = vadd.f32 %v678_v22, %v636_v21  ;;  %v2829_v26 = vpop.f32.mrb[37].mxu1 }
 0x466   :  { %v681_v27 = vpop.f32.mrb[38].mxu1 }
 0x467   :  { %3078 = vtanh.f32 %v684_v25  ;;  %v2830_v28 = vpop.f32.mrb[39].mxu1  ;;  %v2541_v37 = vmul.f32 -1.442695, %v684_v25 }
 0x468   :  { %v627_v30 = vpop.f32.mrb[12].mxu0 }
 0x469   :  { %v633_v31 = vadd.f32 %v627_v30, %v585_v29  ;;  %v2821_v32 = vpop.f32.mrb[13].mxu0 }
 0x46a   :  { %v630_v33 = vpop.f32.mrb[14].mxu0 }
 0x46b   :  { %3080 = vtanh.f32 %v633_v31  ;;  %v2822_v34 = vpop.f32.mrb[15].mxu0  ;;  %v2540_v38 = vmul.f32 -1.442695, %v633_v31 }
 0x46c   :  { %3082 = vpow2.f32 %v2541_v37 }
 0x46d   :  { %3084 = vpow2.f32 %v2540_v38 }
 0x471   :  { %v3079_v35 = vpop.eup %3078 }
 0x472   :  { %718 = vrot.lane.b32.xlu0 %v3079_v35, %s3473_s6 }
 0x475   :  { %v3081_v36 = vpop.eup %3080 }
 0x476   :  { %694 = vrot.lane.b32.xlu1 %v3081_v36, %s3473_s6  ;;  %v3083_v39 = vpop.eup %3082 }
 0x477   :  { %v712_v40 = vadd.f32 1.0, %v3083_v39  ;;  %v3085_v41 = vpop.eup %3084 }
 0x478   :  { %v688_v42 = vadd.f32 1.0, %v3085_v41 }
 0x479   :  { %3086 = vrcp.f32 %v712_v40 }
 0x47a   :  { %3088 = vrcp.f32 %v688_v42 }
 0x483   :  { %v3087_v43 = vpop.eup %3086 }
 0x484   :  { %v3089_v46 = vpop.eup %3088  ;;  %v716_v49 = vmul.f32 %v3087_v43, %v3765_v5  ;;  %v3840_v5 = vld [vmem:[#allocation2 + $0x8] sm:$0xff]  }
 0x485   :  { %v692_v52 = vmul.f32 %v3089_v46, %v3768_v8  ;;  %v747_v10 = vunpack.c.l.bf16 %v3840_v5 }
 0x4e4   :  { %v719_v44 = vpop.permute.xlu0 %718 }
 0x4e5   :  { %v721_v45 = vmul.f32 %v3087_v43, %v719_v44 }
 0x4e7   :  { %723 = vrot.lane.b32.xlu0 %v721_v45, %s3473_s6 }
 0x4e8   :  { %v695_v47 = vpop.permute.xlu1 %694 }
 0x4e9   :  { %v697_v48 = vmul.f32 %v3089_v46, %v695_v47 }
 0x4eb   :  { %699 = vrot.lane.b32.xlu1 %v697_v48, %s3473_s6 }
 0x559   :  { %v724_v50 = vpop.permute.xlu0 %723 }
 0x55a   :  { %v3804_v51 = vadd.f32 %v724_v50, %v716_v49 }
 0x55c   :  { %3090 = vtanh.f32 %v3804_v51 }
 0x55d   :  { %v700_v53 = vpop.permute.xlu1 %699 }
 0x55e   :  { %v3808_v54 = vadd.f32 %v700_v53, %v692_v52  ;;  %v960_v52 = vunpack.c.l.bf16 %v3837_v2 }
 0x560   :  { %3092 = vtanh.f32 %v3808_v54 }
 0x566   :  { %v3091_v56 = vpop.eup %3090 }
 0x567   :  { %729 = vrot.lane.b32.xlu0 %v3091_v56, %s3473_s6 }
 0x56a   :  { %v3093_v57 = vpop.eup %3092 }
 0x56b   :  { %705 = vrot.lane.b32.xlu1 %v3093_v57, %s3473_s6 }
 0x5d9   :  { %v730_v58 = vpop.permute.xlu0 %729 }
 0x5da   :  { %v3813_v59 = vmul.f32 %v3087_v43, %v730_v58 }
 0x5dc   :  { %v799_v60 = vpack.c.bf16 %v3813_v59, %v3813_v59 }
 0x5dd   :  { %v706_v55 = vpop.permute.xlu1 %705 }
 0x5de   :  { %v3817_v61 = vmul.f32 %v3089_v46, %v706_v55  ;;  %801 = vrot.lane.b32.xlu0 %v799_v60, %s4368_s26  ;;  %v909_v60 = vunpack.c.h.bf16 %v3840_v5 }
 0x5e0   :  { %v748_v62 = vpack.c.bf16 %v3817_v61, %v3817_v61 }
 0x5e2   :  { %750 = vrot.lane.b32.xlu1 %v748_v62, %s4368_s26 }
 0x650   :  { %v802_v63 = vpop.permute.xlu0 %801 }
 0x651   :  { %2844 = vmatmul.mubr.msk.bf16.vlgmr.msra.gmra.mrb[40].mxu1 %vm176_vm1, %v802_v63 }
 0x652   :  { %2856 = vmatpush3.bf16.msra.mxu1 %v3718_v23  ;;  %2859 = vmatprep.mubr.msk.bf16.mxu1 %vm3471_vm0, %v3470_v0 }
 0x653   :  { %2857 = vmatprep.subr.bf16.mxu1 %v3470_v0 }
 0x654   :  { %v751_v1 = vpop.permute.xlu1 %750 }
 0x655   :  { %2836 = vmatmul.mubr.msk.bf16.vlgmr.msra.gmra.mrb[16].mxu0 %vm176_vm1, %v751_v1 }
 0x656   :  { %2848 = vmatpush3.bf16.msra.mxu0 %v3690_v14  ;;  %2858 = vmatpush3.bf16.msra.mxu1 %v3726_v24 }
 0x657   :  { %2849 = vmatprep.subr.bf16.mxu0 %v3470_v0  ;;  %2851 = vmatprep.mubr.msk.bf16.mxu0 %vm3471_vm0, %v3470_v0 }
 0x658   :  { %2871 = vmatprep.subr.bf16.mxu1 %v3470_v0 }
 0x65a   :  { %2850 = vmatpush3.bf16.msra.mxu0 %v3698_v16 }
 0x65b   :  { %2863 = vmatprep.subr.bf16.mxu0 %v3470_v0 }
 0x724   :  { %v840_v4 = vpop.f32.mrb[40].mxu1 }
 0x725   :  { %v846_v6 = vadd.f32 %v840_v4, %v798_v3  ;;  %v2845_v7 = vpop.f32.mrb[41].mxu1 }
 0x726   :  { %v843_v8 = vpop.f32.mrb[42].mxu1 }
 0x727   :  { %3094 = vtanh.f32 %v846_v6  ;;  %v2846_v9 = vpop.f32.mrb[43].mxu1  ;;  %v2545_v22 = vmul.f32 -1.442695, %v846_v6 }
 0x728   :  { %v789_v11 = vpop.f32.mrb[16].mxu0 }
 0x729   :  { %v795_v13 = vadd.f32 %v789_v11, %v747_v10  ;;  %v2837_v15 = vpop.f32.mrb[17].mxu0 }
 0x72a   :  { %v792_v18 = vpop.f32.mrb[18].mxu0 }
 0x72b   :  { %3096 = vtanh.f32 %v795_v13  ;;  %v2838_v19 = vpop.f32.mrb[19].mxu0  ;;  %v2544_v25 = vmul.f32 -1.442695, %v795_v13 }
 0x72c   :  { %3098 = vpow2.f32 %v2545_v22 }
 0x72d   :  { %3100 = vpow2.f32 %v2544_v25 }
 0x731   :  { %v3095_v20 = vpop.eup %3094 }
 0x732   :  { %880 = vrot.lane.b32.xlu0 %v3095_v20, %s3473_s6 }
 0x735   :  { %v3097_v21 = vpop.eup %3096 }
 0x736   :  { %856 = vrot.lane.b32.xlu1 %v3097_v21, %s3473_s6  ;;  %v3099_v26 = vpop.eup %3098 }
 0x737   :  { %v874_v27 = vadd.f32 1.0, %v3099_v26  ;;  %v3101_v28 = vpop.eup %3100 }
 0x738   :  { %v850_v29 = vadd.f32 1.0, %v3101_v28 }
 0x739   :  { %3102 = vrcp.f32 %v874_v27 }
 0x73a   :  { %3104 = vrcp.f32 %v850_v29 }
 0x743   :  { %v3103_v30 = vpop.eup %3102 }
 0x744   :  { %v3105_v33 = vpop.eup %3104  ;;  %v878_v36 = vmul.f32 %v3103_v30, %v3804_v51 }
 0x745   :  { %v854_v39 = vmul.f32 %v3105_v33, %v3808_v54 }
 0x7a4   :  { %v881_v31 = vpop.permute.xlu0 %880 }
 0x7a5   :  { %v883_v32 = vmul.f32 %v3103_v30, %v881_v31 }
 0x7a7   :  { %885 = vrot.lane.b32.xlu0 %v883_v32, %s3473_s6 }
 0x7a8   :  { %v857_v34 = vpop.permute.xlu1 %856 }
 0x7a9   :  { %v859_v35 = vmul.f32 %v3105_v33, %v857_v34 }
 0x7ab   :  { %861 = vrot.lane.b32.xlu1 %v859_v35, %s3473_s6 }
 0x819   :  { %v886_v37 = vpop.permute.xlu0 %885 }
 0x81a   :  { %v3848_v38 = vadd.f32 %v886_v37, %v878_v36 }
 0x81c   :  { %3106 = vtanh.f32 %v3848_v38 }
 0x81d   :  { %v862_v40 = vpop.permute.xlu1 %861 }
 0x81e   :  { %v3852_v41 = vadd.f32 %v862_v40, %v854_v39  ;;  %v3921_v39 = vld [vmem:[#allocation3 + $0x10] sm:$0xff]  }
 0x81f   :  { %v1122_v40 = vunpack.c.h.bf16 %v3921_v39 }
 0x820   :  { %3108 = vtanh.f32 %v3852_v41 }
 0x826   :  { %v3107_v42 = vpop.eup %3106 }
 0x827   :  { %891 = vrot.lane.b32.xlu0 %v3107_v42, %s3473_s6  ;;  %v3924_v42 = vld [vmem:[#allocation2 + $0x10] sm:$0xff]  }
 0x82a   :  { %v3109_v43 = vpop.eup %3108 }
 0x82b   :  { %867 = vrot.lane.b32.xlu1 %v3109_v43, %s3473_s6 }
 0x899   :  { %v892_v44 = vpop.permute.xlu0 %891 }
 0x89a   :  { %v3857_v45 = vmul.f32 %v3103_v30, %v892_v44 }
 0x89c   :  { %v961_v46 = vpack.c.bf16 %v3857_v45, %v3857_v45 }
 0x89d   :  { %v868_v47 = vpop.permute.xlu1 %867 }
 0x89e   :  { %v3861_v48 = vmul.f32 %v3105_v33, %v868_v47  ;;  %963 = vrot.lane.b32.xlu0 %v961_v46, %s4368_s26 }
 0x8a0   :  { %v910_v49 = vpack.c.bf16 %v3861_v48, %v3861_v48 }
 0x8a2   :  { %912 = vrot.lane.b32.xlu1 %v910_v49, %s4368_s26  ;;  %v1071_v49 = vunpack.c.l.bf16 %v3924_v42 }
 0x910   :  { %v964_v50 = vpop.permute.xlu0 %963 }
 0x911   :  { %2860 = vmatmul.mubr.msk.bf16.vlgmr.msra.gmra.mrb[44].mxu1 %vm176_vm1, %v964_v50 }
 0x912   :  { %2872 = vmatpush3.bf16.msra.mxu1 %v3718_v23  ;;  %2875 = vmatprep.mubr.msk.bf16.mxu1 %vm3471_vm0, %v3470_v0 }
 0x913   :  { %2873 = vmatprep.subr.bf16.mxu1 %v3470_v0 }
 0x914   :  { %v913_v51 = vpop.permute.xlu1 %912 }
 0x915   :  { %2852 = vmatmul.mubr.msk.bf16.vlgmr.msra.gmra.mrb[20].mxu0 %vm176_vm1, %v913_v51 }
 0x916   :  { %2864 = vmatpush3.bf16.msra.mxu0 %v3690_v14  ;;  %2874 = vmatpush3.bf16.msra.mxu1 %v3726_v24 }
 0x917   :  { %2865 = vmatprep.subr.bf16.mxu0 %v3470_v0  ;;  %2867 = vmatprep.mubr.msk.bf16.mxu0 %vm3471_vm0, %v3470_v0 }
 0x918   :  { %2887 = vmatprep.subr.bf16.mxu1 %v3470_v0 }
 0x91a   :  { %2866 = vmatpush3.bf16.msra.mxu0 %v3698_v16 }
 0x91b   :  { %2879 = vmatprep.subr.bf16.mxu0 %v3470_v0 }
 0x9e4   :  { %v1002_v53 = vpop.f32.mrb[44].mxu1 }
 0x9e5   :  { %v1008_v54 = vadd.f32 %v1002_v53, %v960_v52  ;;  %v2861_v56 = vpop.f32.mrb[45].mxu1 }
 0x9e6   :  { %v1005_v57 = vpop.f32.mrb[46].mxu1 }
 0x9e7   :  { %3110 = vtanh.f32 %v1008_v54  ;;  %v2862_v58 = vpop.f32.mrb[47].mxu1  ;;  %v2549_v2 = vmul.f32 -1.442695, %v1008_v54 }
 0x9e8   :  { %v951_v55 = vpop.f32.mrb[20].mxu0 }
 0x9e9   :  { %v957_v62 = vadd.f32 %v951_v55, %v909_v60  ;;  %v2853_v63 = vpop.f32.mrb[21].mxu0 }
 0x9ea   :  { %v954_v1 = vpop.f32.mrb[22].mxu0 }
 0x9eb   :  { %3112 = vtanh.f32 %v957_v62  ;;  %v2854_v3 = vpop.f32.mrb[23].mxu0  ;;  %v2548_v7 = vmul.f32 -1.442695, %v957_v62 }
 0x9ec   :  { %3114 = vpow2.f32 %v2549_v2 }
 0x9ed   :  { %3116 = vpow2.f32 %v2548_v7 }
 0x9f1   :  { %v3111_v4 = vpop.eup %3110 }
 0x9f2   :  { %1042 = vrot.lane.b32.xlu0 %v3111_v4, %s3473_s6 }
 0x9f5   :  { %v3113_v6 = vpop.eup %3112 }
 0x9f6   :  { %1018 = vrot.lane.b32.xlu1 %v3113_v6, %s3473_s6  ;;  %v3115_v8 = vpop.eup %3114 }
 0x9f7   :  { %v1036_v9 = vadd.f32 1.0, %v3115_v8  ;;  %v3117_v10 = vpop.eup %3116 }
 0x9f8   :  { %v1012_v5 = vadd.f32 1.0, %v3117_v10 }
 0x9f9   :  { %3118 = vrcp.f32 %v1036_v9 }
 0x9fa   :  { %3120 = vrcp.f32 %v1012_v5 }
 0xa03   :  { %v3119_v11 = vpop.eup %3118 }
 0xa04   :  { %v3121_v18 = vpop.eup %3120  ;;  %v1040_v21 = vmul.f32 %v3119_v11, %v3848_v38 }
 0xa05   :  { %v1016_v26 = vmul.f32 %v3121_v18, %v3852_v41 }
 0xa64   :  { %v1043_v13 = vpop.permute.xlu0 %1042 }
 0xa65   :  { %v1045_v15 = vmul.f32 %v3119_v11, %v1043_v13 }
 0xa67   :  { %1047 = vrot.lane.b32.xlu0 %v1045_v15, %s3473_s6 }
 0xa68   :  { %v1019_v19 = vpop.permute.xlu1 %1018 }
 0xa69   :  { %v1021_v20 = vmul.f32 %v3121_v18, %v1019_v19 }
 0xa6b   :  { %1023 = vrot.lane.b32.xlu1 %v1021_v20, %s3473_s6 }
 0xad9   :  { %v1048_v22 = vpop.permute.xlu0 %1047 }
 0xada   :  { %v3888_v25 = vadd.f32 %v1048_v22, %v1040_v21 }
 0xadc   :  { %3122 = vtanh.f32 %v3888_v25 }
 0xadd   :  { %v1024_v27 = vpop.permute.xlu1 %1023 }
 0xade   :  { %v3892_v28 = vadd.f32 %v1024_v27, %v1016_v26 }
 0xae0   :  { %3124 = vtanh.f32 %v3892_v28 }
 0xae6   :  { %v3123_v29 = vpop.eup %3122 }
 0xae7   :  { %1053 = vrot.lane.b32.xlu0 %v3123_v29, %s3473_s6 }
 0xaea   :  { %v3125_v30 = vpop.eup %3124 }
 0xaeb   :  { %1029 = vrot.lane.b32.xlu1 %v3125_v30, %s3473_s6 }
 0xb59   :  { %v1054_v31 = vpop.permute.xlu0 %1053 }
 0xb5a   :  { %v3897_v32 = vmul.f32 %v3119_v11, %v1054_v31 }
 0xb5c   :  { %v1123_v33 = vpack.c.bf16 %v3897_v32, %v3897_v32 }
 0xb5d   :  { %v1030_v34 = vpop.permute.xlu1 %1029 }
 0xb5e   :  { %v3901_v35 = vmul.f32 %v3121_v18, %v1030_v34  ;;  %1125 = vrot.lane.b32.xlu0 %v1123_v33, %s4368_s26 }
 0xb60   :  { %v1072_v36 = vpack.c.bf16 %v3901_v35, %v3901_v35 }
 0xb62   :  { %1074 = vrot.lane.b32.xlu1 %v1072_v36, %s4368_s26 }
 0xbd0   :  { %v1126_v37 = vpop.permute.xlu0 %1125 }
 0xbd1   :  { %2876 = vmatmul.mubr.msk.bf16.vlgmr.msra.gmra.mrb[48].mxu1 %vm176_vm1, %v1126_v37 }
 0xbd2   :  { %2888 = vmatpush3.bf16.msra.mxu1 %v3718_v23  ;;  %2891 = vmatprep.mubr.msk.bf16.mxu1 %vm3471_vm0, %v3470_v0 }
 0xbd3   :  { %2889 = vmatprep.subr.bf16.mxu1 %v3470_v0 }
 0xbd4   :  { %v1075_v38 = vpop.permute.xlu1 %1074 }
 0xbd5   :  { %2868 = vmatmul.mubr.msk.bf16.vlgmr.msra.gmra.mrb[24].mxu0 %vm176_vm1, %v1075_v38 }
 0xbd6   :  { %2880 = vmatpush3.bf16.msra.mxu0 %v3690_v14  ;;  %2890 = vmatpush3.bf16.msra.mxu1 %v3726_v24 }
 0xbd7   :  { %2881 = vmatprep.subr.bf16.mxu0 %v3470_v0  ;;  %2883 = vmatprep.mubr.msk.bf16.mxu0 %vm3471_vm0, %v3470_v0 }
 0xbd8   :  { %2903 = vmatprep.subr.bf16.mxu1 %v3470_v0 }
 0xbda   :  { %2882 = vmatpush3.bf16.msra.mxu0 %v3698_v16 }
 0xbdb   :  { %2895 = vmatprep.subr.bf16.mxu0 %v3470_v0 }
 0xca4   :  { %v1164_v41 = vpop.f32.mrb[48].mxu1 }
 0xca5   :  { %v1170_v43 = vadd.f32 %v1164_v41, %v1122_v40  ;;  %v2877_v44 = vpop.f32.mrb[49].mxu1 }
 0xca6   :  { %v1167_v46 = vpop.f32.mrb[50].mxu1 }
 0xca7   :  { %3126 = vtanh.f32 %v1170_v43  ;;  %v2878_v47 = vpop.f32.mrb[51].mxu1  ;;  %v2553_v58 = vmul.f32 -1.442695, %v1170_v43 }
 0xca8   :  { %v1113_v50 = vpop.f32.mrb[24].mxu0 }
 0xca9   :  { %v1119_v51 = vadd.f32 %v1113_v50, %v1071_v49  ;;  %v2869_v52 = vpop.f32.mrb[25].mxu0 }
 0xcaa   :  { %v1116_v53 = vpop.f32.mrb[26].mxu0 }
 0xcab   :  { %3128 = vtanh.f32 %v1119_v51  ;;  %v2870_v54 = vpop.f32.mrb[27].mxu0  ;;  %v2552_v60 = vmul.f32 -1.442695, %v1119_v51 }
 0xcac   :  { %3130 = vpow2.f32 %v2553_v58 }
 0xcad   :  { %3132 = vpow2.f32 %v2552_v60 }
 0xcb1   :  { %v3127_v56 = vpop.eup %3126 }
 0xcb2   :  { %1204 = vrot.lane.b32.xlu0 %v3127_v56, %s3473_s6 }
 0xcb5   :  { %v3129_v57 = vpop.eup %3128 }
 0xcb6   :  { %1180 = vrot.lane.b32.xlu1 %v3129_v57, %s3473_s6  ;;  %v3131_v55 = vpop.eup %3130 }
 0xcb7   :  { %v1198_v62 = vadd.f32 1.0, %v3131_v55  ;;  %v3133_v63 = vpop.eup %3132 }
 0xcb8   :  { %v1174_v1 = vadd.f32 1.0, %v3133_v63 }
 0xcb9   :  { %3134 = vrcp.f32 %v1198_v62 }
 0xcba   :  { %3136 = vrcp.f32 %v1174_v1 }
 0xcc3   :  { %v3135_v3 = vpop.eup %3134 }
 0xcc4   :  { %v3137_v2 = vpop.eup %3136  ;;  %v1202_v9 = vmul.f32 %v3135_v3, %v3888_v25 }
 0xcc5   :  { %v1178_v11 = vmul.f32 %v3137_v2, %v3892_v28 }
 0xd24   :  { %v1205_v4 = vpop.permute.xlu0 %1204 }
 0xd25   :  { %v1207_v6 = vmul.f32 %v3135_v3, %v1205_v4 }
 0xd27   :  { %1209 = vrot.lane.b32.xlu0 %v1207_v6, %s3473_s6 }
 0xd28   :  { %v1181_v7 = vpop.permute.xlu1 %1180 }
 0xd29   :  { %v1183_v8 = vmul.f32 %v3137_v2, %v1181_v7 }
 0xd2b   :  { %1185 = vrot.lane.b32.xlu1 %v1183_v8, %s3473_s6 }
 0xd99   :  { %v1210_v10 = vpop.permute.xlu0 %1209 }
 0xd9a   :  { %v3932_v5 = vadd.f32 %v1210_v10, %v1202_v9 }
 0xd9c   :  { %3138 = vtanh.f32 %v3932_v5 }
 0xd9d   :  { %v1186_v13 = vpop.permute.xlu1 %1185 }
 0xd9e   :  { %v3936_v15 = vadd.f32 %v1186_v13, %v1178_v11  ;;  %v4002_v13 = vld [vmem:[%s4370_s25] sm:$0xff]  }
 0xda0   :  { %3140 = vtanh.f32 %v3936_v15 }
 0xda6   :  { %v3139_v18 = vpop.eup %3138 }
 0xda7   :  { %1215 = vrot.lane.b32.xlu0 %v3139_v18, %s3473_s6  ;;  %v4015_v18 = vld [vmem:[%s4370_s25 + $0x8] sm:$0xff]  }
 0xdaa   :  { %v3141_v19 = vpop.eup %3140 }
 0xdab   :  { %1191 = vrot.lane.b32.xlu1 %v3141_v19, %s3473_s6  ;;  %v4019_v19 = vld [vmem:[#allocation3 + $0x8] sm:$0xff]  }
 0xe19   :  { %v1216_v20 = vpop.permute.xlu0 %1215 }
 0xe1a   :  { %v3941_v21 = vmul.f32 %v3135_v3, %v1216_v20  ;;  %v1444_v20 = vunpack.c.h.bf16 %v4019_v19 }
 0xe1c   :  { %v1285_v22 = vpack.c.bf16 %v3941_v21, %v3941_v21 }
 0xe1d   :  { %v1192_v25 = vpop.permute.xlu1 %1191 }
 0xe1e   :  { %v3945_v26 = vmul.f32 %v3137_v2, %v1192_v25  ;;  %1287 = vrot.lane.b32.xlu0 %v1285_v22, %s4368_s26  ;;  %v4022_v25 = vld [vmem:[#allocation2 + $0x18] sm:$0xff]  }
 0xe20   :  { %v1234_v27 = vpack.c.bf16 %v3945_v26, %v3945_v26 }
 0xe22   :  { %1236 = vrot.lane.b32.xlu1 %v1234_v27, %s4368_s26 }
 0xe90   :  { %v1288_v28 = vpop.permute.xlu0 %1287 }
 0xe91   :  { %2892 = vmatmul.mubr.msk.bf16.vlgmr.msra.gmra.mrb[52].mxu1 %vm176_vm1, %v1288_v28 }
 0xe92   :  { %2904 = vmatpush3.bf16.msra.mxu1 %v3718_v23  ;;  %2907 = vmatprep.mubr.msk.bf16.mxu1 %vm3471_vm0, %v3470_v0  ;;  %v1284_v23 = vunpack.c.l.bf16 %v3921_v39 }
 0xe93   :  { %2905 = vmatprep.subr.bf16.mxu1 %v3470_v0 }
 0xe94   :  { %v1237_v29 = vpop.permute.xlu1 %1236 }
 0xe95   :  { %2884 = vmatmul.mubr.msk.bf16.vlgmr.msra.gmra.mrb[28].mxu0 %vm176_vm1, %v1237_v29 }
 0xe96   :  { %2896 = vmatpush3.bf16.msra.mxu0 %v3690_v14  ;;  %2906 = vmatpush3.bf16.msra.mxu1 %v3726_v24  ;;  %v1233_v24 = vunpack.c.h.bf16 %v3924_v42 }
 0xe97   :  { %2897 = vmatprep.subr.bf16.mxu0 %v3470_v0  ;;  %2899 = vmatprep.mubr.msk.bf16.mxu0 %vm3471_vm0, %v3470_v0 }
 0xe98   :  { %2919 = vmatprep.subr.bf16.mxu1 %v3470_v0 }
 0xe9a   :  { %2898 = vmatpush3.bf16.msra.mxu0 %v3698_v16 }
 0xe9b   :  { %2911 = vmatprep.subr.bf16.mxu0 %v3470_v0 }
 0xf64   :  { %v1326_v30 = vpop.f32.mrb[52].mxu1 }
 0xf65   :  { %v1332_v31 = vadd.f32 %v1326_v30, %v1284_v23  ;;  %v2893_v33 = vpop.f32.mrb[53].mxu1  ;;  %v1393_v30 = vunpack.c.l.bf16 %v4022_v25 }
 0xf66   :  { %v1329_v34 = vpop.f32.mrb[54].mxu1 }
 0xf67   :  { %3142 = vtanh.f32 %v1332_v31  ;;  %v2894_v14 = vpop.f32.mrb[55].mxu1  ;;  %v2557_v39 = vmul.f32 -1.442695, %v1332_v31 }
 0xf68   :  { %v1275_v36 = vpop.f32.mrb[28].mxu0 }
 0xf69   :  { %v1281_v37 = vadd.f32 %v1275_v36, %v1233_v24  ;;  %v2885_v38 = vpop.f32.mrb[29].mxu0 }
 0xf6a   :  { %v1278_v40 = vpop.f32.mrb[30].mxu0 }
 0xf6b   :  { %3144 = vtanh.f32 %v1281_v37  ;;  %v2886_v41 = vpop.f32.mrb[31].mxu0  ;;  %v2556_v44 = vmul.f32 -1.442695, %v1281_v37 }
 0xf6c   :  { %3146 = vpow2.f32 %v2557_v39 }
 0xf6d   :  { %3148 = vpow2.f32 %v2556_v44 }
 0xf71   :  { %v3143_v43 = vpop.eup %3142 }
 0xf72   :  { %1366 = vrot.lane.b32.xlu0 %v3143_v43, %s3473_s6 }
 0xf75   :  { %v3145_v16 = vpop.eup %3144 }
 0xf76   :  { %1342 = vrot.lane.b32.xlu1 %v3145_v16, %s3473_s6  ;;  %v3147_v46 = vpop.eup %3146 }
 0xf77   :  { %v1360_v47 = vadd.f32 1.0, %v3147_v46  ;;  %v3149_v49 = vpop.eup %3148 }
 0xf78   :  { %v1336_v42 = vadd.f32 1.0, %v3149_v49 }
 0xf79   :  { %3150 = vrcp.f32 %v1360_v47 }
 0xf7a   :  { %3152 = vrcp.f32 %v1336_v42 }
 0xf83   :  { %v3151_v50 = vpop.eup %3150 }
 0xf84   :  { %v3153_v53 = vpop.eup %3152  ;;  %v1364_v57 = vmul.f32 %v3151_v50, %v3932_v5  ;;  %v3992_v5 = vld [vmem:[#allocation7] sm:$0xff]  }
 0xf85   :  { %v1340_v55 = vmul.f32 %v3153_v53, %v3936_v15  ;;  %v4005_v15 = vld [vmem:[#allocation7 + $0x8] sm:$0xff]  }
 0xfe4   :  { %v1367_v51 = vpop.permute.xlu0 %1366 }
 0xfe5   :  { %v1369_v52 = vmul.f32 %v3151_v50, %v1367_v51 }
 0xfe7   :  { %1371 = vrot.lane.b32.xlu0 %v1369_v52, %s3473_s6 }
 0xfe8   :  { %v1343_v54 = vpop.permute.xlu1 %1342 }
 0xfe9   :  { %v1345_v56 = vmul.f32 %v3153_v53, %v1343_v54 }
 0xfeb   :  { %1347 = vrot.lane.b32.xlu1 %v1345_v56, %s3473_s6 }
0x1059   :  { %v1372_v58 = vpop.permute.xlu0 %1371 }
0x105a   :  { %v3972_v60 = vadd.f32 %v1372_v58, %v1364_v57 }
0x105c   :  { %3154 = vtanh.f32 %v3972_v60 }
0x105d   :  { %v1348_v62 = vpop.permute.xlu1 %1347 }
0x105e   :  { %v3976_v63 = vadd.f32 %v1348_v62, %v1340_v55 }
0x1060   :  { %3156 = vtanh.f32 %v3976_v63 }
0x1066   :  { %v3155_v1 = vpop.eup %3154 }
0x1067   :  { %1377 = vrot.lane.b32.xlu0 %v3155_v1, %s3473_s6 }
0x106a   :  { %v3157_v3 = vpop.eup %3156 }
0x106b   :  { %1353 = vrot.lane.b32.xlu1 %v3157_v3, %s3473_s6 }
0x10d9   :  { %v1378_v4 = vpop.permute.xlu0 %1377 }
0x10da   :  { %v3981_v6 = vmul.f32 %v3151_v50, %v1378_v4 }
0x10dc   :  { %v1445_v2 = vpack.c.bf16 %v3981_v6, %v3981_v6 }
0x10dd   :  { %v1354_v7 = vpop.permute.xlu1 %1353 }
0x10de   :  { %v3985_v8 = vmul.f32 %v3153_v53, %v1354_v7  ;;  %1447 = vrot.lane.b32.xlu0 %v1445_v2, %s4368_s26 }
0x10e0   :  { %v1394_v9 = vpack.c.bf16 %v3985_v8, %v3985_v8 }
0x10e2   :  { %1396 = vrot.lane.b32.xlu1 %v1394_v9, %s4368_s26  ;;  %v1604_v9 = vunpack.c.l.bf16 %v4019_v19 }
0x1150   :  { %v1448_v10 = vpop.permute.xlu0 %1447 }
0x1151   :  { %2908 = vmatmul.mubr.msk.bf16.vlgmr.msra.gmra.mrb[56].mxu1 %vm176_vm1, %v1448_v10 }
0x1152   :  { %2920 = vmatpush3.bf16.msra.mxu1 %v3992_v5  ;;  %2923 = vmatprep.mubr.msk.bf16.mxu1 %vm3471_vm0, %v3470_v0 }
0x1153   :  { %2921 = vmatprep.subr.bf16.mxu1 %v3470_v0 }
0x1154   :  { %v1397_v11 = vpop.permute.xlu1 %1396 }
0x1155   :  { %2900 = vmatmul.mubr.msk.bf16.vlgmr.msra.gmra.mrb[32].mxu0 %vm176_vm1, %v1397_v11 }
0x1156   :  { %2912 = vmatpush3.bf16.msra.mxu0 %v4002_v13  ;;  %2922 = vmatpush3.bf16.msra.mxu1 %v4005_v15 }
0x1157   :  { %2913 = vmatprep.subr.bf16.mxu0 %v3470_v0  ;;  %2915 = vmatprep.mubr.msk.bf16.mxu0 %vm3471_vm0, %v3470_v0 }
0x1158   :  { %2935 = vmatprep.subr.bf16.mxu1 %v3470_v0 }
0x115a   :  { %2914 = vmatpush3.bf16.msra.mxu0 %v4015_v18 }
0x115b   :  { %2927 = vmatprep.subr.bf16.mxu0 %v3470_v0 }
0x1224   :  { %v1486_v22 = vpop.f32.mrb[56].mxu1 }
0x1225   :  { %v1492_v27 = vadd.f32 %v1486_v22, %v1444_v20  ;;  %v2909_v28 = vpop.f32.mrb[57].mxu1 }
0x1226   :  { %v1489_v29 = vpop.f32.mrb[58].mxu1  ;;  %v1553_v28 = vunpack.c.h.bf16 %v4022_v25 }
0x1227   :  { %3158 = vtanh.f32 %v1492_v27  ;;  %v2910_v23 = vpop.f32.mrb[59].mxu1  ;;  %v2561_v38 = vmul.f32 -1.442695, %v1492_v27 }
0x1228   :  { %v1435_v31 = vpop.f32.mrb[32].mxu0 }
0x1229   :  { %v1441_v33 = vadd.f32 %v1435_v31, %v1393_v30  ;;  %v2901_v34 = vpop.f32.mrb[33].mxu0 }
0x122a   :  { %v1438_v14 = vpop.f32.mrb[34].mxu0 }
0x122b   :  { %3160 = vtanh.f32 %v1441_v33  ;;  %v2902_v24 = vpop.f32.mrb[35].mxu0  ;;  %v2560_v40 = vmul.f32 -1.442695, %v1441_v33 }
0x122c   :  { %3162 = vpow2.f32 %v2561_v38 }
0x122d   :  { %3164 = vpow2.f32 %v2560_v40 }
0x1231   :  { %v3159_v36 = vpop.eup %3158 }
0x1232   :  { %1526 = vrot.lane.b32.xlu0 %v3159_v36, %s3473_s6 }
0x1235   :  { %v3161_v37 = vpop.eup %3160 }
0x1236   :  { %1502 = vrot.lane.b32.xlu1 %v3161_v37, %s3473_s6  ;;  %v3163_v41 = vpop.eup %3162 }
0x1237   :  { %v1520_v43 = vadd.f32 1.0, %v3163_v41  ;;  %v3165_v16 = vpop.eup %3164 }
0x1238   :  { %v1496_v39 = vadd.f32 1.0, %v3165_v16 }
0x1239   :  { %3166 = vrcp.f32 %v1520_v43 }
0x123a   :  { %3168 = vrcp.f32 %v1496_v39 }
0x1243   :  { %v3167_v44 = vpop.eup %3166 }
0x1244   :  { %v3169_v49 = vpop.eup %3168  ;;  %v1524_v51 = vmul.f32 %v3167_v44, %v3972_v60 }
0x1245   :  { %v1500_v54 = vmul.f32 %v3169_v49, %v3976_v63 }
0x12a4   :  { %v1527_v46 = vpop.permute.xlu0 %1526 }
0x12a5   :  { %v1529_v47 = vmul.f32 %v3167_v44, %v1527_v46 }
0x12a7   :  { %1531 = vrot.lane.b32.xlu0 %v1529_v47, %s3473_s6 }
0x12a8   :  { %v1503_v42 = vpop.permute.xlu1 %1502 }
0x12a9   :  { %v1505_v50 = vmul.f32 %v3169_v49, %v1503_v42 }
0x12ab   :  { %1507 = vrot.lane.b32.xlu1 %v1505_v50, %s3473_s6 }
0x1319   :  { %v1532_v52 = vpop.permute.xlu0 %1531 }
0x131a   :  { %v4030_v53 = vadd.f32 %v1532_v52, %v1524_v51 }
0x131c   :  { %3170 = vtanh.f32 %v4030_v53 }
0x131d   :  { %v1508_v56 = vpop.permute.xlu1 %1507 }
0x131e   :  { %v4034_v57 = vadd.f32 %v1508_v56, %v1500_v54 }
0x1320   :  { %3172 = vtanh.f32 %v4034_v57 }
0x1326   :  { %v3171_v58 = vpop.eup %3170 }
0x1327   :  { %1537 = vrot.lane.b32.xlu0 %v3171_v58, %s3473_s6 }
0x132a   :  { %v3173_v55 = vpop.eup %3172 }
0x132b   :  { %1513 = vrot.lane.b32.xlu1 %v3173_v55, %s3473_s6 }
0x1399   :  { %v1538_v62 = vpop.permute.xlu0 %1537 }
0x139a   :  { %v4039_v60 = vmul.f32 %v3167_v44, %v1538_v62 }
0x139c   :  { %v1605_v1 = vpack.c.bf16 %v4039_v60, %v4039_v60 }
0x139d   :  { %v1514_v3 = vpop.permute.xlu1 %1513 }
0x139e   :  { %v4043_v4 = vmul.f32 %v3169_v49, %v1514_v3  ;;  %1607 = vrot.lane.b32.xlu0 %v1605_v1, %s4368_s26 }
0x13a0   :  { %v1554_v63 = vpack.c.bf16 %v4043_v4, %v4043_v4 }
0x13a2   :  { %1556 = vrot.lane.b32.xlu1 %v1554_v63, %s4368_s26 }
0x1410   :  { %v1608_v2 = vpop.permute.xlu0 %1607 }
0x1411   :  { %2924 = vmatmul.mubr.msk.bf16.vlgmr.msra.gmra.mrb[60].mxu1 %vm176_vm1, %v1608_v2 }
0x1412   :  { %2936 = vmatpush3.bf16.msra.mxu1 %v3992_v5  ;;  %2939 = vmatprep.mubr.msk.bf16.mxu1 %vm3471_vm0, %v3470_v0 }
0x1413   :  { %2937 = vmatprep.subr.bf16.mxu1 %v3470_v0 }
0x1414   :  { %v1557_v7 = vpop.permute.xlu1 %1556 }
0x1415   :  { %2916 = vmatmul.mubr.msk.bf16.vlgmr.msra.gmra.mrb[36].mxu0 %vm176_vm1, %v1557_v7  ;;  %v4106_v7 = vld [vmem:[#allocation2 + $0x20] sm:$0xff]  }
0x1416   :  { %2928 = vmatpush3.bf16.msra.mxu0 %v4002_v13  ;;  %2938 = vmatpush3.bf16.msra.mxu1 %v4005_v15 }
0x1417   :  { %2929 = vmatprep.subr.bf16.mxu0 %v3470_v0  ;;  %2931 = vmatprep.mubr.msk.bf16.mxu0 %vm3471_vm0, %v3470_v0 }
0x1418   :  { %2951 = vmatprep.subr.bf16.mxu1 %v3470_v0 }
0x141a   :  { %2930 = vmatpush3.bf16.msra.mxu0 %v4015_v18 }
0x141b   :  { %2943 = vmatprep.subr.bf16.mxu0 %v3470_v0 }
0x14e4   :  { %v1646_v10 = vpop.f32.mrb[60].mxu1 }
0x14e5   :  { %v1652_v11 = vadd.f32 %v1646_v10, %v1604_v9  ;;  %v2925_v20 = vpop.f32.mrb[61].mxu1 }
0x14e6   :  { %v1649_v22 = vpop.f32.mrb[62].mxu1 }
0x14e7   :  { %3174 = vtanh.f32 %v1652_v11  ;;  %v2926_v27 = vpop.f32.mrb[63].mxu1  ;;  %v2565_v19 = vmul.f32 -1.442695, %v1652_v11  ;;  %v1713_v11 = vunpack.c.l.bf16 %v4106_v7 }
0x14e8   :  { %v1595_v29 = vpop.f32.mrb[36].mxu0 }
0x14e9   :  { %v1601_v23 = vadd.f32 %v1595_v29, %v1553_v28  ;;  %v2917_v30 = vpop.f32.mrb[37].mxu0 }
0x14ea   :  { %v1598_v31 = vpop.f32.mrb[38].mxu0 }
0x14eb   :  { %3176 = vtanh.f32 %v1601_v23  ;;  %v2918_v33 = vpop.f32.mrb[39].mxu0  ;;  %v2564_v24 = vmul.f32 -1.442695, %v1601_v23 }
0x14ec   :  { %3178 = vpow2.f32 %v2565_v19 }
0x14ed   :  { %3180 = vpow2.f32 %v2564_v24 }
0x14f1   :  { %v3175_v34 = vpop.eup %3174 }
0x14f2   :  { %1686 = vrot.lane.b32.xlu0 %v3175_v34, %s3473_s6 }
0x14f5   :  { %v3177_v14 = vpop.eup %3176 }
0x14f6   :  { %1662 = vrot.lane.b32.xlu1 %v3177_v14, %s3473_s6  ;;  %v3179_v36 = vpop.eup %3178 }
0x14f7   :  { %v1680_v37 = vadd.f32 1.0, %v3179_v36  ;;  %v3181_v38 = vpop.eup %3180 }
0x14f8   :  { %v1656_v25 = vadd.f32 1.0, %v3181_v38 }
0x14f9   :  { %3182 = vrcp.f32 %v1680_v37 }
0x14fa   :  { %3184 = vrcp.f32 %v1656_v25 }
0x1503   :  { %v3183_v40 = vpop.eup %3182 }
0x1504   :  { %v3185_v16 = vpop.eup %3184  ;;  %v1684_v46 = vmul.f32 %v3183_v40, %v4030_v53 }
0x1505   :  { %v1660_v42 = vmul.f32 %v3185_v16, %v4034_v57 }
0x1564   :  { %v1687_v41 = vpop.permute.xlu0 %1686 }
0x1565   :  { %v1689_v43 = vmul.f32 %v3183_v40, %v1687_v41 }
0x1567   :  { %1691 = vrot.lane.b32.xlu0 %v1689_v43, %s3473_s6 }
0x1568   :  { %v1663_v39 = vpop.permute.xlu1 %1662 }
0x1569   :  { %v1665_v44 = vmul.f32 %v3185_v16, %v1663_v39 }
0x156b   :  { %1667 = vrot.lane.b32.xlu1 %v1665_v44, %s3473_s6 }
0x15d9   :  { %v1692_v47 = vpop.permute.xlu0 %1691 }
0x15da   :  { %v4070_v49 = vadd.f32 %v1692_v47, %v1684_v46 }
0x15dc   :  { %3186 = vtanh.f32 %v4070_v49 }
0x15dd   :  { %v1668_v50 = vpop.permute.xlu1 %1667 }
0x15de   :  { %v4074_v51 = vadd.f32 %v1668_v50, %v1660_v42 }
0x15e0   :  { %3188 = vtanh.f32 %v4074_v51 }
0x15e6   :  { %v3187_v52 = vpop.eup %3186 }
0x15e7   :  { %1697 = vrot.lane.b32.xlu0 %v3187_v52, %s3473_s6 }
0x15ea   :  { %v3189_v54 = vpop.eup %3188 }
0x15eb   :  { %1673 = vrot.lane.b32.xlu1 %v3189_v54, %s3473_s6 }
0x1659   :  { %v1698_v56 = vpop.permute.xlu0 %1697 }
0x165a   :  { %v4079_v53 = vmul.f32 %v3183_v40, %v1698_v56 }
0x165c   :  { %v1765_v58 = vpack.c.bf16 %v4079_v53, %v4079_v53 }
0x165d   :  { %v1674_v55 = vpop.permute.xlu1 %1673 }
0x165e   :  { %v4083_v62 = vmul.f32 %v3185_v16, %v1674_v55  ;;  %1767 = vrot.lane.b32.xlu0 %v1765_v58, %s4368_s26 }
0x1660   :  { %v1714_v57 = vpack.c.bf16 %v4083_v62, %v4083_v62 }
0x1662   :  { %1716 = vrot.lane.b32.xlu1 %v1714_v57, %s4368_s26 }
0x16d0   :  { %v1768_v1 = vpop.permute.xlu0 %1767 }
0x16d1   :  { %2940 = vmatmul.mubr.msk.bf16.vlgmr.msra.gmra.mrb[64].mxu1 %vm176_vm1, %v1768_v1 }
0x16d2   :  { %2952 = vmatpush3.bf16.msra.mxu1 %v3992_v5  ;;  %2955 = vmatprep.mubr.msk.bf16.mxu1 %vm3471_vm0, %v3470_v0  ;;  %v4103_v5 = vld [vmem:[#allocation3] sm:$0xff]  }
0x16d3   :  { %2953 = vmatprep.subr.bf16.mxu1 %v3470_v0  ;;  %v1764_v63 = vunpack.c.h.bf16 %v4103_v5  ;;  %v1923_v57 = vunpack.c.l.bf16 %v4103_v5 }
0x16d4   :  { %v1717_v3 = vpop.permute.xlu1 %1716 }
0x16d5   :  { %2932 = vmatmul.mubr.msk.bf16.vlgmr.msra.gmra.mrb[40].mxu0 %vm176_vm1, %v1717_v3 }
0x16d6   :  { %2944 = vmatpush3.bf16.msra.mxu0 %v4002_v13  ;;  %2954 = vmatpush3.bf16.msra.mxu1 %v4005_v15 }
0x16d7   :  { %2945 = vmatprep.subr.bf16.mxu0 %v3470_v0  ;;  %2947 = vmatprep.mubr.msk.bf16.mxu0 %vm3471_vm0, %v3470_v0 }
0x16d8   :  { %2967 = vmatprep.subr.bf16.mxu1 %v3470_v0 }
0x16da   :  { %2946 = vmatpush3.bf16.msra.mxu0 %v4015_v18 }
0x16db   :  { %2959 = vmatprep.subr.bf16.mxu0 %v3470_v0 }
0x17a4   :  { %v1806_v2 = vpop.f32.mrb[64].mxu1 }
0x17a5   :  { %v1812_v13 = vadd.f32 %v1806_v2, %v1764_v63  ;;  %v2941_v15 = vpop.f32.mrb[65].mxu1 }
0x17a6   :  { %v1809_v9 = vpop.f32.mrb[66].mxu1  ;;  %v1873_v15 = vunpack.c.h.bf16 %v4106_v7 }
0x17a7   :  { %3190 = vtanh.f32 %v1812_v13  ;;  %v2942_v10 = vpop.f32.mrb[67].mxu1  ;;  %v2569_v30 = vmul.f32 -1.442695, %v1812_v13 }
0x17a8   :  { %v1755_v20 = vpop.f32.mrb[40].mxu0 }
0x17a9   :  { %v1761_v22 = vadd.f32 %v1755_v20, %v1713_v11  ;;  %v2933_v27 = vpop.f32.mrb[41].mxu0 }
0x17aa   :  { %v1758_v18 = vpop.f32.mrb[42].mxu0 }
0x17ab   :  { %3192 = vtanh.f32 %v1761_v22  ;;  %v2934_v28 = vpop.f32.mrb[43].mxu0  ;;  %v2568_v31 = vmul.f32 -1.442695, %v1761_v22 }
0x17ac   :  { %3194 = vpow2.f32 %v2569_v30 }
0x17ad   :  { %3196 = vpow2.f32 %v2568_v31 }
0x17b1   :  { %v3191_v29 = vpop.eup %3190 }
0x17b2   :  { %1846 = vrot.lane.b32.xlu0 %v3191_v29, %s3473_s6 }
0x17b5   :  { %v3193_v23 = vpop.eup %3192 }
0x17b6   :  { %1822 = vrot.lane.b32.xlu1 %v3193_v23, %s3473_s6  ;;  %v3195_v33 = vpop.eup %3194 }
0x17b7   :  { %v1840_v34 = vadd.f32 1.0, %v3195_v33  ;;  %v3197_v14 = vpop.eup %3196 }
0x17b8   :  { %v1816_v19 = vadd.f32 1.0, %v3197_v14 }
0x17b9   :  { %3198 = vrcp.f32 %v1840_v34 }
0x17ba   :  { %3200 = vrcp.f32 %v1816_v19 }
0x17c3   :  { %v3199_v24 = vpop.eup %3198 }
0x17c4   :  { %v3201_v38 = vpop.eup %3200  ;;  %v1844_v41 = vmul.f32 %v3199_v24, %v4070_v49 }
0x17c5   :  { %v1820_v39 = vmul.f32 %v3201_v38, %v4074_v51 }
0x1824   :  { %v1847_v36 = vpop.permute.xlu0 %1846 }
0x1825   :  { %v1849_v37 = vmul.f32 %v3199_v24, %v1847_v36 }
0x1827   :  { %1851 = vrot.lane.b32.xlu0 %v1849_v37, %s3473_s6 }
0x1828   :  { %v1823_v25 = vpop.permute.xlu1 %1822 }
0x1829   :  { %v1825_v40 = vmul.f32 %v3201_v38, %v1823_v25 }
0x182b   :  { %1827 = vrot.lane.b32.xlu1 %v1825_v40, %s3473_s6 }
0x1899   :  { %v1852_v43 = vpop.permute.xlu0 %1851 }
0x189a   :  { %v1854_v16 = vadd.f32 %v1852_v43, %v1844_v41 }
0x189c   :  { %3202 = vtanh.f32 %v1854_v16 }
0x189d   :  { %v1828_v44 = vpop.permute.xlu1 %1827 }
0x189e   :  { %v1830_v46 = vadd.f32 %v1828_v44, %v1820_v39 }
0x18a0   :  { %3204 = vtanh.f32 %v1830_v46 }
0x18a6   :  { %v3203_v47 = vpop.eup %3202 }
0x18a7   :  { %1857 = vrot.lane.b32.xlu0 %v3203_v47, %s3473_s6  ;;  %v3051_v47 = vld [vmem:[#allocation10 + $0x8] sm:$0xff]  }
0x18aa   :  { %v3205_v42 = vpop.eup %3204 }
0x18ab   :  { %1833 = vrot.lane.b32.xlu1 %v3205_v42, %s3473_s6 }
0x1919   :  { %v1858_v50 = vpop.permute.xlu0 %1857 }
0x191a   :  { %v4117_v52 = vmul.f32 %v3199_v24, %v1858_v50 }
0x191c   :  { %v1924_v49 = vpack.c.bf16 %v4117_v52, %v4117_v52 }
0x191d   :  { %v1834_v54 = vpop.permute.xlu1 %1833 }
0x191e   :  { %v4121_v56 = vmul.f32 %v3201_v38, %v1834_v54  ;;  %1926 = vrot.lane.b32.xlu0 %v1924_v49, %s4368_s26 }
0x1920   :  { %v1874_v51 = vpack.c.bf16 %v4121_v56, %v4121_v56 }
0x1922   :  { %1876 = vrot.lane.b32.xlu1 %v1874_v51, %s4368_s26 }
0x1990   :  { %v1927_v58 = vpop.permute.xlu0 %1926 }
0x1991   :  { %2956 = vmatmul.mubr.msk.bf16.vlgmr.msra.gmra.mrb[68].mxu1 %vm176_vm1, %v1927_v58  ;;  %v3056_v58 = vld [vmem:[%s4351_s13 + $0x10] sm:$0xff]  }
0x1992   :  { %2971 = vmatprep.mubr.msk.bf16.mxu1 %vm3471_vm0, %v3470_v0 }
0x1994   :  { %v1877_v55 = vpop.permute.xlu1 %1876 }
0x1995   :  { %2948 = vmatmul.mubr.msk.bf16.vlgmr.msra.gmra.mrb[44].mxu0 %vm176_vm1, %v1877_v55 }
0x1996   :  { %2963 = vmatprep.mubr.msk.bf16.mxu0 %vm3471_vm0, %v3470_v0 }
0x1a64   :  { %v1965_v1 = vpop.f32.mrb[68].mxu1 }
0x1a65   :  { %v1971_v3 = vadd.f32 %v1965_v1, %v1923_v57  ;;  %v2957_v63 = vpop.f32.mrb[69].mxu1  ;;  %v3057_v1 = vld [vmem:[%s4351_s13 + $0x18] sm:$0xff]  }
0x1a66   :  { %v1968_v2 = vpop.f32.mrb[70].mxu1 }
0x1a67   :  { %3206 = vtanh.f32 %v1971_v3  ;;  %v2958_v13 = vpop.f32.mrb[71].mxu1  ;;  %v2573_v5 = vmul.f32 -1.442695, %v1971_v3 }
0x1a68   :  { %v1915_v9 = vpop.f32.mrb[44].mxu0 }
0x1a69   :  { %v1921_v10 = vadd.f32 %v1915_v9, %v1873_v15  ;;  %v2949_v11 = vpop.f32.mrb[45].mxu0 }
0x1a6a   :  { %v1918_v20 = vpop.f32.mrb[46].mxu0 }
0x1a6b   :  { %3208 = vtanh.f32 %v1921_v10  ;;  %v2950_v22 = vpop.f32.mrb[47].mxu0  ;;  %v2572_v28 = vmul.f32 -1.442695, %v1921_v10 }
0x1a6c   :  { %3210 = vpow2.f32 %v2573_v5 }
0x1a6d   :  { %3212 = vpow2.f32 %v2572_v28 }
0x1a71   :  { %v3207_v27 = vpop.eup %3206 }
0x1a72   :  { %2005 = vrot.lane.b32.xlu0 %v3207_v27, %s3473_s6 }
0x1a75   :  { %v3209_v18 = vpop.eup %3208 }
0x1a76   :  { %1981 = vrot.lane.b32.xlu1 %v3209_v18, %s3473_s6  ;;  %v3211_v29 = vpop.eup %3210 }
0x1a77   :  { %v1999_v23 = vadd.f32 1.0, %v3211_v29  ;;  %v3213_v30 = vpop.eup %3212 }
0x1a78   :  { %v1975_v7 = vadd.f32 1.0, %v3213_v30 }
0x1a79   :  { %3214 = vrcp.f32 %v1999_v23 }
0x1a7a   :  { %3216 = vrcp.f32 %v1975_v7 }
0x1a83   :  { %v3215_v31 = vpop.eup %3214 }
0x1a84   :  { %v3217_v14 = vpop.eup %3216  ;;  %v2003_v36 = vmul.f32 %v3215_v31, %v1854_v16  ;;  %v3050_v16 = vld [vmem:[#allocation10] sm:$0xff]  }
0x1a85   :  { %v1979_v25 = vmul.f32 %v3217_v14, %v1830_v46  ;;  %2960 = vmatpush3.bf16.msra.mxu0 %v3050_v16 }
0x1a86   :  { %2961 = vmatprep.subr.bf16.mxu0 %v3470_v0 }
0x1a89   :  { %2962 = vmatpush3.bf16.msra.mxu0 %v3051_v47 }
0x1a8a   :  { %2975 = vmatprep.subr.bf16.mxu0 %v3470_v0 }
0x1ae4   :  { %v2006_v33 = vpop.permute.xlu0 %2005 }
0x1ae5   :  { %v2008_v34 = vmul.f32 %v3215_v31, %v2006_v33 }
0x1ae7   :  { %2010 = vrot.lane.b32.xlu0 %v2008_v34, %s3473_s6 }
0x1ae8   :  { %v1982_v19 = vpop.permute.xlu1 %1981 }
0x1ae9   :  { %v1984_v24 = vmul.f32 %v3217_v14, %v1982_v19  ;;  %v3061_v19 = vld [vmem:[%s4348_s10 + $0x8] sm:$0xff]  }
0x1aeb   :  { %1986 = vrot.lane.b32.xlu1 %v1984_v24, %s3473_s6 }
0x1b59   :  { %v2011_v37 = vpop.permute.xlu0 %2010 }
0x1b5a   :  { %v2013_v38 = vadd.f32 %v2011_v37, %v2003_v36 }
0x1b5c   :  { %3218 = vtanh.f32 %v2013_v38  ;;  %v2170_v44 = vpack.c.bf16 %v2013_v38, %v2013_v38 }
0x1b5d   :  { %v1987_v40 = vpop.permute.xlu1 %1986 }
0x1b5e   :  { %v1989_v41 = vadd.f32 %v1987_v40, %v1979_v25 }
0x1b60   :  { %3220 = vtanh.f32 %v1989_v41 }
0x1b66   :  { %v3219_v43 = vpop.eup %3218 }
0x1b67   :  { %2016 = vrot.lane.b32.xlu0 %v3219_v43, %s3473_s6 }
0x1b6a   :  { %v3221_v39 = vpop.eup %3220 }
0x1b6b   :  { %1992 = vrot.lane.b32.xlu1 %v3221_v39, %s3473_s6 }
0x1b6f   :  { %2176 = vrot.lane.b32.xlu1 %v2170_v44, %s3474_s20 }
0x1b73   :  { %734 = vrot.lane.b32.xlu1 %v3817_v61, %s4368_s26 }
0x1bd9   :  { %v2017_v46 = vpop.permute.xlu0 %2016 }
0x1bda   :  { %v2019_v42 = vmul.f32 %v3215_v31, %v2017_v46  ;;  %v3060_v31 = vld [vmem:[%s4348_s10] sm:$0xff]   ;;  %s3475_s10 = smov [#allocation15]  }
0x1bdb   :  { %s2458_s4 = sshll.u32 %s3475_s10, 4  ;;  %s2459_s4 = int_to_ptr.vmem [resolvable:$true] %s2458_s4 }
0x1bdc   :  { %2026 = vrot.lane.b32.xlu1 %v2019_v42, %s3474_s20  ;;  %v2035_v50 = vpack.c.bf16 %v2019_v42, %v2019_v42  ;;  %s3358_s0 = scalar_lea.vmem %s2459_s4, 1280  ;;  %p3363_p7 = scmp.lt.s32.totalorder %s2459_s4, %s2459_s4 }
0x1bdd   :  { %v1993_v49 = vpop.permute.xlu1 %1992  ;;  %p3359_p6 = scmp.ne.s32.totalorder %s2459_s4, %s3358_s0  ;;  %p3364_p8 = scmp.lt.s32.totalorder %s3358_s0, %s3358_s0 }
0x1bde   :  { %2041 = vrot.lane.b32.xlu0 %v2035_v50, %s4368_s26 }
0x1bdf   :  { %p3365_p9 = por %p3364_p8, %p3363_p7 }
0x1be0   :  { %1058 = vrot.lane.b32.xlu1 %v3901_v35, %s4368_s26  ;;  %v1995_v35 = vmul.f32 %v3217_v14, %v1993_v49 }
0x1be1   :  { %v2177_v61 = vpop.permute.xlu1 %2176  ;;  %p3366_p10 = pnand %p3365_p9, %p3359_p6 }
0x1be2   :  { %572 = vrot.lane.b32.xlu0 %v3777_v17, %s4368_s26  ;;  %v3058_v17 = vld [vmem:[#allocation9] sm:$0xff]  }
0x1be3   :  { %2968 = vmatpush3.bf16.msra.mxu1 %v3058_v17 }
0x1be4   :  { %1707 = vrot.lane.b32.xlu1 %v4079_v53, %s3474_s20  ;;  %2969 = vmatprep.subr.bf16.mxu1 %v3470_v0 }
0x1be5   :  { %v735_v54 = vpop.permute.xlu1 %734 }
0x1be6   :  { %738 = vst.msk [vmem:[#allocation15 + $0x8] sm:$0xff] %vm176_vm1, %v735_v54  ;;  %1867 = vrot.lane.b32.xlu0 %v4117_v52, %s3474_s20  ;;  %v3055_v52 = vld [vmem:[%s4351_s13 + $0x8] sm:$0xff]  }
0x1be8   :  { %1226 = vrot.lane.b32.xlu1 %v3941_v21, %s3474_s20  ;;  %v3052_v21 = vld [vmem:[#allocation13] sm:$0xff]  }
0x1bea   :  { %896 = vrot.lane.b32.xlu0 %v3861_v48, %s4368_s26  ;;  %v3059_v48 = vld [vmem:[#allocation9 + $0x8] sm:$0xff]  }
0x1beb   :  { %2970 = vmatpush3.bf16.msra.mxu1 %v3059_v48 }
0x1bec   :  { %1387 = vrot.lane.b32.xlu1 %v3981_v6, %s3474_s20  ;;  %2983 = vmatprep.subr.bf16.mxu1 %v3470_v0 }
0x1bee   :  { %1547 = vrot.lane.b32.xlu0 %v4039_v60, %s3474_s20 }
0x1bf0   :  { %1064 = vrot.lane.b32.xlu1 %v3897_v32, %s3474_s20  ;;  %v2165_v32 = vpack.c.bf16 %v1989_v41, %v1989_v41 }
0x1bf2   :  { %1220 = vrot.lane.b32.xlu0 %v3945_v26, %s4368_s26 }
0x1bf4   :  { %1702 = vrot.lane.b32.xlu1 %v4083_v62, %s4368_s26 }
0x1bf6   :  { %1382 = vrot.lane.b32.xlu0 %v3985_v8, %s4368_s26  ;;  %v3053_v8 = vld [vmem:[#allocation13 + $0x8] sm:$0xff]  }
0x1bf8   :  { %740 = vrot.lane.b32.xlu1 %v3813_v59, %s3474_s20  ;;  %v2030_v59 = vpack.c.bf16 %v1995_v35, %v1995_v35 }
0x1bfa   :  { %902 = vrot.lane.b32.xlu0 %v3857_v45, %s3474_s20 }
0x1bfc   :  { %2021 = vrot.lane.b32.xlu1 %v1995_v35, %s4368_s26 }
0x1bfe   :  { %1542 = vrot.lane.b32.xlu0 %v4043_v4, %s4368_s26  ;;  %v3054_v4 = vld [vmem:[%s4351_s13] sm:$0xff]  }
0x1c00   :  { %2234 = vrot.lane.b32.xlu1 %v2165_v32, %s3474_s20 }
0x1c02   :  { %577 = vrot.lane.b32.xlu0 %v3773_v12, %s3474_s20 }
0x1c06   :  { %1862 = vrot.lane.b32.xlu0 %v4121_v56, %s4368_s26 }
0x1c0a   :  { %2099 = vrot.lane.b32.xlu0 %v2030_v59, %s4368_s26 }
0x1c4e   :  { %v2027_v45 = vpop.permute.xlu1 %2026 }
0x1c50   :  { %v2042_v26 = vpop.permute.xlu0 %2041 }
0x1c51   :  { %2964 = vmatmul.mubr.msk.bf16.vlgmr.msra.gmra.mrb[48].mxu0 %vm176_vm1, %v2042_v26 }
0x1c52   :  { %2976 = vmatpush3.bf16.msra.mxu0 %v3052_v21  ;;  %v1059_v6 = vpop.permute.xlu1 %1058  ;;  %2979 = vmatprep.mubr.msk.bf16.mxu0 %vm3471_vm0, %v3470_v0 }
0x1c53   :  { %1062 = vst.msk [vmem:[#allocation15 + $0x18] sm:$0xff] %vm176_vm1, %v1059_v6  ;;  %2977 = vmatprep.subr.bf16.mxu0 %v3470_v0 }
0x1c54   :  { %v573_v12 = vpop.permute.xlu0 %572 }
0x1c55   :  { %575 = vst.msk [vmem:[#allocation15] sm:$0xff] %vm176_vm1, %v573_v12 }
0x1c56   :  { %2029 = vst.msk [vmem:[#allocation15] sm:$0xff] %vm581_vm2, %v2027_v45  ;;  %2978 = vmatpush3.bf16.msra.mxu0 %v3053_v8  ;;  %v1708_v60 = vpop.permute.xlu1 %1707 }
0x1c57   :  { %2991 = vmatprep.subr.bf16.mxu0 %v3470_v0 }
0x1c58   :  { %v1868_v53 = vpop.permute.xlu0 %1867 }
0x1c59   :  { %1870 = vst.msk [vmem:[#allocation15 + $0x8] sm:$0xff] %vm581_vm2, %v1868_v53  ;;  %2980 = vmatmul.mubr.msk.bf16.vlgmr.msra.gmra.mrb[52].mxu0 %vm176_vm1, %v2177_v61 }
0x1c5a   :  { %2992 = vmatpush3.bf16.msra.mxu0 %v3054_v4  ;;  %v1227_v62 = vpop.permute.xlu1 %1226  ;;  %2999 = vmatprep.mubr.msk.bf16.mxu0 %vm3471_vm0, %v3470_v0 }
0x1c5b   :  { %1230 = vst.msk [vmem:[#allocation15 + $0x28] sm:$0xff] %vm581_vm2, %v1227_v62  ;;  %2993 = vmatprep.subr.bf16.mxu0 %v3470_v0 }
0x1c5c   :  { %v897_v56 = vpop.permute.xlu0 %896 }
0x1c5d   :  { %900 = vst.msk [vmem:[#allocation15 + $0x10] sm:$0xff] %vm176_vm1, %v897_v56  ;;  %v2300_v13 = vld [vmem:[#allocation15] sm:$0xff] }
0x1c5e   :  { %1710 = vst.msk [vmem:[#allocation15 + $0x10] sm:$0xff] %vm581_vm2, %v1708_v60  ;;  %2994 = vmatpush3.bf16.msra.mxu0 %v3055_v52  ;;  %v1388_v51 = vpop.permute.xlu1 %1387 }
0x1c5f   :  { %2995 = vmatprep.subr.bf16.mxu0 %v3470_v0 }
0x1c60   :  { %v1548_v55 = vpop.permute.xlu0 %1547  ;;  %v2301_v63 = vld [vmem:[#allocation15 + $0x8] sm:$0xff] }
0x1c61   :  { %1550 = vst.msk [vmem:[#allocation15 + $0x18] sm:$0xff] %vm581_vm2, %v1548_v55  ;;  %v2310_v15 = vpack.c.bf16 %v2301_v63, %v2300_v13 }
0x1c62   :  { %2996 = vmatpush3.bf16.msra.mxu0 %v3056_v58  ;;  %v1065_v57 = vpop.permute.xlu1 %1064 }
0x1c63   :  { %1068 = vst.msk [vmem:[#allocation15 + $0x30] sm:$0xff] %vm581_vm2, %v1065_v57  ;;  %2997 = vmatprep.subr.bf16.mxu0 %v3470_v0 }
0x1c64   :  { %v1221_v3 = vpop.permute.xlu0 %1220 }
0x1c65   :  { %1224 = vst.msk [vmem:[#allocation15 + $0x20] sm:$0xff] %vm176_vm1, %v1221_v3  ;;  %v2302_v22 = vld [vmem:[#allocation15 + $0x10] sm:$0xff] }
0x1c66   :  { %1390 = vst.msk [vmem:[#allocation15 + $0x20] sm:$0xff] %vm581_vm2, %v1388_v51  ;;  %2998 = vmatpush3.bf16.msra.mxu0 %v3057_v1  ;;  %v1703_v2 = vpop.permute.xlu1 %1702 }
0x1c68   :  { %v1383_v9 = vpop.permute.xlu0 %1382  ;;  %v2303_v20 = vld [vmem:[#allocation15 + $0x18] sm:$0xff] }
0x1c69   :  { %1385 = vst.msk [vmem:[#allocation15 + $0x28] sm:$0xff] %vm176_vm1, %v1383_v9  ;;  %3000 = vmatmul.mubr.msk.bf16.vlgmr.msra.gmra.mrb[56].mxu0 %vm2354_vm3, %v2310_v15  ;;  %v2311_v27 = vpack.c.bf16 %v2303_v20, %v2302_v22 }
0x1c6a   :  { %v741_v10 = vpop.permute.xlu1 %740  ;;  %3003 = vmatprep.mubr.msk.bf16.mxu0 %vm3471_vm0, %v3470_v0 }
0x1c6b   :  { %744 = vst.msk [vmem:[#allocation15 + $0x40] sm:$0xff] %vm581_vm2, %v741_v10 }
0x1c6c   :  { %v903_v11 = vpop.permute.xlu0 %902 }
0x1c6d   :  { %906 = vst.msk [vmem:[#allocation15 + $0x38] sm:$0xff] %vm581_vm2, %v903_v11  ;;  %v2304_v23 = vld [vmem:[#allocation15 + $0x20] sm:$0xff] }
0x1c6e   :  { %1705 = vst.msk [vmem:[#allocation15 + $0x38] sm:$0xff] %vm176_vm1, %v1703_v2  ;;  %v2022_v29 = vpop.permute.xlu1 %2021 }
0x1c70   :  { %v1543_v18 = vpop.permute.xlu0 %1542  ;;  %v2305_v28 = vld [vmem:[#allocation15 + $0x28] sm:$0xff] }
0x1c71   :  { %1545 = vst.msk [vmem:[#allocation15 + $0x30] sm:$0xff] %vm176_vm1, %v1543_v18  ;;  %3004 = vmatmul.mubr.msk.bf16.gmra.mrb[60].mxu0 %vm2354_vm3, %v2311_v27  ;;  %v2312_v30 = vpack.c.bf16 %v2305_v28, %v2304_v23 }
0x1c72   :  { %3007 = vmatprep.mubr.msk.bf16.mxu0 %vm3471_vm0, %v3470_v0  ;;  %v2235_v36 = vpop.permute.xlu1 %2234 }
0x1c74   :  { %v578_v5 = vpop.permute.xlu0 %577 }
0x1c75   :  { %582 = vst.msk [vmem:[#allocation15 + $0x48] sm:$0xff] %vm581_vm2, %v578_v5  ;;  %v2307_v14 = vld [vmem:[#allocation15 + $0x38] sm:$0xff] }
0x1c76   :  { %2024 = vst.msk [vmem:[#allocation15 + $0x48] sm:$0xff] %vm176_vm1, %v2022_v29 }
0x1c78   :  { %v1863_v7 = vpop.permute.xlu0 %1862  ;;  %v2306_v34 = vld [vmem:[#allocation15 + $0x30] sm:$0xff] }
0x1c79   :  { %1865 = vst.msk [vmem:[#allocation15 + $0x40] sm:$0xff] %vm176_vm1, %v1863_v7  ;;  %3008 = vmatmul.mubr.msk.bf16.gmra.mrb[64].mxu0 %vm2354_vm3, %v2312_v30  ;;  %v2313_v24 = vpack.c.bf16 %v2307_v14, %v2306_v34 }
0x1c7a   :  { %3011 = vmatprep.mubr.msk.bf16.mxu0 %vm3471_vm0, %v3470_v0 }
0x1c7c   :  { %v2100_v33 = vpop.permute.xlu0 %2099 }
0x1c7d   :  { %2972 = vmatmul.mubr.msk.bf16.vlgmr.msra.gmra.mrb[72].mxu1 %vm176_vm1, %v2100_v33  ;;  %v2309_v38 = vld [vmem:[#allocation15 + $0x48] sm:$0xff] }
0x1c7e   :  { %2984 = vmatpush3.bf16.msra.mxu1 %v3060_v31  ;;  %2987 = vmatprep.mubr.msk.bf16.mxu1 %vm3471_vm0, %v3470_v0 }
0x1c7f   :  { %2985 = vmatprep.subr.bf16.mxu1 %v3470_v0 }
0x1c80   :  { %v2308_v37 = vld [vmem:[#allocation15 + $0x40] sm:$0xff] }
0x1c81   :  { %3012 = vmatmul.mubr.msk.bf16.gmra.mrb[68].mxu0 %vm2354_vm3, %v2313_v24  ;;  %v2314_v25 = vpack.c.bf16 %v2309_v38, %v2308_v37 }
0x1c82   :  { %2986 = vmatpush3.bf16.msra.mxu1 %v3061_v19  ;;  %3015 = vmatprep.mubr.msk.bf16.mxu0 %vm3471_vm0, %v3470_v0 }
0x1c85   :  { %2988 = vmatmul.mubr.msk.bf16.vlgmr.msra.gmra.mrb[76].mxu1 %vm176_vm1, %v2235_v36 }
0x1c89   :  { %3016 = vmatmul.mubr.msk.bf16.gmra.mrb[72].mxu0 %vm2354_vm3, %v2314_v25 }
0x1c8a   :  { %3369 = shalt.err (!%p3366_p10)
}
0x1c8b   :  { %s3370_s1 = scalar_lea.hbm %s4353_s15, 1280 }
0x1c8c   :  { %p3371_p11 = scmp.ne.s32.totalorder %s4353_s15, %s3370_s1  ;;  %p3374_p12 = scmp.lt.u32.totalorder %s3370_s1, %s4353_s15 }
0x1c8e   :  { %p3376_p13 = pnand %p3374_p12, %p3371_p11 }
0x1c90   :  { %3379 = shalt.err (!%p3376_p13)
}
0x1c91   :  { %2464 = dma.vmem_to_hbm [thread:$0]  %s2459_s4, 1280, %s4353_s15, [#allocation6], %s3465_s8, %s3465_s8, %s3466_s27   ;;  %v2580_v62 = vld [vmem:[#allocation12] ss:$0 sm:$0xff] }
0x1c92   :  { %v4272_v46 = vld [vmem:[%s4352_s14] ss:$0 sm:$0xff]  ;;  %s3476_s7 = smov [#allocation19]   ;;  %s3477_s30 = smov [#allocation16]  }
0x1c93   :  { %v2587_v9 = vld [vmem:[%s4350_s12] ss:$0 sm:$0xff]  ;;  %s2493_s24 = sshll.u32 %s3476_s7, 4  ;;  %s2470_s22 = sshll.u32 %s3477_s30, 4  ;;  %s2494_s24 = int_to_ptr.vmem [resolvable:$true] %s2493_s24  ;;  %s2471_s22 = int_to_ptr.vmem [resolvable:$true] %s2470_s22 }
0x1c94   :  { %s3478_s5 = smov [#allocation18]   ;;  %s3380_s28 = scalar_lea.vmem %s2494_s24, 128 }
0x1c95   :  { %s2483_s12 = sshll.u32 %s3478_s5, 4  ;;  %p3381_p0 = scmp.ne.s32.totalorder %s2494_s24, %s3380_s28  ;;  %s2484_s12 = int_to_ptr.vmem [resolvable:$true] %s2483_s12 }
0x1c96   :  { %p3385_p1 = scmp.lt.s32.totalorder %s2494_s24, %s2494_s24  ;;  %p3386_p2 = scmp.lt.s32.totalorder %s3380_s28, %s3380_s28 }
0x1c98   :  { %p3387_p3 = por %p3386_p2, %p3385_p1 }
0x1c9a   :  { %p3388_p4 = pnand %p3387_p3, %p3381_p0 }
0x1d24   :  { %v2092_v0 = vpop.f32.mrb[48].mxu0 }
0x1d25   :  { %v2965_v40 = vpop.f32.mrb[49].mxu0 }
0x1d26   :  { %v2095_v41 = vpop.f32.mrb[50].mxu0 }
0x1d27   :  { %v2966_v43 = vpop.f32.mrb[51].mxu0 }
0x1d2c   :  { %v2227_v39 = vpop.f32.mrb[52].mxu0 }
0x1d2d   :  { %v2981_v44 = vpop.f32.mrb[53].mxu0 }
0x1d2e   :  { %v2230_v16 = vpop.f32.mrb[54].mxu0 }
0x1d2f   :  { %v2982_v47 = vpop.f32.mrb[55].mxu0 }
0x1d3c   :  { %v2404_v42 = vpop.f32.mrb[56].mxu0 }
0x1d3d   :  { %v2405_v50 = vadd.f32 %v4272_v46, %v2404_v42  ;;  %v3001_v49 = vpop.f32.mrb[57].mxu0 }
0x1d3e   :  { %v2407_v61 = vpop.f32.mrb[58].mxu0 }
0x1d3f   :  { %2443 = vst.msk [vmem:[#allocation16] sm:$0xff] %vm176_vm1, %v2405_v50  ;;  %v2408_v54 = vadd.f32 %v4272_v46, %v2407_v61  ;;  %v3002_v17 = vpop.f32.mrb[59].mxu0 }
0x1d41   :  { %2444 = vst.msk [vmem:[#allocation16 + $0x8] sm:$0xff] %vm176_vm1, %v2408_v54 }
0x1d44   :  { %v2412_v48 = vpop.f32.mrb[60].mxu0 }
0x1d45   :  { %v2413_v35 = vadd.f32 %v4272_v46, %v2412_v48  ;;  %v3005_v32 = vpop.f32.mrb[61].mxu0 }
0x1d46   :  { %v2415_v59 = vpop.f32.mrb[62].mxu0 }
0x1d47   :  { %2445 = vst.msk [vmem:[#allocation16 + $0x10] sm:$0xff] %vm176_vm1, %v2413_v35  ;;  %v2416_v45 = vadd.f32 %v4272_v46, %v2415_v59  ;;  %v3006_v21 = vpop.f32.mrb[63].mxu0 }
0x1d49   :  { %2446 = vst.msk [vmem:[#allocation16 + $0x18] sm:$0xff] %vm176_vm1, %v2416_v45 }
0x1d4c   :  { %v2420_v26 = vpop.f32.mrb[64].mxu0 }
0x1d4d   :  { %v2421_v6 = vadd.f32 %v4272_v46, %v2420_v26  ;;  %v3009_v8 = vpop.f32.mrb[65].mxu0 }
0x1d4e   :  { %v2423_v12 = vpop.f32.mrb[66].mxu0 }
0x1d4f   :  { %2447 = vst.msk [vmem:[#allocation16 + $0x20] sm:$0xff] %vm176_vm1, %v2421_v6  ;;  %v2424_v60 = vadd.f32 %v4272_v46, %v2423_v12  ;;  %v3010_v4 = vpop.f32.mrb[67].mxu0 }
0x1d50   :  { %v2150_v53 = vpop.f32.mrb[72].mxu1 }
0x1d51   :  { %2448 = vst.msk [vmem:[#allocation16 + $0x28] sm:$0xff] %vm176_vm1, %v2424_v60  ;;  %v2151_v52 = vadd.f32 %v2150_v53, %v2092_v0  ;;  %v2973_v56 = vpop.f32.mrb[73].mxu1 }
0x1d52   :  { %v2153_v51 = vpop.f32.mrb[74].mxu1 }
0x1d53   :  { %v2163_v58 = vadd.f32 %v2580_v62, %v2151_v52  ;;  %v2974_v55 = vpop.f32.mrb[75].mxu1 }
0x1d54   :  { %v2428_v57 = vpop.f32.mrb[68].mxu0 }
0x1d55   :  { %2164 = vst.msk [vmem:[#allocation18] sm:$0xff] %vm176_vm1, %v2163_v58  ;;  %v2429_v1 = vadd.f32 %v4272_v46, %v2428_v57  ;;  %v3013_v3 = vpop.f32.mrb[69].mxu0 }
0x1d56   :  { %v2431_v63 = vpop.f32.mrb[70].mxu0 }
0x1d57   :  { %2449 = vst.msk [vmem:[#allocation16 + $0x30] sm:$0xff] %vm176_vm1, %v2429_v1  ;;  %v2432_v2 = vadd.f32 %v4272_v46, %v2431_v63  ;;  %v3014_v13 = vpop.f32.mrb[71].mxu0 }
0x1d58   :  { %v2285_v15 = vpop.f32.mrb[76].mxu1 }
0x1d59   :  { %2450 = vst.msk [vmem:[#allocation16 + $0x38] sm:$0xff] %vm176_vm1, %v2432_v2  ;;  %v2286_v10 = vadd.f32 %v2285_v15, %v2227_v39  ;;  %v2989_v11 = vpop.f32.mrb[77].mxu1 }
0x1d5a   :  { %v2288_v20 = vpop.f32.mrb[78].mxu1 }
0x1d5b   :  { %v2298_v22 = vadd.f32 %v2587_v9, %v2286_v10  ;;  %v2990_v27 = vpop.f32.mrb[79].mxu1 }
0x1d5c   :  { %v2436_v18 = vpop.f32.mrb[72].mxu0 }
0x1d5d   :  { %2299 = vst.msk [vmem:[#allocation19] sm:$0xff] %vm176_vm1, %v2298_v22  ;;  %v2437_v5 = vadd.f32 %v4272_v46, %v2436_v18  ;;  %v3017_v28 = vpop.f32.mrb[73].mxu0 }
0x1d5e   :  { %v2439_v29 = vpop.f32.mrb[74].mxu0 }
0x1d5f   :  { %3391 = shalt.err (!%p3388_p4)
}
0x1d60   :  { %s3392_s25 = scalar_lea.hbm %s4356_s18, 128 }
0x1d61   :  { %p3393_p5 = scmp.ne.s32.totalorder %s4356_s18, %s3392_s25  ;;  %p3396_p6 = scmp.lt.u32.totalorder %s3392_s25, %s4356_s18 }
0x1d63   :  { %p3398_p7 = pnand %p3396_p6, %p3393_p5 }
0x1d65   :  { %3401 = shalt.err (!%p3398_p7)
}
0x1d66   :  { %2496 = dma.vmem_to_hbm [thread:$0]  %s2494_s24, 128, %s4356_s18, [#allocation20]   ;;  %2451 = vst.msk [vmem:[#allocation16 + $0x40] sm:$0xff] %vm176_vm1, %v2437_v5  ;;  %v2440_v23 = vadd.f32 %v4272_v46, %v2439_v29  ;;  %v3018_v30 = vpop.f32.mrb[75].mxu0 }
0x1d67   :  { %s3402_s1 = scalar_lea.vmem %s2471_s22, 1280  ;;  %p3407_p9 = scmp.lt.s32.totalorder %s2471_s22, %s2471_s22 }
0x1d68   :  { %2452 = vst.msk [vmem:[#allocation16 + $0x48] sm:$0xff] %vm176_vm1, %v2440_v23  ;;  %p3403_p8 = scmp.ne.s32.totalorder %s2471_s22, %s3402_s1  ;;  %p3408_p10 = scmp.lt.s32.totalorder %s3402_s1, %s3402_s1 }
0x1d6a   :  { %p3409_p11 = por %p3408_p10, %p3407_p9 }
0x1d6c   :  { %p3410_p12 = pnand %p3409_p11, %p3403_p8 }
0x1d6e   :  { %3413 = shalt.err (!%p3410_p12)
}
0x1d6f   :  { %s3414_s18 = scalar_lea.hbm %s4354_s16, 1280 }
0x1d70   :  { %p3415_p13 = scmp.ne.s32.totalorder %s4354_s16, %s3414_s18  ;;  %p3418_p0 = scmp.lt.u32.totalorder %s3414_s18, %s4354_s16 }
0x1d72   :  { %p3420_p1 = pnand %p3418_p0, %p3415_p13 }
0x1d74   :  { %3423 = shalt.err (!%p3420_p1)
}
0x1d75   :  { %2476 = dma.vmem_to_hbm [thread:$0]  %s2471_s22, 1280, %s4354_s16, [#allocation17], %s3465_s8, %s3465_s8, %s3466_s27  }
0x1d76   :  { %s3424_s14 = scalar_lea.vmem %s2484_s12, 128  ;;  %p3429_p3 = scmp.lt.s32.totalorder %s2484_s12, %s2484_s12 }
0x1d77   :  { %p3425_p2 = scmp.ne.s32.totalorder %s2484_s12, %s3424_s14  ;;  %p3430_p4 = scmp.lt.s32.totalorder %s3424_s14, %s3424_s14 }
0x1d79   :  { %p3431_p5 = por %p3430_p4, %p3429_p3 }
0x1d7b   :  { %p3432_p6 = pnand %p3431_p5, %p3425_p2 }
0x1d7d   :  { %3435 = shalt.err (!%p3432_p6)
}
0x1d7e   :  { %s4371_s24 = sld [smem:[#allocation31_spill]] }
0x1d84   :  { %s3436_s30 = scalar_lea.hbm %s4371_s24, 128 }
0x1d85   :  { %p3437_p7 = scmp.ne.s32.totalorder %s4371_s24, %s3436_s30  ;;  %p3440_p8 = scmp.lt.u32.totalorder %s3436_s30, %s4371_s24 }
0x1d87   :  { %p3442_p9 = pnand %p3440_p8, %p3437_p7 }
0x1d89   :  { %3445 = shalt.err (!%p3442_p9)
}
0x1d8a   :  { %2486 = dma.vmem_to_hbm [thread:$0]  %s2484_s12, 128, %s4371_s24, [#allocation17]  }
0x1d8b   :  { %3454 = dma.done.wait [#allocation6], 1280  }
0x1d8c   :  { %3455 = vsyncadd [#allocation6], 4294966016 }
0x1d8d   :  { %3456 = dma.done.wait [#allocation17], 1408  }
0x1d8e   :  { %3457 = vsyncadd [#allocation17], 4294965888 }
0x1d8f   :  { %3458 = dma.done.wait [#allocation20], 128  }
0x1d90   :  { %3459 = vsyncadd [#allocation20], 4294967168 }
0x1d91   :  { %2509 = vsyncpa [#allocation5], 1 }
0x1d92   :  { %2510 = vsyncpa [#allocation8], 1 }
0x1d93   :  { %2511 = vsyncpa [#allocation11], 1 }
0x1d94   :  { %2512 = vsyncpa [#allocation14], 1 }
0x1d95   :  { %2513 = vsyncpa [#allocation6], 1 }
0x1d96   :  { %2514 = vsyncpa [#allocation17], 1 }
0x1d97   :  { %2515 = vsyncpa [#allocation20], 1 }

</bundles_post_ra>
